<compile_context>
chip_gen: v6e
topology: v6e:2x2x1
jax: 0.10.0
libtpu: 0.0.40
codegen_flags: <defaults>
</compile_context>

<pallas_src>
import math

import jax
import jax.numpy as jnp
from jax.experimental import pallas as pl
from jax.experimental.pallas import tpu as pltpu

_EPS = 1e-8        # PixelNormLayer eps (added OUTSIDE the sqrt, as in the ref)
_W_LANES = 128     # lane-padded width of the packed weight slab


def _build_kernel(stages, rgb, nz):
    """stages: list of dicts {h, w, cin, cout, woff}; rgb: {cin, cout, woff}."""

    def kernel(z_ref, w_ref, o_ref, *pad_refs):
        NB = z_ref.shape[0]                          # batch per program (=1)
        y = z_ref[...].reshape(NB, nz).astype(jnp.float32)   # latent is 1x1 spatial

        for si, s in enumerate(stages):
            h, w, cin, cout = s["h"], s["w"], s["cin"], s["cout"]
            woff = s["woff"]
            ho, wo = 2 * h, 2 * w
            pr = pad_refs[si]                        # (NB, ho+2, wo+2, cin) scratch
            wf = w_ref[woff:woff + 9 * cin, 0:cout]  # static slice of packed slab

            # --- 2x nearest upsample: rows then cols, one broadcast+reshape each
            x4 = y.reshape(NB, h, w, cin)
            xr = jnp.broadcast_to(x4[:, :, None, :, :],
                                  (NB, h, 2, w, cin)).reshape(NB, ho, w, cin)
            xc = jnp.broadcast_to(xr[:, :, :, None, :],
                                  (NB, ho, w, 2, cin)).reshape(NB, ho, wo, cin)

            # --- zero only the 1-px border ring; interior is overwritten below
            zrow = jnp.zeros((NB, 1, wo + 2, cin), jnp.float32)
            zcol = jnp.zeros((NB, ho + 2, 1, cin), jnp.float32)
            pr[:, 0:1, :, :] = zrow
            pr[:, ho + 1:ho + 2, :, :] = zrow
            pr[:, :, 0:1, :] = zcol
            pr[:, :, wo + 1:wo + 2, :] = zcol
            # --- single interior store of the upsampled block
            pr[:, 1:ho + 1, 1:wo + 1, :] = xc

            # --- im2col: 9 shifted patches -> ONE MXU matmul
            patches = [pr[:, dy:dy + ho, dx:dx + wo, :]
                       for dy in range(3) for dx in range(3)]
            lhs = jnp.concatenate(patches, axis=-1).reshape(NB * ho * wo, 9 * cin)
            y = jnp.dot(lhs, wf, preferred_element_type=jnp.float32)   # (M, cout)

            # PixelNorm: x * sqrt(C) / (||x||_2 + eps)   (exact divide)
            nrm = jnp.sqrt(jnp.sum(y * y, axis=-1, keepdims=True))
            y = y * (math.sqrt(cout) / (nrm + _EPS))
            # LeakyReLU(0.2)
            y = jnp.maximum(y, 0.2 * y)

        # --- toRGB (1x1 conv) computed transposed: channels on sublanes,
        #     pixels (H*W, lane-dense) on lanes.
        cin_r, cout_r, woff_r = rgb["cin"], rgb["cout"], rgb["woff"]
        w_rgb = w_ref[woff_r:woff_r + cout_r, 0:cin_r]          # (cout, cin)
        y3 = jnp.dot(w_rgb, y.T, preferred_element_type=jnp.float32)  # (cout, H*W)
        nrm = jnp.sqrt(jnp.sum(y3 * y3, axis=0, keepdims=True))
        y3 = y3 * (math.sqrt(cout_r) / (nrm + _EPS))
        y3 = jnp.tanh(y3)

        o_ref[...] = y3.reshape(1, cout_r, y3.shape[1]).astype(o_ref.dtype)

    return kernel


def init_params(key, nz, ngf, nc, height):
    """Deterministic kaiming-style init of all conv weights in HWIO layout."""
    count = height // 2
    cfgs = [(nz, count * ngf, 3)]          # (Cin, Cout, K)
    while count > 1:
        count //= 2
        cfgs.append((2 * count * ngf, count * ngf, 3))
    cfgs.append((ngf, nc, 1))              # toRGB

    weights = []
    for (cin, cout, k) in cfgs:
        key, sub = jax.random.split(key)
        std = math.sqrt(2.0 / (cin * k * k))
        weights.append(std * jax.random.normal(sub, (k, k, cin, cout), jnp.float32))
    return weights, cfgs


def _pack_weights(weights, cfgs):
    """Pack all conv weights into one lane-padded (rows, 128) slab (single DMA).

    3x3 weights keep the im2col row order (dy, dx, cin); the 1x1 toRGB weight
    is stored transposed as (cout, cin) for the transposed tail matmul.
    Every block starts at an 8-aligned sublane offset.
    """
    blocks, offs, r = [], [], 0
    for wt, (cin, cout, k) in zip(weights, cfgs):
        if k == 3:
            wf = wt.reshape(k * k * cin, cout)
        else:
            wf = wt.reshape(cin, cout).T           # (cout, cin)
        nr, ncol = wf.shape
        nr_pad = -(-nr // 8) * 8
        blk = jnp.zeros((nr_pad, _W_LANES), jnp.float32).at[:nr, :ncol].set(wf)
        blocks.append(blk)
        offs.append(r)
        r += nr_pad
    return jnp.concatenate(blocks, axis=0), offs


def netG_generic_forward(z_nchw, weights, cfgs):
    """Full netG_Generic forward as a single fused Pallas call (NCHW in/out)."""
    N, nz = z_nchw.shape[0], z_nchw.shape[1]
    z3 = z_nchw.reshape(N, 1, nz).astype(jnp.float32)     # latent is 1x1 spatial

    w_packed, offs = _pack_weights(weights, cfgs)

    # Static per-stage plan (3x3 up-conv stages + final toRGB).
    stages, rgb, h, w = [], None, 1, 1
    for i, (cin, cout, k) in enumerate(cfgs):
        if k == 3:
            stages.append(dict(h=h, w=w, cin=cin, cout=cout, woff=offs[i]))
            h, w = 2 * h, 2 * w
        else:
            rgb = dict(cin=cin, cout=cout, woff=offs[i])
    H_out, W_out, C_out = h, w, rgb["cout"]
    HW = H_out * W_out

    # One padded-upsample VMEM scratch per 3x3 stage (per-program batch = 1).
    scratch = [pltpu.VMEM((1, 2 * s["h"] + 2, 2 * s["w"] + 2, s["cin"]), jnp.float32)
               for s in stages]

    out2 = pl.pallas_call(
        _build_kernel(stages, rgb, nz),
        out_shape=jax.ShapeDtypeStruct((N, C_out, HW), jnp.float32),
        grid=(N,),
        in_specs=[
            pl.BlockSpec((1, 1, nz), lambda n: (n, 0, 0)),          # latent slice
            pl.BlockSpec(w_packed.shape, lambda n: (0, 0)),         # weights, resident
        ],
        out_specs=pl.BlockSpec((1, C_out, HW), lambda n: (n, 0, 0)),
        scratch_shapes=scratch,
        compiler_params=pltpu.CompilerParams(
            dimension_semantics=("parallel",),       # batch across TCs on v7x
            # tiny footprint; re-budget against 64 MiB if tiles ever grow (v7x)
            vmem_limit_bytes=32 * 1024 * 1024),
    )(z3, w_packed)

    # Rows of the (N, C, H*W) slab are already NCHW-ordered: free reshape only.
    return out2.reshape(N, C_out, H_out, W_out)


def _reference_forward(z_nchw, weights, cfgs):
    """Pure-JAX reference of the same forward (for correctness checking)."""
    x = jnp.transpose(z_nchw, (0, 2, 3, 1)).astype(jnp.float32)
    for i, (wt, (cin, cout, k)) in enumerate(zip(weights, cfgs)):
        last = i == len(cfgs) - 1
        if k == 3:
            x = jnp.repeat(jnp.repeat(x, 2, axis=1), 2, axis=2)
            x = jnp.pad(x, ((0, 0), (1, 1), (1, 1), (0, 0)))
        x = jax.lax.conv_general_dilated(
            x, wt, window_strides=(1, 1), padding="VALID",
            dimension_numbers=("NHWC", "HWIO", "NHWC"),
            precision=jax.lax.Precision.HIGHEST)
        nrm = jnp.sqrt(jnp.sum(x * x, axis=-1, keepdims=True))
        x = x * (math.sqrt(cout) / (nrm + _EPS))
        x = jnp.tanh(x) if last else jnp.where(x > 0, x, 0.2 * x)
    return jnp.transpose(x, (0, 3, 1, 2))


if __name__ == "__main__":
    NZ, NGF, NC = 8, 4, 3
    HEIGHT = WIDTH = 16
    BATCH = 2

    key = jax.random.PRNGKey(0)
    key, k_w, k_z = jax.random.split(key, 3)

    weights, cfgs = init_params(k_w, NZ, NGF, NC, HEIGHT)
    z = jax.random.normal(k_z, (BATCH, NZ, 1, 1), jnp.float32)

    out = netG_generic_forward(z, weights, cfgs)
    out = jax.block_until_ready(out)

    assert out.shape == (BATCH, NC, HEIGHT, WIDTH), out.shape
    assert bool(jnp.all(jnp.isfinite(out)))
    assert bool(jnp.all(jnp.abs(out) <= 1.0))           # tanh output range

    ref = _reference_forward(z, weights, cfgs)
    max_err = float(jnp.max(jnp.abs(out - ref)))
    assert max_err < 5e-2, f"max abs diff vs reference = {max_err}"

    print("KERNEL_OK")
</pallas_src>

<mosaic_0001>
module attributes {stable_mosaic.version = 11 : i64} {
  func.func @kernel(%arg0: i32, %arg1: memref<1x1x8xf32, #tpu.memory_space<vmem>>, %arg2: memref<584x128xf32, #tpu.memory_space<vmem>>, %arg3: memref<1x3x256xf32, #tpu.memory_space<vmem>>, %arg4: memref<1x4x4x8xf32, #tpu.memory_space<vmem>>, %arg5: memref<1x6x6x32xf32, #tpu.memory_space<vmem>>, %arg6: memref<1x10x10x16xf32, #tpu.memory_space<vmem>>, %arg7: memref<1x18x18x8xf32, #tpu.memory_space<vmem>>) attributes {dimension_semantics = [#tpu.dimension_semantics<parallel>], iteration_bounds = array<i64: 2>, scalar_prefetch = 0 : i64, scratch_operands = 4 : i64, tpu.core_type = #tpu.core_type<tc>, window_params = [{transform_indices = @transform_0, window_bounds = array<i64: 1, 1, 8>}, {pipeline_mode = #tpu.pipeline_mode<synchronous>, transform_indices = @transform_1, window_bounds = array<i64: 584, 128>}, {transform_indices = @transform_2, window_bounds = array<i64: 1, 3, 256>}]} {
    %c0 = arith.constant 0 : index
    %c0_0 = arith.constant 0 : index
    %c0_1 = arith.constant 0 : index
    %0 = vector.load %arg1[%c0, %c0_0, %c0_1] : memref<1x1x8xf32, #tpu.memory_space<vmem>>, vector<1x1x8xf32>
    %1 = vector.shape_cast %0 : vector<1x1x8xf32> to vector<1x8xf32>
    %c0_2 = arith.constant 0 : index
    %c0_3 = arith.constant 0 : index
    %2 = vector.load %arg2[%c0_2, %c0_3] : memref<584x128xf32, #tpu.memory_space<vmem>>, vector<72x32xf32>
    %3 = vector.shape_cast %1 : vector<1x8xf32> to vector<1x1x1x8xf32>
    %4 = vector.shape_cast %3 : vector<1x1x1x8xf32> to vector<1x1x1x1x8xf32>
    %5 = vector.shape_cast %4 : vector<1x1x1x1x8xf32> to vector<1x1x1x1x8xf32>
    %6 = vector.broadcast %5 : vector<1x1x1x1x8xf32> to vector<1x1x2x1x8xf32>
    %7 = vector.shape_cast %6 : vector<1x1x2x1x8xf32> to vector<1x2x1x8xf32>
    %8 = vector.shape_cast %7 : vector<1x2x1x8xf32> to vector<1x2x1x1x8xf32>
    %9 = vector.shape_cast %8 : vector<1x2x1x1x8xf32> to vector<1x2x1x1x8xf32>
    %10 = vector.broadcast %9 : vector<1x2x1x1x8xf32> to vector<1x2x1x2x8xf32>
    %11 = vector.shape_cast %10 : vector<1x2x1x2x8xf32> to vector<1x2x2x8xf32>
    %cst = arith.constant 0.000000e+00 : f32
    %12 = vector.broadcast %cst : f32 to vector<1x1x4x8xf32>
    %cst_4 = arith.constant 0.000000e+00 : f32
    %13 = vector.broadcast %cst_4 : f32 to vector<1x4x1x8xf32>
    %c0_5 = arith.constant 0 : index
    %c0_6 = arith.constant 0 : index
    %c0_7 = arith.constant 0 : index
    %c0_8 = arith.constant 0 : index
    %14 = vector.load %arg4[%c0_5, %c0_6, %c0_7, %c0_8] : memref<1x4x4x8xf32, #tpu.memory_space<vmem>>, vector<1x1x4x8xf32>
    tpu.vector_store %arg4[%c0_5, %c0_6, %c0_7, %c0_8], %12 {strides = array<i32>} : memref<1x4x4x8xf32, #tpu.memory_space<vmem>>, vector<1x1x4x8xf32>,
    %c0_9 = arith.constant 0 : index
    %c3 = arith.constant 3 : index
    %c0_10 = arith.constant 0 : index
    %c0_11 = arith.constant 0 : index
    %15 = vector.load %arg4[%c0_9, %c3, %c0_10, %c0_11] : memref<1x4x4x8xf32, #tpu.memory_space<vmem>>, vector<1x1x4x8xf32>
    tpu.vector_store %arg4[%c0_9, %c3, %c0_10, %c0_11], %12 {strides = array<i32>} : memref<1x4x4x8xf32, #tpu.memory_space<vmem>>, vector<1x1x4x8xf32>,
    %c0_12 = arith.constant 0 : index
    %c0_13 = arith.constant 0 : index
    %c0_14 = arith.constant 0 : index
    %c0_15 = arith.constant 0 : index
    %16 = vector.load %arg4[%c0_12, %c0_13, %c0_14, %c0_15] : memref<1x4x4x8xf32, #tpu.memory_space<vmem>>, vector<1x4x1x8xf32>
    tpu.vector_store %arg4[%c0_12, %c0_13, %c0_14, %c0_15], %13 {strides = array<i32>} : memref<1x4x4x8xf32, #tpu.memory_space<vmem>>, vector<1x4x1x8xf32>,
    %c0_16 = arith.constant 0 : index
    %c0_17 = arith.constant 0 : index
    %c3_18 = arith.constant 3 : index
    %c0_19 = arith.constant 0 : index
    %17 = vector.load %arg4[%c0_16, %c0_17, %c3_18, %c0_19] : memref<1x4x4x8xf32, #tpu.memory_space<vmem>>, vector<1x4x1x8xf32>
    tpu.vector_store %arg4[%c0_16, %c0_17, %c3_18, %c0_19], %13 {strides = array<i32>} : memref<1x4x4x8xf32, #tpu.memory_space<vmem>>, vector<1x4x1x8xf32>,
    %c0_20 = arith.constant 0 : index
    %c1 = arith.constant 1 : index
    %c1_21 = arith.constant 1 : index
    %c0_22 = arith.constant 0 : index
    %18 = vector.load %arg4[%c0_20, %c1, %c1_21, %c0_22] : memref<1x4x4x8xf32, #tpu.memory_space<vmem>>, vector<1x2x2x8xf32>
    tpu.vector_store %arg4[%c0_20, %c1, %c1_21, %c0_22], %11 {strides = array<i32>} : memref<1x4x4x8xf32, #tpu.memory_space<vmem>>, vector<1x2x2x8xf32>,
    %c0_23 = arith.constant 0 : index
    %c0_24 = arith.constant 0 : index
    %c0_25 = arith.constant 0 : index
    %c0_26 = arith.constant 0 : index
    %19 = vector.load %arg4[%c0_23, %c0_24, %c0_25, %c0_26] : memref<1x4x4x8xf32, #tpu.memory_space<vmem>>, vector<1x2x2x8xf32>
    %c0_27 = arith.constant 0 : index
    %c0_28 = arith.constant 0 : index
    %c1_29 = arith.constant 1 : index
    %c0_30 = arith.constant 0 : index
    %20 = vector.load %arg4[%c0_27, %c0_28, %c1_29, %c0_30] : memref<1x4x4x8xf32, #tpu.memory_space<vmem>>, vector<1x2x2x8xf32>
    %c0_31 = arith.constant 0 : index
    %c0_32 = arith.constant 0 : index
    %c2 = arith.constant 2 : index
    %c0_33 = arith.constant 0 : index
    %21 = vector.load %arg4[%c0_31, %c0_32, %c2, %c0_33] : memref<1x4x4x8xf32, #tpu.memory_space<vmem>>, vector<1x2x2x8xf32>
    %c0_34 = arith.constant 0 : index
    %c1_35 = arith.constant 1 : index
    %c0_36 = arith.constant 0 : index
    %c0_37 = arith.constant 0 : index
    %22 = vector.load %arg4[%c0_34, %c1_35, %c0_36, %c0_37] : memref<1x4x4x8xf32, #tpu.memory_space<vmem>>, vector<1x2x2x8xf32>
    %c0_38 = arith.constant 0 : index
    %c1_39 = arith.constant 1 : index
    %c1_40 = arith.constant 1 : index
    %c0_41 = arith.constant 0 : index
    %23 = vector.load %arg4[%c0_38, %c1_39, %c1_40, %c0_41] : memref<1x4x4x8xf32, #tpu.memory_space<vmem>>, vector<1x2x2x8xf32>
    %c0_42 = arith.constant 0 : index
    %c1_43 = arith.constant 1 : index
    %c2_44 = arith.constant 2 : index
    %c0_45 = arith.constant 0 : index
    %24 = vector.load %arg4[%c0_42, %c1_43, %c2_44, %c0_45] : memref<1x4x4x8xf32, #tpu.memory_space<vmem>>, vector<1x2x2x8xf32>
    %c0_46 = arith.constant 0 : index
    %c2_47 = arith.constant 2 : index
    %c0_48 = arith.constant 0 : index
    %c0_49 = arith.constant 0 : index
    %25 = vector.load %arg4[%c0_46, %c2_47, %c0_48, %c0_49] : memref<1x4x4x8xf32, #tpu.memory_space<vmem>>, vector<1x2x2x8xf32>
    %c0_50 = arith.constant 0 : index
    %c2_51 = arith.constant 2 : index
    %c1_52 = arith.constant 1 : index
    %c0_53 = arith.constant 0 : index
    %26 = vector.load %arg4[%c0_50, %c2_51, %c1_52, %c0_53] : memref<1x4x4x8xf32, #tpu.memory_space<vmem>>, vector<1x2x2x8xf32>
    %c0_54 = arith.constant 0 : index
    %c2_55 = arith.constant 2 : index
    %c2_56 = arith.constant 2 : index
    %c0_57 = arith.constant 0 : index
    %27 = vector.load %arg4[%c0_54, %c2_55, %c2_56, %c0_57] : memref<1x4x4x8xf32, #tpu.memory_space<vmem>>, vector<1x2x2x8xf32>
    %28 = tpu.concatenate %19, %20, %21, %22, %23, %24, %25, %26, %27 in 3 : vector<1x2x2x8xf32>, vector<1x2x2x8xf32>, vector<1x2x2x8xf32>, vector<1x2x2x8xf32>, vector<1x2x2x8xf32>, vector<1x2x2x8xf32>, vector<1x2x2x8xf32>, vector<1x2x2x8xf32>, vector<1x2x2x8xf32> -> vector<1x2x2x72xf32>
    %29 = vector.shape_cast %28 : vector<1x2x2x72xf32> to vector<4x72xf32>
    %cst_58 = arith.constant dense<0.000000e+00> : vector<4x32xf32>
    %30 = tpu.matmul %29, %2, %cst_58 {dimension_numbers = #tpu.dot_dimension_numbers<[1], [0], [0], [1], [0, 0, 1, 1], [], []>} : vector<4x72xf32>, vector<72x32xf32>, vector<4x32xf32> -> vector<4x32xf32>
    %31 = arith.mulf %30, %30 : vector<4x32xf32>
    %cst_59 = arith.constant dense<0.000000e+00> : vector<4xf32>
    %32 = vector.multi_reduction <add>, %31, %cst_59 [1] : vector<4x32xf32> to vector<4xf32>
    %33 = vector.shape_cast %32 : vector<4xf32> to vector<4x1xf32>
    %34 = math.sqrt %33 : vector<4x1xf32>
    %cst_60 = arith.constant 9.99999993E-9 : f32
    %35 = vector.broadcast %cst_60 : f32 to vector<4x1xf32>
    %36 = arith.addf %34, %35 : vector<4x1xf32>
    %cst_61 = arith.constant 5.65685415 : f32
    %37 = vector.broadcast %cst_61 : f32 to vector<4x1xf32>
    %38 = arith.divf %37, %36 : vector<4x1xf32>
    %39 = vector.broadcast %38 : vector<4x1xf32> to vector<4x32xf32>
    %40 = arith.mulf %30, %39 : vector<4x32xf32>
    %cst_62 = arith.constant 2.000000e-01 : f32
    %41 = vector.broadcast %cst_62 : f32 to vector<4x32xf32>
    %42 = arith.mulf %41, %40 : vector<4x32xf32>
    %43 = arith.maximumf %40, %42 : vector<4x32xf32>
    %c72 = arith.constant 72 : index
    %c0_63 = arith.constant 0 : index
    %44 = vector.load %arg2[%c72, %c0_63] : memref<584x128xf32, #tpu.memory_space<vmem>>, vector<288x16xf32>
    %45 = vector.shape_cast %43 : vector<4x32xf32> to vector<1x2x2x32xf32>
    %46 = vector.shape_cast %45 : vector<1x2x2x32xf32> to vector<1x2x1x2x32xf32>
    %47 = vector.shape_cast %46 : vector<1x2x1x2x32xf32> to vector<1x2x1x2x32xf32>
    %48 = vector.broadcast %47 : vector<1x2x1x2x32xf32> to vector<1x2x2x2x32xf32>
    %49 = vector.shape_cast %48 : vector<1x2x2x2x32xf32> to vector<1x4x2x32xf32>
    %50 = vector.shape_cast %49 : vector<1x4x2x32xf32> to vector<1x4x2x1x32xf32>
    %51 = vector.shape_cast %50 : vector<1x4x2x1x32xf32> to vector<1x4x2x1x32xf32>
    %52 = vector.broadcast %51 : vector<1x4x2x1x32xf32> to vector<1x4x2x2x32xf32>
    %53 = vector.shape_cast %52 : vector<1x4x2x2x32xf32> to vector<1x4x4x32xf32>
    %cst_64 = arith.constant 0.000000e+00 : f32
    %54 = vector.broadcast %cst_64 : f32 to vector<1x1x6x32xf32>
    %cst_65 = arith.constant 0.000000e+00 : f32
    %55 = vector.broadcast %cst_65 : f32 to vector<1x6x1x32xf32>
    %c0_66 = arith.constant 0 : index
    %c0_67 = arith.constant 0 : index
    %c0_68 = arith.constant 0 : index
    %c0_69 = arith.constant 0 : index
    %56 = vector.load %arg5[%c0_66, %c0_67, %c0_68, %c0_69] : memref<1x6x6x32xf32, #tpu.memory_space<vmem>>, vector<1x1x6x32xf32>
    tpu.vector_store %arg5[%c0_66, %c0_67, %c0_68, %c0_69], %54 {strides = array<i32>} : memref<1x6x6x32xf32, #tpu.memory_space<vmem>>, vector<1x1x6x32xf32>,
    %c0_70 = arith.constant 0 : index
    %c5 = arith.constant 5 : index
    %c0_71 = arith.constant 0 : index
    %c0_72 = arith.constant 0 : index
    %57 = vector.load %arg5[%c0_70, %c5, %c0_71, %c0_72] : memref<1x6x6x32xf32, #tpu.memory_space<vmem>>, vector<1x1x6x32xf32>
    tpu.vector_store %arg5[%c0_70, %c5, %c0_71, %c0_72], %54 {strides = array<i32>} : memref<1x6x6x32xf32, #tpu.memory_space<vmem>>, vector<1x1x6x32xf32>,
    %c0_73 = arith.constant 0 : index
    %c0_74 = arith.constant 0 : index
    %c0_75 = arith.constant 0 : index
    %c0_76 = arith.constant 0 : index
    %58 = vector.load %arg5[%c0_73, %c0_74, %c0_75, %c0_76] : memref<1x6x6x32xf32, #tpu.memory_space<vmem>>, vector<1x6x1x32xf32>
    tpu.vector_store %arg5[%c0_73, %c0_74, %c0_75, %c0_76], %55 {strides = array<i32>} : memref<1x6x6x32xf32, #tpu.memory_space<vmem>>, vector<1x6x1x32xf32>,
    %c0_77 = arith.constant 0 : index
    %c0_78 = arith.constant 0 : index
    %c5_79 = arith.constant 5 : index
    %c0_80 = arith.constant 0 : index
    %59 = vector.load %arg5[%c0_77, %c0_78, %c5_79, %c0_80] : memref<1x6x6x32xf32, #tpu.memory_space<vmem>>, vector<1x6x1x32xf32>
    tpu.vector_store %arg5[%c0_77, %c0_78, %c5_79, %c0_80], %55 {strides = array<i32>} : memref<1x6x6x32xf32, #tpu.memory_space<vmem>>, vector<1x6x1x32xf32>,
    %c0_81 = arith.constant 0 : index
    %c1_82 = arith.constant 1 : index
    %c1_83 = arith.constant 1 : index
    %c0_84 = arith.constant 0 : index
    %60 = vector.load %arg5[%c0_81, %c1_82, %c1_83, %c0_84] : memref<1x6x6x32xf32, #tpu.memory_space<vmem>>, vector<1x4x4x32xf32>
    tpu.vector_store %arg5[%c0_81, %c1_82, %c1_83, %c0_84], %53 {strides = array<i32>} : memref<1x6x6x32xf32, #tpu.memory_space<vmem>>, vector<1x4x4x32xf32>,
    %c0_85 = arith.constant 0 : index
    %c0_86 = arith.constant 0 : index
    %c0_87 = arith.constant 0 : index
    %c0_88 = arith.constant 0 : index
    %61 = vector.load %arg5[%c0_85, %c0_86, %c0_87, %c0_88] : memref<1x6x6x32xf32, #tpu.memory_space<vmem>>, vector<1x4x4x32xf32>
    %c0_89 = arith.constant 0 : index
    %c0_90 = arith.constant 0 : index
    %c1_91 = arith.constant 1 : index
    %c0_92 = arith.constant 0 : index
    %62 = vector.load %arg5[%c0_89, %c0_90, %c1_91, %c0_92] : memref<1x6x6x32xf32, #tpu.memory_space<vmem>>, vector<1x4x4x32xf32>
    %c0_93 = arith.constant 0 : index
    %c0_94 = arith.constant 0 : index
    %c2_95 = arith.constant 2 : index
    %c0_96 = arith.constant 0 : index
    %63 = vector.load %arg5[%c0_93, %c0_94, %c2_95, %c0_96] : memref<1x6x6x32xf32, #tpu.memory_space<vmem>>, vector<1x4x4x32xf32>
    %c0_97 = arith.constant 0 : index
    %c1_98 = arith.constant 1 : index
    %c0_99 = arith.constant 0 : index
    %c0_100 = arith.constant 0 : index
    %64 = vector.load %arg5[%c0_97, %c1_98, %c0_99, %c0_100] : memref<1x6x6x32xf32, #tpu.memory_space<vmem>>, vector<1x4x4x32xf32>
    %c0_101 = arith.constant 0 : index
    %c1_102 = arith.constant 1 : index
    %c1_103 = arith.constant 1 : index
    %c0_104 = arith.constant 0 : index
    %65 = vector.load %arg5[%c0_101, %c1_102, %c1_103, %c0_104] : memref<1x6x6x32xf32, #tpu.memory_space<vmem>>, vector<1x4x4x32xf32>
    %c0_105 = arith.constant 0 : index
    %c1_106 = arith.constant 1 : index
    %c2_107 = arith.constant 2 : index
    %c0_108 = arith.constant 0 : index
    %66 = vector.load %arg5[%c0_105, %c1_106, %c2_107, %c0_108] : memref<1x6x6x32xf32, #tpu.memory_space<vmem>>, vector<1x4x4x32xf32>
    %c0_109 = arith.constant 0 : index
    %c2_110 = arith.constant 2 : index
    %c0_111 = arith.constant 0 : index
    %c0_112 = arith.constant 0 : index
    %67 = vector.load %arg5[%c0_109, %c2_110, %c0_111, %c0_112] : memref<1x6x6x32xf32, #tpu.memory_space<vmem>>, vector<1x4x4x32xf32>
    %c0_113 = arith.constant 0 : index
    %c2_114 = arith.constant 2 : index
    %c1_115 = arith.constant 1 : index
    %c0_116 = arith.constant 0 : index
    %68 = vector.load %arg5[%c0_113, %c2_114, %c1_115, %c0_116] : memref<1x6x6x32xf32, #tpu.memory_space<vmem>>, vector<1x4x4x32xf32>
    %c0_117 = arith.constant 0 : index
    %c2_118 = arith.constant 2 : index
    %c2_119 = arith.constant 2 : index
    %c0_120 = arith.constant 0 : index
    %69 = vector.load %arg5[%c0_117, %c2_118, %c2_119, %c0_120] : memref<1x6x6x32xf32, #tpu.memory_space<vmem>>, vector<1x4x4x32xf32>
    %70 = tpu.concatenate %61, %62, %63, %64, %65, %66, %67, %68, %69 in 3 : vector<1x4x4x32xf32>, vector<1x4x4x32xf32>, vector<1x4x4x32xf32>, vector<1x4x4x32xf32>, vector<1x4x4x32xf32>, vector<1x4x4x32xf32>, vector<1x4x4x32xf32>, vector<1x4x4x32xf32>, vector<1x4x4x32xf32> -> vector<1x4x4x288xf32>
    %71 = vector.shape_cast %70 : vector<1x4x4x288xf32> to vector<16x288xf32>
    %cst_121 = arith.constant dense<0.000000e+00> : vector<16x16xf32>
    %72 = tpu.matmul %71, %44, %cst_121 {dimension_numbers = #tpu.dot_dimension_numbers<[1], [0], [0], [1], [0, 0, 1, 1], [], []>} : vector<16x288xf32>, vector<288x16xf32>, vector<16x16xf32> -> vector<16x16xf32>
    %73 = arith.mulf %72, %72 : vector<16x16xf32>
    %cst_122 = arith.constant dense<0.000000e+00> : vector<16xf32>
    %74 = vector.multi_reduction <add>, %73, %cst_122 [1] : vector<16x16xf32> to vector<16xf32>
    %75 = vector.shape_cast %74 : vector<16xf32> to vector<16x1xf32>
    %76 = math.sqrt %75 : vector<16x1xf32>
    %cst_123 = arith.constant 9.99999993E-9 : f32
    %77 = vector.broadcast %cst_123 : f32 to vector<16x1xf32>
    %78 = arith.addf %76, %77 : vector<16x1xf32>
    %cst_124 = arith.constant 4.000000e+00 : f32
    %79 = vector.broadcast %cst_124 : f32 to vector<16x1xf32>
    %80 = arith.divf %79, %78 : vector<16x1xf32>
    %81 = vector.broadcast %80 : vector<16x1xf32> to vector<16x16xf32>
    %82 = arith.mulf %72, %81 : vector<16x16xf32>
    %cst_125 = arith.constant 2.000000e-01 : f32
    %83 = vector.broadcast %cst_125 : f32 to vector<16x16xf32>
    %84 = arith.mulf %83, %82 : vector<16x16xf32>
    %85 = arith.maximumf %82, %84 : vector<16x16xf32>
    %c360 = arith.constant 360 : index
    %c0_126 = arith.constant 0 : index
    %86 = vector.load %arg2[%c360, %c0_126] : memref<584x128xf32, #tpu.memory_space<vmem>>, vector<144x8xf32>
    %87 = vector.shape_cast %85 : vector<16x16xf32> to vector<1x4x4x16xf32>
    %88 = vector.shape_cast %87 : vector<1x4x4x16xf32> to vector<1x4x1x4x16xf32>
    %89 = vector.shape_cast %88 : vector<1x4x1x4x16xf32> to vector<1x4x1x4x16xf32>
    %90 = vector.broadcast %89 : vector<1x4x1x4x16xf32> to vector<1x4x2x4x16xf32>
    %91 = vector.shape_cast %90 : vector<1x4x2x4x16xf32> to vector<1x8x4x16xf32>
    %92 = vector.shape_cast %91 : vector<1x8x4x16xf32> to vector<1x8x4x1x16xf32>
    %93 = vector.shape_cast %92 : vector<1x8x4x1x16xf32> to vector<1x8x4x1x16xf32>
    %94 = vector.broadcast %93 : vector<1x8x4x1x16xf32> to vector<1x8x4x2x16xf32>
    %95 = vector.shape_cast %94 : vector<1x8x4x2x16xf32> to vector<1x8x8x16xf32>
    %cst_127 = arith.constant 0.000000e+00 : f32
    %96 = vector.broadcast %cst_127 : f32 to vector<1x1x10x16xf32>
    %cst_128 = arith.constant 0.000000e+00 : f32
    %97 = vector.broadcast %cst_128 : f32 to vector<1x10x1x16xf32>
    %c0_129 = arith.constant 0 : index
    %c0_130 = arith.constant 0 : index
    %c0_131 = arith.constant 0 : index
    %c0_132 = arith.constant 0 : index
    %98 = vector.load %arg6[%c0_129, %c0_130, %c0_131, %c0_132] : memref<1x10x10x16xf32, #tpu.memory_space<vmem>>, vector<1x1x10x16xf32>
    tpu.vector_store %arg6[%c0_129, %c0_130, %c0_131, %c0_132], %96 {strides = array<i32>} : memref<1x10x10x16xf32, #tpu.memory_space<vmem>>, vector<1x1x10x16xf32>,
    %c0_133 = arith.constant 0 : index
    %c9 = arith.constant 9 : index
    %c0_134 = arith.constant 0 : index
    %c0_135 = arith.constant 0 : index
    %99 = vector.load %arg6[%c0_133, %c9, %c0_134, %c0_135] : memref<1x10x10x16xf32, #tpu.memory_space<vmem>>, vector<1x1x10x16xf32>
    tpu.vector_store %arg6[%c0_133, %c9, %c0_134, %c0_135], %96 {strides = array<i32>} : memref<1x10x10x16xf32, #tpu.memory_space<vmem>>, vector<1x1x10x16xf32>,
    %c0_136 = arith.constant 0 : index
    %c0_137 = arith.constant 0 : index
    %c0_138 = arith.constant 0 : index
    %c0_139 = arith.constant 0 : index
    %100 = vector.load %arg6[%c0_136, %c0_137, %c0_138, %c0_139] : memref<1x10x10x16xf32, #tpu.memory_space<vmem>>, vector<1x10x1x16xf32>
    tpu.vector_store %arg6[%c0_136, %c0_137, %c0_138, %c0_139], %97 {strides = array<i32>} : memref<1x10x10x16xf32, #tpu.memory_space<vmem>>, vector<1x10x1x16xf32>,
    %c0_140 = arith.constant 0 : index
    %c0_141 = arith.constant 0 : index
    %c9_142 = arith.constant 9 : index
    %c0_143 = arith.constant 0 : index
    %101 = vector.load %arg6[%c0_140, %c0_141, %c9_142, %c0_143] : memref<1x10x10x16xf32, #tpu.memory_space<vmem>>, vector<1x10x1x16xf32>
    tpu.vector_store %arg6[%c0_140, %c0_141, %c9_142, %c0_143], %97 {strides = array<i32>} : memref<1x10x10x16xf32, #tpu.memory_space<vmem>>, vector<1x10x1x16xf32>,
    %c0_144 = arith.constant 0 : index
    %c1_145 = arith.constant 1 : index
    %c1_146 = arith.constant 1 : index
    %c0_147 = arith.constant 0 : index
    %102 = vector.load %arg6[%c0_144, %c1_145, %c1_146, %c0_147] : memref<1x10x10x16xf32, #tpu.memory_space<vmem>>, vector<1x8x8x16xf32>
    tpu.vector_store %arg6[%c0_144, %c1_145, %c1_146, %c0_147], %95 {strides = array<i32>} : memref<1x10x10x16xf32, #tpu.memory_space<vmem>>, vector<1x8x8x16xf32>,
    %c0_148 = arith.constant 0 : index
    %c0_149 = arith.constant 0 : index
    %c0_150 = arith.constant 0 : index
    %c0_151 = arith.constant 0 : index
    %103 = vector.load %arg6[%c0_148, %c0_149, %c0_150, %c0_151] : memref<1x10x10x16xf32, #tpu.memory_space<vmem>>, vector<1x8x8x16xf32>
    %c0_152 = arith.constant 0 : index
    %c0_153 = arith.constant 0 : index
    %c1_154 = arith.constant 1 : index
    %c0_155 = arith.constant 0 : index
    %104 = vector.load %arg6[%c0_152, %c0_153, %c1_154, %c0_155] : memref<1x10x10x16xf32, #tpu.memory_space<vmem>>, vector<1x8x8x16xf32>
    %c0_156 = arith.constant 0 : index
    %c0_157 = arith.constant 0 : index
    %c2_158 = arith.constant 2 : index
    %c0_159 = arith.constant 0 : index
    %105 = vector.load %arg6[%c0_156, %c0_157, %c2_158, %c0_159] : memref<1x10x10x16xf32, #tpu.memory_space<vmem>>, vector<1x8x8x16xf32>
    %c0_160 = arith.constant 0 : index
    %c1_161 = arith.constant 1 : index
    %c0_162 = arith.constant 0 : index
    %c0_163 = arith.constant 0 : index
    %106 = vector.load %arg6[%c0_160, %c1_161, %c0_162, %c0_163] : memref<1x10x10x16xf32, #tpu.memory_space<vmem>>, vector<1x8x8x16xf32>
    %c0_164 = arith.constant 0 : index
    %c1_165 = arith.constant 1 : index
    %c1_166 = arith.constant 1 : index
    %c0_167 = arith.constant 0 : index
    %107 = vector.load %arg6[%c0_164, %c1_165, %c1_166, %c0_167] : memref<1x10x10x16xf32, #tpu.memory_space<vmem>>, vector<1x8x8x16xf32>
    %c0_168 = arith.constant 0 : index
    %c1_169 = arith.constant 1 : index
    %c2_170 = arith.constant 2 : index
    %c0_171 = arith.constant 0 : index
    %108 = vector.load %arg6[%c0_168, %c1_169, %c2_170, %c0_171] : memref<1x10x10x16xf32, #tpu.memory_space<vmem>>, vector<1x8x8x16xf32>
    %c0_172 = arith.constant 0 : index
    %c2_173 = arith.constant 2 : index
    %c0_174 = arith.constant 0 : index
    %c0_175 = arith.constant 0 : index
    %109 = vector.load %arg6[%c0_172, %c2_173, %c0_174, %c0_175] : memref<1x10x10x16xf32, #tpu.memory_space<vmem>>, vector<1x8x8x16xf32>
    %c0_176 = arith.constant 0 : index
    %c2_177 = arith.constant 2 : index
    %c1_178 = arith.constant 1 : index
    %c0_179 = arith.constant 0 : index
    %110 = vector.load %arg6[%c0_176, %c2_177, %c1_178, %c0_179] : memref<1x10x10x16xf32, #tpu.memory_space<vmem>>, vector<1x8x8x16xf32>
    %c0_180 = arith.constant 0 : index
    %c2_181 = arith.constant 2 : index
    %c2_182 = arith.constant 2 : index
    %c0_183 = arith.constant 0 : index
    %111 = vector.load %arg6[%c0_180, %c2_181, %c2_182, %c0_183] : memref<1x10x10x16xf32, #tpu.memory_space<vmem>>, vector<1x8x8x16xf32>
    %112 = tpu.concatenate %103, %104, %105, %106, %107, %108, %109, %110, %111 in 3 : vector<1x8x8x16xf32>, vector<1x8x8x16xf32>, vector<1x8x8x16xf32>, vector<1x8x8x16xf32>, vector<1x8x8x16xf32>, vector<1x8x8x16xf32>, vector<1x8x8x16xf32>, vector<1x8x8x16xf32>, vector<1x8x8x16xf32> -> vector<1x8x8x144xf32>
    %113 = vector.shape_cast %112 : vector<1x8x8x144xf32> to vector<64x144xf32>
    %cst_184 = arith.constant dense<0.000000e+00> : vector<64x8xf32>
    %114 = tpu.matmul %113, %86, %cst_184 {dimension_numbers = #tpu.dot_dimension_numbers<[1], [0], [0], [1], [0, 0, 1, 1], [], []>} : vector<64x144xf32>, vector<144x8xf32>, vector<64x8xf32> -> vector<64x8xf32>
    %115 = arith.mulf %114, %114 : vector<64x8xf32>
    %cst_185 = arith.constant dense<0.000000e+00> : vector<64xf32>
    %116 = vector.multi_reduction <add>, %115, %cst_185 [1] : vector<64x8xf32> to vector<64xf32>
    %117 = vector.shape_cast %116 : vector<64xf32> to vector<64x1xf32>
    %118 = math.sqrt %117 : vector<64x1xf32>
    %cst_186 = arith.constant 9.99999993E-9 : f32
    %119 = vector.broadcast %cst_186 : f32 to vector<64x1xf32>
    %120 = arith.addf %118, %119 : vector<64x1xf32>
    %cst_187 = arith.constant 2.82842708 : f32
    %121 = vector.broadcast %cst_187 : f32 to vector<64x1xf32>
    %122 = arith.divf %121, %120 : vector<64x1xf32>
    %123 = vector.broadcast %122 : vector<64x1xf32> to vector<64x8xf32>
    %124 = arith.mulf %114, %123 : vector<64x8xf32>
    %cst_188 = arith.constant 2.000000e-01 : f32
    %125 = vector.broadcast %cst_188 : f32 to vector<64x8xf32>
    %126 = arith.mulf %125, %124 : vector<64x8xf32>
    %127 = arith.maximumf %124, %126 : vector<64x8xf32>
    %c504 = arith.constant 504 : index
    %c0_189 = arith.constant 0 : index
    %128 = vector.load %arg2[%c504, %c0_189] : memref<584x128xf32, #tpu.memory_space<vmem>>, vector<72x4xf32>
    %129 = vector.shape_cast %127 : vector<64x8xf32> to vector<1x8x8x8xf32>
    %130 = vector.shape_cast %129 : vector<1x8x8x8xf32> to vector<1x8x1x8x8xf32>
    %131 = vector.shape_cast %130 : vector<1x8x1x8x8xf32> to vector<1x8x1x8x8xf32>
    %132 = vector.broadcast %131 : vector<1x8x1x8x8xf32> to vector<1x8x2x8x8xf32>
    %133 = vector.shape_cast %132 : vector<1x8x2x8x8xf32> to vector<1x16x8x8xf32>
    %134 = vector.shape_cast %133 : vector<1x16x8x8xf32> to vector<1x16x8x1x8xf32>
    %135 = vector.shape_cast %134 : vector<1x16x8x1x8xf32> to vector<1x16x8x1x8xf32>
    %136 = vector.broadcast %135 : vector<1x16x8x1x8xf32> to vector<1x16x8x2x8xf32>
    %137 = vector.shape_cast %136 : vector<1x16x8x2x8xf32> to vector<1x16x16x8xf32>
    %cst_190 = arith.constant 0.000000e+00 : f32
    %138 = vector.broadcast %cst_190 : f32 to vector<1x1x18x8xf32>
    %cst_191 = arith.constant 0.000000e+00 : f32
    %139 = vector.broadcast %cst_191 : f32 to vector<1x18x1x8xf32>
    %c0_192 = arith.constant 0 : index
    %c0_193 = arith.constant 0 : index
    %c0_194 = arith.constant 0 : index
    %c0_195 = arith.constant 0 : index
    %140 = vector.load %arg7[%c0_192, %c0_193, %c0_194, %c0_195] : memref<1x18x18x8xf32, #tpu.memory_space<vmem>>, vector<1x1x18x8xf32>
    tpu.vector_store %arg7[%c0_192, %c0_193, %c0_194, %c0_195], %138 {strides = array<i32>} : memref<1x18x18x8xf32, #tpu.memory_space<vmem>>, vector<1x1x18x8xf32>,
    %c0_196 = arith.constant 0 : index
    %c17 = arith.constant 17 : index
    %c0_197 = arith.constant 0 : index
    %c0_198 = arith.constant 0 : index
    %141 = vector.load %arg7[%c0_196, %c17, %c0_197, %c0_198] : memref<1x18x18x8xf32, #tpu.memory_space<vmem>>, vector<1x1x18x8xf32>
    tpu.vector_store %arg7[%c0_196, %c17, %c0_197, %c0_198], %138 {strides = array<i32>} : memref<1x18x18x8xf32, #tpu.memory_space<vmem>>, vector<1x1x18x8xf32>,
    %c0_199 = arith.constant 0 : index
    %c0_200 = arith.constant 0 : index
    %c0_201 = arith.constant 0 : index
    %c0_202 = arith.constant 0 : index
    %142 = vector.load %arg7[%c0_199, %c0_200, %c0_201, %c0_202] : memref<1x18x18x8xf32, #tpu.memory_space<vmem>>, vector<1x18x1x8xf32>
    tpu.vector_store %arg7[%c0_199, %c0_200, %c0_201, %c0_202], %139 {strides = array<i32>} : memref<1x18x18x8xf32, #tpu.memory_space<vmem>>, vector<1x18x1x8xf32>,
    %c0_203 = arith.constant 0 : index
    %c0_204 = arith.constant 0 : index
    %c17_205 = arith.constant 17 : index
    %c0_206 = arith.constant 0 : index
    %143 = vector.load %arg7[%c0_203, %c0_204, %c17_205, %c0_206] : memref<1x18x18x8xf32, #tpu.memory_space<vmem>>, vector<1x18x1x8xf32>
    tpu.vector_store %arg7[%c0_203, %c0_204, %c17_205, %c0_206], %139 {strides = array<i32>} : memref<1x18x18x8xf32, #tpu.memory_space<vmem>>, vector<1x18x1x8xf32>,
    %c0_207 = arith.constant 0 : index
    %c1_208 = arith.constant 1 : index
    %c1_209 = arith.constant 1 : index
    %c0_210 = arith.constant 0 : index
    %144 = vector.load %arg7[%c0_207, %c1_208, %c1_209, %c0_210] : memref<1x18x18x8xf32, #tpu.memory_space<vmem>>, vector<1x16x16x8xf32>
    tpu.vector_store %arg7[%c0_207, %c1_208, %c1_209, %c0_210], %137 {strides = array<i32>} : memref<1x18x18x8xf32, #tpu.memory_space<vmem>>, vector<1x16x16x8xf32>,
    %c0_211 = arith.constant 0 : index
    %c0_212 = arith.constant 0 : index
    %c0_213 = arith.constant 0 : index
    %c0_214 = arith.constant 0 : index
    %145 = vector.load %arg7[%c0_211, %c0_212, %c0_213, %c0_214] : memref<1x18x18x8xf32, #tpu.memory_space<vmem>>, vector<1x16x16x8xf32>
    %c0_215 = arith.constant 0 : index
    %c0_216 = arith.constant 0 : index
    %c1_217 = arith.constant 1 : index
    %c0_218 = arith.constant 0 : index
    %146 = vector.load %arg7[%c0_215, %c0_216, %c1_217, %c0_218] : memref<1x18x18x8xf32, #tpu.memory_space<vmem>>, vector<1x16x16x8xf32>
    %c0_219 = arith.constant 0 : index
    %c0_220 = arith.constant 0 : index
    %c2_221 = arith.constant 2 : index
    %c0_222 = arith.constant 0 : index
    %147 = vector.load %arg7[%c0_219, %c0_220, %c2_221, %c0_222] : memref<1x18x18x8xf32, #tpu.memory_space<vmem>>, vector<1x16x16x8xf32>
    %c0_223 = arith.constant 0 : index
    %c1_224 = arith.constant 1 : index
    %c0_225 = arith.constant 0 : index
    %c0_226 = arith.constant 0 : index
    %148 = vector.load %arg7[%c0_223, %c1_224, %c0_225, %c0_226] : memref<1x18x18x8xf32, #tpu.memory_space<vmem>>, vector<1x16x16x8xf32>
    %c0_227 = arith.constant 0 : index
    %c1_228 = arith.constant 1 : index
    %c1_229 = arith.constant 1 : index
    %c0_230 = arith.constant 0 : index
    %149 = vector.load %arg7[%c0_227, %c1_228, %c1_229, %c0_230] : memref<1x18x18x8xf32, #tpu.memory_space<vmem>>, vector<1x16x16x8xf32>
    %c0_231 = arith.constant 0 : index
    %c1_232 = arith.constant 1 : index
    %c2_233 = arith.constant 2 : index
    %c0_234 = arith.constant 0 : index
    %150 = vector.load %arg7[%c0_231, %c1_232, %c2_233, %c0_234] : memref<1x18x18x8xf32, #tpu.memory_space<vmem>>, vector<1x16x16x8xf32>
    %c0_235 = arith.constant 0 : index
    %c2_236 = arith.constant 2 : index
    %c0_237 = arith.constant 0 : index
    %c0_238 = arith.constant 0 : index
    %151 = vector.load %arg7[%c0_235, %c2_236, %c0_237, %c0_238] : memref<1x18x18x8xf32, #tpu.memory_space<vmem>>, vector<1x16x16x8xf32>
    %c0_239 = arith.constant 0 : index
    %c2_240 = arith.constant 2 : index
    %c1_241 = arith.constant 1 : index
    %c0_242 = arith.constant 0 : index
    %152 = vector.load %arg7[%c0_239, %c2_240, %c1_241, %c0_242] : memref<1x18x18x8xf32, #tpu.memory_space<vmem>>, vector<1x16x16x8xf32>
    %c0_243 = arith.constant 0 : index
    %c2_244 = arith.constant 2 : index
    %c2_245 = arith.constant 2 : index
    %c0_246 = arith.constant 0 : index
    %153 = vector.load %arg7[%c0_243, %c2_244, %c2_245, %c0_246] : memref<1x18x18x8xf32, #tpu.memory_space<vmem>>, vector<1x16x16x8xf32>
    %154 = tpu.concatenate %145, %146, %147, %148, %149, %150, %151, %152, %153 in 3 : vector<1x16x16x8xf32>, vector<1x16x16x8xf32>, vector<1x16x16x8xf32>, vector<1x16x16x8xf32>, vector<1x16x16x8xf32>, vector<1x16x16x8xf32>, vector<1x16x16x8xf32>, vector<1x16x16x8xf32>, vector<1x16x16x8xf32> -> vector<1x16x16x72xf32>
    %155 = vector.shape_cast %154 : vector<1x16x16x72xf32> to vector<256x72xf32>
    %cst_247 = arith.constant dense<0.000000e+00> : vector<256x4xf32>
    %156 = tpu.matmul %155, %128, %cst_247 {dimension_numbers = #tpu.dot_dimension_numbers<[1], [0], [0], [1], [0, 0, 1, 1], [], []>} : vector<256x72xf32>, vector<72x4xf32>, vector<256x4xf32> -> vector<256x4xf32>
    %157 = arith.mulf %156, %156 : vector<256x4xf32>
    %cst_248 = arith.constant dense<0.000000e+00> : vector<256xf32>
    %158 = vector.multi_reduction <add>, %157, %cst_248 [1] : vector<256x4xf32> to vector<256xf32>
    %159 = vector.shape_cast %158 : vector<256xf32> to vector<256x1xf32>
    %160 = math.sqrt %159 : vector<256x1xf32>
    %cst_249 = arith.constant 9.99999993E-9 : f32
    %161 = vector.broadcast %cst_249 : f32 to vector<256x1xf32>
    %162 = arith.addf %160, %161 : vector<256x1xf32>
    %cst_250 = arith.constant 2.000000e+00 : f32
    %163 = vector.broadcast %cst_250 : f32 to vector<256x1xf32>
    %164 = arith.divf %163, %162 : vector<256x1xf32>
    %165 = vector.broadcast %164 : vector<256x1xf32> to vector<256x4xf32>
    %166 = arith.mulf %156, %165 : vector<256x4xf32>
    %cst_251 = arith.constant 2.000000e-01 : f32
    %167 = vector.broadcast %cst_251 : f32 to vector<256x4xf32>
    %168 = arith.mulf %167, %166 : vector<256x4xf32>
    %169 = arith.maximumf %166, %168 : vector<256x4xf32>
    %c576 = arith.constant 576 : index
    %c0_252 = arith.constant 0 : index
    %170 = vector.load %arg2[%c576, %c0_252] : memref<584x128xf32, #tpu.memory_space<vmem>>, vector<3x4xf32>
    %171 = tpu.transpose %169, [1, 0] : vector<256x4xf32> -> vector<4x256xf32>
    %cst_253 = arith.constant dense<0.000000e+00> : vector<3x256xf32>
    %172 = tpu.matmul %170, %171, %cst_253 {dimension_numbers = #tpu.dot_dimension_numbers<[1], [0], [0], [1], [0, 0, 1, 1], [], []>} : vector<3x4xf32>, vector<4x256xf32>, vector<3x256xf32> -> vector<3x256xf32>
    %173 = arith.mulf %172, %172 : vector<3x256xf32>
    %cst_254 = arith.constant dense<0.000000e+00> : vector<256xf32>
    %174 = vector.multi_reduction <add>, %173, %cst_254 [0] : vector<3x256xf32> to vector<256xf32>
    %175 = vector.shape_cast %174 : vector<256xf32> to vector<1x256xf32>
    %176 = math.sqrt %175 : vector<1x256xf32>
    %cst_255 = arith.constant 9.99999993E-9 : f32
    %177 = vector.broadcast %cst_255 : f32 to vector<1x256xf32>
    %178 = arith.addf %176, %177 : vector<1x256xf32>
    %cst_256 = arith.constant 1.73205078 : f32
    %179 = vector.broadcast %cst_256 : f32 to vector<1x256xf32>
    %180 = arith.divf %179, %178 : vector<1x256xf32>
    %181 = vector.broadcast %180 : vector<1x256xf32> to vector<3x256xf32>
    %182 = arith.mulf %172, %181 : vector<3x256xf32>
    %183 = math.tanh %182 : vector<3x256xf32>
    %184 = vector.shape_cast %183 : vector<3x256xf32> to vector<1x3x256xf32>
    %c0_257 = arith.constant 0 : index
    %c0_258 = arith.constant 0 : index
    %c0_259 = arith.constant 0 : index
    %185 = vector.load %arg3[%c0_257, %c0_258, %c0_259] : memref<1x3x256xf32, #tpu.memory_space<vmem>>, vector<1x3x256xf32>
    tpu.vector_store %arg3[%c0_257, %c0_258, %c0_259], %184 {strides = array<i32>} : memref<1x3x256xf32, #tpu.memory_space<vmem>>, vector<1x3x256xf32>,
    return
  }
  func.func @transform_0(%arg0: i32) -> (i32, i32, i32) {
    %c0_i32 = arith.constant 0 : i32
    %c0_i32_0 = arith.constant 0 : i32
    %c0_i32_1 = arith.constant 0 : i32
    return %arg0, %c0_i32, %c0_i32_0 : i32, i32, i32
  }
  func.func @transform_1(%arg0: i32) -> (i32, i32) {
    %c0_i32 = arith.constant 0 : i32
    %c0_i32_0 = arith.constant 0 : i32
    %c0_i32_1 = arith.constant 0 : i32
    return %c0_i32, %c0_i32_0 : i32, i32
  }
  func.func @transform_2(%arg0: i32) -> (i32, i32, i32) {
    %c0_i32 = arith.constant 0 : i32
    %c0_i32_0 = arith.constant 0 : i32
    %c0_i32_1 = arith.constant 0 : i32
    return %arg0, %c0_i32, %c0_i32_0 : i32, i32, i32
  }
}

</mosaic_0001>

<bundles_post_ra>
// kernel: tpu_custom_call.1
= control target key start
LH: loop header
LB: loop body
LE: loop exit
PB: predicated region body
PF: predicated region fallthrough
CT: control target
= control target key end

     0   :  { %7 = vsyncpa [#allocation7], 0  ;;  %s8952_s0 = inlined_call_operand.hbm [shape: f32[2,1,8], index: 0, kind: input, shape index: {}]   ;;  %s8953_s1 = inlined_call_operand.hbm [shape: f32[584,128], index: 1, kind: input, shape index: {}]   ;;  %s8954_s2 = inlined_call_operand.vmem [shape: f32[2,3,256], index: 2, kind: output, shape index: {}]  }
   0x1   :  { %9 = vsyncpa [#allocation7 + $0x1], 0 }
   0x2   :  { %10 = vsyncpa [#allocation9], 0  ;;  %s6410_s9 = smov 0   ;;  %s6412_s10 = smov 0  }
   0x3   :  { %s6414_s11 = smov 0   ;;  %s6416_s12 = smov 0  }
   0x4 LB: > { %s6429_s13 = sadd.s32 4294967295, %s6374_s12   ;;  %p36_p0 = scmp.ne.s32.totalorder %s6366_s10, %s6362_s9  ;;  %s6374_s12 = sphi %s6416_s12, %s8982_s12   ;;  %s6370_s11 = sphi %s6414_s11, %s8981_s11   ;;  %s6366_s10 = sphi %s6412_s10, %s8980_s10   ;;  %s6362_s9 = sphi %s6410_s9, %s8979_s9  }
   0x5   : > { %p8955_p1 = scmp.eq.s32.totalorder %s6429_s13, 0  ;;  %p5569_p2 = scmp.ge.s32.totalorder %s6374_s12, 1 }
   0x6   : > { %p94_p3 = scmp.lt.s32.totalorder %s6374_s12, 3  ;;  %s6376_s16 = smov [#allocation8]  }
   0x7   : > { %p6437_p4 = por %p8955_p1, %p36_p0  ;;  %s106_s17 = sshll.u32 %s6376_s16, 4  ;;  %s107_s17 = int_to_ptr.vmem [resolvable:$true] %s106_s17 }
   0x8   : > { %p6441_p5 = pnand %p5569_p2, %p94_p3  ;;  %s6454_s19 = sadd.s32 1, %s6374_s12  }
   0x9   : > { %s8961_s14 = scalar_select %p6437_p4, 1, 0 }
   0xa   : > { %s8962_s15 = scalar_select %p6441_p5, 1, 0 }
   0xb   : > { %p5894_p6 = pneg %p6441_p5  ;;  %s23_s20 = sadd.s32 1, %s6370_s11 }
   0xc   : > { %s20_s21 = ssub.s32 %s6374_s12, %s6454_s19  ;;  %s6293_s22 = scalar_lea.vmem %s107_s17, 9344 }
   0xd   : > { %p6449_p7 = pnand %p5894_p6, %p8955_p1  ;;  %p6294_p9 = scmp.ne.s32.totalorder %s107_s17, %s6293_s22 }
   0xe   : > { %p6301_p12 = scmp.lt.s32.totalorder %s107_s17, %s107_s17  ;;  %p6302_p13 = scmp.lt.s32.totalorder %s6293_s22, %s6293_s22 }
   0xf   : > { %p6284_p8 = pneg %p6449_p7 }
  0x10   : > { %p6303_p0 = por %p6302_p13, %p6301_p12 }
  0x11   : > { %p6296_p10 = pnand %p6294_p9, %p6284_p8 }
  0x13   : > { %p6297_p11 = pneg %p6296_p10 }
  0x15   : > { %p6304_p2 = pnand %p6303_p0, %p6297_p11 }
  0x17   : > { %6307 = shalt.err (!%p6304_p2)
}
  0x18   : > { %s6377_s23 = smov 128   ;;  %s6378_s24 = smov 8  }
  0x19   : > { %5897 = dma.hbm_to_vmem [thread:$0]  (!%p6449_p7), %s8953_s1, 9344, %s107_s17, [#allocation9], %s6377_s23, %s6377_s23, %s6378_s24  }
  0x1a   : > { %p21_p3 = scmp.eq.s32.totalorder %s20_s21, 0  ;;  %p30_p6 = scmp.ne.s32.totalorder %s6370_s11, %s6366_s10 }
  0x1b   : > { %p31_p8 = scmp.eq.s32.totalorder %s6374_s12, 0  ;;  %p5903_p9 = scmp.lt.s32.totalorder %s6374_s12, 2 }
  0x1c   : > { %s6471_s27 = scalar_select %p21_p3, %s6370_s11, %s23_s20  }
  0x1d   : > { %p32_p10 = por %p31_p8, %p30_p6  ;;  %s120_s28 = sand.u32 1, %s6370_s11  }
  0x1e   : > { %s5572_s29 = sshll.u32 %s6374_s12, 4  ;;  %s123_s30 = scalar_lea.vmem [#allocation6], %s120_s28 }
  0x1f   : > { %s130_s3 = sshll.u32 %s123_s30, 4  ;;  %s6478_s6 = scalar_lea.hbm %s8952_s0, %s5572_s29  ;;  %s131_s3 = int_to_ptr.vmem [resolvable:$true] %s130_s3 }
  0x20   : > { %p6480_p7 = pnand %p5903_p9, %p32_p10  ;;  %s121_s8 = scalar_lea.sflag [#allocation7], %s120_s28 }
  0x21   : > { %s6308_s9 = scalar_lea.hbm %s6478_s6, 16  ;;  %s6313_s17 = scalar_lea.hbm %s8952_s0, 32 }
  0x22   : > { %p6309_p11 = scmp.ne.s32.totalorder %s6478_s6, %s6308_s9  ;;  %p6310_p12 = pneg %p6480_p7 }
  0x23   : > { %p6314_p2 = scmp.lt.s32.totalorder %s6478_s6, %s8952_s0  ;;  %p6315_p3 = scmp.lt.s32.totalorder %s6313_s17, %s6308_s9 }
  0x24   : > { %p6311_p13 = pnand %p6310_p12, %p6309_p11 }
  0x25   : > { %p6316_p6 = por %p6315_p3, %p6314_p2 }
  0x26   : > { %p6312_p0 = pneg %p6311_p13 }
  0x28   : > { %p6317_p8 = pnand %p6316_p6, %p6312_p0 }
  0x2a   : > { %6320 = shalt.err (!%p6317_p8)
}
  0x2b   : > { %s6321_s21 = scalar_lea.vmem %s131_s3, 16  ;;  %s6379_s22 = smov [#allocation6]  }
  0x2c   : > { %p6322_p9 = scmp.ne.s32.totalorder %s131_s3, %s6321_s21  ;;  %s6326_s23 = sshll.u32 %s6379_s22, 4  ;;  %s6327_s23 = int_to_ptr.vmem [resolvable:$false] %s6326_s23 }
  0x2d   : > { %s6328_s24 = scalar_lea.vmem %s6327_s23, 32  ;;  %p6329_p11 = scmp.lt.s32.totalorder %s131_s3, %s6327_s23 }
  0x2e   : > { %p6324_p10 = pnand %p6322_p9, %p6310_p12  ;;  %p6330_p13 = scmp.lt.s32.totalorder %s6328_s24, %s6321_s21 }
  0x30   : > { %p6325_p1 = pneg %p6324_p10  ;;  %p6331_p4 = por %p6330_p13, %p6329_p11 }
  0x32   : > { %p6332_p5 = pnand %p6331_p4, %p6325_p1 }
  0x34   : > { %6335 = shalt.err (!%p6332_p5)
}
  0x35   : > { %5901 = dma.hbm_to_vmem [thread:$0]  (!%p6480_p7), %s6478_s6, 16, %s131_s3, %s121_s8  }
  0x36   : > { %p8965_p0 = scmp.ne.s32.totalorder %s8962_s15, 0 }
  0x38   : > { %139 = sbr.rel (%p8965_p0) target bundleno = 3074 (0xc02), region = 28 }
  0x3d   : > { %s141_s25 = sand.u32 1, %s6366_s10   ;;  %p8966_p12 = scmp.ne.s32.totalorder %s8961_s14, 0 }
  0x3e   : > { %s142_s26 = scalar_lea.sflag [#allocation7], %s141_s25  ;;  %s6501_s28 = scalar_lea.vmem [#allocation6], %s141_s25 }
  0x3f   : > { %6353 = dma.done.wait (%p8966_p12), %s142_s26, 16  }
  0x40   : > { %6355 = vsyncadd (%p8966_p12), %s142_s26, 4294967280  ;;  %p8967_p1 = scmp.eq.s32.totalorder %s6429_s13, 0 }
  0x42   : > { %6357 = dma.done.wait (%p8967_p1), [#allocation9], 9344   ;;  %p8968_p4 = pmov %p8967_p1 }
  0x43   : > { %vm189_vm0 = vcmask 60416   ;;  %vm193_vm1 = vcmask 57344   ;;  %v6380_v0 = vmov 0.0   ;;  %vm203_vm2 = vcmask 58368   ;;  %v5577_v1 = vld [vmem:[%s6501_s28] ss:$0 sm:$0xff] }
  0x44   : > { %6359 = vsyncadd (%p8968_p4), [#allocation9], 4294957952  ;;  %190 = vst.msk [vmem:[#allocation2] sm:$0xf] %vm189_vm0, %v6380_v0  ;;  %vm289_vm3 = vcmask 64512   ;;  %vm292_vm4 = vcmask 130048   ;;  %5790 = vmatprep.subr.mxu0 %v6380_v0  ;;  %v319_v45 = vlaneseq }
  0x45   : > { %192 = vst.msk [vmem:[#allocation2 + $0xc] sm:$0xf] %vm189_vm0, %v6380_v0  ;;  %s6381_s14 = smov 8   ;;  %s6382_s15 = smov 16   ;;  %v182_v4 = vld [vmem:[#allocation8 + $0x40] sm:$0xff]  ;;  %v181_v9 = vld [vmem:[#allocation8 + $0x38] sm:$0xff] }
  0x46   : > { %195 = vst.msk [vmem:[#allocation2 + $0x4] sm:$0x1] %vm193_vm1, %v6380_v0  ;;  %196 = vst.msk [vmem:[#allocation2 + $0x8] sm:$0x1] %vm193_vm1, %v6380_v0  ;;  %5791 = vmatpush3.msra.mxu0 %v182_v4  ;;  %s6383_s29 = smov 24   ;;  %v180_v10 = vld [vmem:[#allocation8 + $0x30] sm:$0xff] }
  0x47   : > { %199 = vst.msk [vmem:[#allocation2 + $0x7] sm:$0x1] %vm193_vm1, %v6380_v0  ;;  %200 = vst.msk [vmem:[#allocation2 + $0xb] sm:$0x1] %vm193_vm1, %v6380_v0  ;;  %5792 = vmatprep.subr.mxu0 %v6380_v0  ;;  %v179_v13 = vld [vmem:[#allocation8 + $0x28] sm:$0xff]  ;;  %s6384_s30 = smov 32  }
  0x48   : > { %2486 = vst.msk [vmem:[#allocation5 + $0x18] sm:$0x1] %vm193_vm1, %v6380_v0  ;;  %2487 = vst.msk [vmem:[#allocation5 + $0x30] sm:$0x1] %vm193_vm1, %v6380_v0  ;;  %5793 = vmatpush3.msra.mxu0 %v181_v9  ;;  %v178_v16 = vld [vmem:[#allocation8 + $0x20] sm:$0xff]  ;;  %s6385_s3 = smov 40  }
  0x49   : > { %2488 = vst.msk [vmem:[#allocation5 + $0x48] sm:$0x1] %vm193_vm1, %v6380_v0  ;;  %2489 = vst.msk [vmem:[#allocation5 + $0x60] sm:$0x1] %vm193_vm1, %v6380_v0  ;;  %5794 = vmatprep.subr.mxu0 %v6380_v0  ;;  %v177_v17 = vld [vmem:[#allocation8 + $0x18] sm:$0xff]  ;;  %v176_v20 = vld [vmem:[#allocation8 + $0x10] sm:$0xff] }
  0x4a   : > { %2490 = vst.msk [vmem:[#allocation5 + $0x78] sm:$0x1] %vm193_vm1, %v6380_v0  ;;  %2491 = vst.msk [vmem:[#allocation5 + $0x90] sm:$0x1] %vm193_vm1, %v6380_v0  ;;  %5795 = vmatpush3.msra.mxu0 %v180_v10  ;;  %vm6386_vm5 = vmmov 0   ;;  %s6387_s4 = smov 48  }
  0x4b   : > { %2492 = vst.msk [vmem:[#allocation5 + $0xa8] sm:$0x1] %vm193_vm1, %v6380_v0  ;;  %2493 = vst.msk [vmem:[#allocation5 + $0xc0] sm:$0x1] %vm193_vm1, %v6380_v0  ;;  %v208_v2 = vld [vmem:[#allocation2 + $0x1] sm:$0x3]  ;;  %5796 = vmatprep.subr.mxu0 %v6380_v0  ;;  %5808 = vmatprep.mubr.msk.f32.mxu0 %vm6386_vm5, %v6380_v0 }
  0x4c   : > { %2494 = vst.msk [vmem:[#allocation5 + $0xd8] sm:$0x1] %vm193_vm1, %v6380_v0  ;;  %2495 = vst.msk [vmem:[#allocation5 + $0xf0] sm:$0x1] %vm193_vm1, %v6380_v0  ;;  %227 = vrot.lane.b32.xlu0 %v208_v2, %s6381_s14  ;;  %5797 = vmatpush3.msra.mxu0 %v179_v13  ;;  %v222_v21 = vld [vmem:[#allocation2 + $0xd] sm:$0x3] }
  0x4d   : > { %2496 = vst.msk [vmem:[#allocation5 + $0x108] sm:$0x1] %vm193_vm1, %v6380_v0  ;;  %2497 = vst.msk [vmem:[#allocation5 + $0x120] sm:$0x1] %vm193_vm1, %v6380_v0  ;;  %5798 = vmatprep.subr.mxu0 %v6380_v0  ;;  %v175_v23 = vld [vmem:[#allocation8 + $0x8] sm:$0xff]  ;;  %s6388_s5 = smov 56  }
  0x4e   : > { %2498 = vst.msk [vmem:[#allocation5 + $0x138] sm:$0x1] %vm193_vm1, %v6380_v0  ;;  %2499 = vst.msk [vmem:[#allocation5 + $0x150] sm:$0x1] %vm193_vm1, %v6380_v0  ;;  %5799 = vmatpush3.msra.mxu0 %v178_v16  ;;  %v174_v24 = vld [vmem:[#allocation8] sm:$0xff]  ;;  %s6389_s6 = smov 64  }
  0x4f   : > { %2500 = vst.msk [vmem:[#allocation5 + $0x168] sm:$0x1] %vm193_vm1, %v6380_v0  ;;  %2501 = vst.msk [vmem:[#allocation5 + $0x180] sm:$0x1] %vm193_vm1, %v6380_v0  ;;  %5800 = vmatprep.subr.mxu0 %v6380_v0  ;;  %v6390_v43 = vmov 1983009808  }
  0x50   : > { %2504 = vst.msk [vmem:[#allocation5 + $0x29] sm:$0x1] %vm193_vm1, %v6380_v0  ;;  %2505 = vst.msk [vmem:[#allocation5 + $0x41] sm:$0x1] %vm193_vm1, %v6380_v0  ;;  %5801 = vmatpush3.msra.mxu0 %v177_v17  ;;  %v317_v44 = vunpack.c.l.s4 %v6390_v43  ;;  %vm295_vm6 = vcmask 195584   ;;  %vm298_vm7 = vcmask 261120  }
  0x51   : > { %2506 = vst.msk [vmem:[#allocation5 + $0x59] sm:$0x1] %vm193_vm1, %v6380_v0  ;;  %2507 = vst.msk [vmem:[#allocation5 + $0x71] sm:$0x1] %vm193_vm1, %v6380_v0  ;;  %5802 = vmatprep.subr.mxu0 %v6380_v0  ;;  %vm301_vm8 = vcmask 326656   ;;  %vm304_vm9 = vcmask 392192  }
  0x52   : > { %2508 = vst.msk [vmem:[#allocation5 + $0x89] sm:$0x1] %vm193_vm1, %v6380_v0  ;;  %2509 = vst.msk [vmem:[#allocation5 + $0xa1] sm:$0x1] %vm193_vm1, %v6380_v0  ;;  %5803 = vmatpush3.msra.mxu0 %v176_v20  ;;  %v318_v52 = vunpack.c.0.s8 %v317_v44  ;;  %v6652_v53 = vshrl.u32 %v319_v45, 7  ;;  %vm307_vm10 = vcmask 457728  }
  0x53   : > { %2510 = vst.msk [vmem:[#allocation5 + $0xb9] sm:$0x1] %vm193_vm1, %v6380_v0  ;;  %2511 = vst.msk [vmem:[#allocation5 + $0xd1] sm:$0x1] %vm193_vm1, %v6380_v0  ;;  %5804 = vmatprep.subr.mxu0 %v6380_v0  ;;  %vm310_vm11 = vcmask 523264   ;;  %vm323_vm12 = vcmask 588800  }
  0x54   : > { %2512 = vst.msk [vmem:[#allocation5 + $0xe9] sm:$0x1] %vm193_vm1, %v6380_v0  ;;  %2513 = vst.msk [vmem:[#allocation5 + $0x101] sm:$0x1] %vm193_vm1, %v6380_v0  ;;  %5805 = vmatpush3.msra.mxu0 %v175_v23  ;;  %v6663_v63 = vsub.s32 %v318_v52, %v6652_v53  ;;  %vm397_vm13 = vcmask 257024   ;;  %vm491_vm14 = vcmask 259072  }
  0x55   : > { %2514 = vst.msk [vmem:[#allocation5 + $0x119] sm:$0x1] %vm193_vm1, %v6380_v0  ;;  %2515 = vst.msk [vmem:[#allocation5 + $0x131] sm:$0x1] %vm193_vm1, %v6380_v0  ;;  %5806 = vmatprep.subr.mxu0 %v6380_v0  ;;  %vm495_vm15 = vcmask 253952   ;;  %v448_v13 = vld [vmem:[#allocation8 + $0x158] sm:$0xff] }
  0x56   : > { %2516 = vst.msk [vmem:[#allocation5 + $0x149] sm:$0x1] %vm193_vm1, %v6380_v0  ;;  %2517 = vst.msk [vmem:[#allocation5 + $0x161] sm:$0x1] %vm193_vm1, %v6380_v0  ;;  %5807 = vmatpush3.msra.mxu0 %v174_v24  ;;  %v6391_v23 = vmov 1966171168  }
  0x57   : > { %2518 = vst.msk [vmem:[#allocation5 + $0x179] sm:$0x1] %vm193_vm1, %v6380_v0  ;;  %2519 = vst.msk [vmem:[#allocation5 + $0x191] sm:$0x1] %vm193_vm1, %v6380_v0  ;;  %v460_v24 = vunpack.c.l.s4 %v6391_v23  ;;  %v427_v52 = vld [vmem:[#allocation8 + $0xb0] sm:$0xff]  ;;  %s6392_s7 = smov 96  }
  0x58   : > { %198 = vst.msk [vmem:[#allocation2 + $0x3] sm:$0x1] %vm193_vm1, %v6380_v0  ;;  %194 = vst.msk [vmem:[#allocation2] sm:$0x1] %vm193_vm1, %v6380_v0  ;;  %v418_v23 = vld [vmem:[#allocation8 + $0x68] sm:$0xff]  ;;  %vm1086_vm5 = vcmask 123904  }
  0x59   : > { %197 = vst.msk [vmem:[#allocation2 + $0xc] sm:$0x1] %vm193_vm1, %v6380_v0  ;;  %201 = vst.msk [vmem:[#allocation2 + $0xf] sm:$0x1] %vm193_vm1, %v6380_v0  ;;  %s6393_s8 = smov 80   ;;  %s6394_s9 = smov 112  }
  0x5a   : > { %2480 = vst.msk [vmem:[#allocation5 + $0x10] sm:$0x3] %vm203_vm2, %v6380_v0  ;;  %2484 = vst.msk [vmem:[#allocation5 + $0x1a8] sm:$0x3] %vm203_vm2, %v6380_v0  ;;  %p168_p5 = scmp.lt.s32.totalorder %s6429_s13, 1 }
  0x5b   : > { %2478 = vst.msk [vmem:[#allocation5] sm:$0xff] %vm289_vm3, %v6380_v0  ;;  %2479 = vst.msk [vmem:[#allocation5 + $0x8] sm:$0xff] %vm289_vm3, %v6380_v0 }
  0x5c   : > { %2482 = vst.msk [vmem:[#allocation5 + $0x198] sm:$0xff] %vm289_vm3, %v6380_v0  ;;  %2483 = vst.msk [vmem:[#allocation5 + $0x1a0] sm:$0xff] %vm289_vm3, %v6380_v0  ;;  %s8984_s13 = smov (!%p168_p5, %s6429_s13), 1 }
  0x5d   : > { %1085 = vst.msk [vmem:[#allocation4] sm:$0xff] %vm292_vm4, %v6380_v0  ;;  %1089 = vst.msk [vmem:[#allocation4 + $0x90] sm:$0xff] %vm292_vm4, %v6380_v0  ;;  %s5660_s12 = sshll.u32 %s8984_s13, 3 }
  0x5e   : > { %2503 = vst.msk [vmem:[#allocation5 + $0x11] sm:$0x1] %vm193_vm1, %v6380_v0  ;;  %2520 = vst.msk [vmem:[#allocation5 + $0x1a9] sm:$0x1] %vm193_vm1, %v6380_v0  ;;  %s172_s18 = scalar_lea.vmem %s8954_s2, %s5660_s12 }
  0x5f   : > { %2485 = vst.msk [vmem:[#allocation5] sm:$0x1] %vm193_vm1, %v6380_v0  ;;  %2502 = vst.msk [vmem:[#allocation5 + $0x198] sm:$0x1] %vm193_vm1, %v6380_v0  ;;  %v210_v3 = vld [vmem:[#allocation2 + $0x2] sm:$0x3] }
  0x60   : > { %204 = vst.msk [vmem:[#allocation2 + $0x5] sm:$0x3] %vm203_vm2, %v5577_v1  ;;  %205 = vst.msk [vmem:[#allocation2 + $0x9] sm:$0x3] %vm203_vm2, %v5577_v1  ;;  %235 = vrot.lane.b32.xlu1 %v210_v3, %s6382_s15  ;;  %v220_v18 = vld [vmem:[#allocation2 + $0xc] sm:$0x3] }
  0x61   : > { %v224_v25 = vld [vmem:[#allocation2 + $0xe] sm:$0x3]  ;;  %v206_v37 = vld [vmem:[#allocation2] sm:$0x3]  ;;  %492 = vst.msk [vmem:[#allocation3] sm:$0x3f] %vm491_vm14, %v6380_v0 }
  0x62   : > { %494 = vst.msk [vmem:[#allocation3 + $0x28] sm:$0x3f] %vm491_vm14, %v6380_v0  ;;  %vm672_vm2 = vcmask 785408  }
  0x63   : > { %502 = vst.msk [vmem:[#allocation3 + $0x5] sm:$0x1] %vm495_vm15, %v6380_v0  ;;  %496 = vst.msk [vmem:[#allocation3] sm:$0x1] %vm495_vm15, %v6380_v0 }
  0x64   : > { %497 = vst.msk [vmem:[#allocation3 + $0x8] sm:$0x1] %vm495_vm15, %v6380_v0  ;;  %498 = vst.msk [vmem:[#allocation3 + $0x10] sm:$0x1] %vm495_vm15, %v6380_v0 }
  0x65   : > { %499 = vst.msk [vmem:[#allocation3 + $0x18] sm:$0x1] %vm495_vm15, %v6380_v0  ;;  %500 = vst.msk [vmem:[#allocation3 + $0x20] sm:$0x1] %vm495_vm15, %v6380_v0 }
  0x66   : > { %501 = vst.msk [vmem:[#allocation3 + $0x28] sm:$0x1] %vm495_vm15, %v6380_v0  ;;  %503 = vst.msk [vmem:[#allocation3 + $0xd] sm:$0x1] %vm495_vm15, %v6380_v0 }
  0x67   : > { %v211_v5 = vld [vmem:[#allocation2 + $0x6] sm:$0x3]  ;;  %v213_v7 = vld [vmem:[#allocation2 + $0x8] sm:$0x3]  ;;  %v212_v8 = vld [vmem:[#allocation2 + $0x4] sm:$0x3] }
  0x68   : > { %v209_v6 = vld [vmem:[#allocation2 + $0x5] sm:$0x3]  ;;  %237 = vrot.lane.b32.xlu1 %v211_v5, %s6382_s15  ;;  %v215_v11 = vld [vmem:[#allocation2 + $0x9] sm:$0x3]  ;;  %504 = vst.msk [vmem:[#allocation3 + $0x15] sm:$0x1] %vm495_vm15, %v6380_v0 }
  0x69   : > { %229 = vrot.lane.b32.xlu0 %v209_v6, %s6381_s14  ;;  %v214_v12 = vld [vmem:[#allocation2 + $0x5] sm:$0x3]  ;;  %v217_v14 = vld [vmem:[#allocation2 + $0xa] sm:$0x3]  ;;  %v219_v19 = vld [vmem:[#allocation2 + $0x8] sm:$0x3] }
  0x6a   : > { %v216_v15 = vld [vmem:[#allocation2 + $0x6] sm:$0x3]  ;;  %v221_v22 = vld [vmem:[#allocation2 + $0x9] sm:$0x3]  ;;  %v207_v38 = vld [vmem:[#allocation2 + $0x4] sm:$0x3] }
  0x6b   : > { %v223_v26 = vld [vmem:[#allocation2 + $0xa] sm:$0x3]  ;;  %505 = vst.msk [vmem:[#allocation3 + $0x1d] sm:$0x1] %vm495_vm15, %v6380_v0  ;;  %506 = vst.msk [vmem:[#allocation3 + $0x25] sm:$0x1] %vm495_vm15, %v6380_v0 }
  0x6c   : > { %245 = vrot.lane.b32.xlu1 %v213_v7, %s6383_s29  ;;  %507 = vst.msk [vmem:[#allocation3 + $0x2d] sm:$0x1] %vm495_vm15, %v6380_v0  ;;  %v535_v10 = vld [vmem:[#allocation3 + $0x1] sm:$0xf] }
  0x6d   : > { %243 = vrot.lane.b32.xlu0 %v212_v8, %s6383_s29  ;;  %1087 = vst.msk [vmem:[#allocation4 + $0x8] sm:$0x3] %vm1086_vm5, %v6380_v0  ;;  %1090 = vst.msk [vmem:[#allocation4 + $0x98] sm:$0x3] %vm1086_vm5, %v6380_v0  ;;  %vm1522_vm5 = vcmask 654336  }
  0x70   : > { %253 = vrot.lane.b32.xlu1 %v215_v11, %s6384_s30  ;;  %v539_v11 = vld [vmem:[#allocation3 + $0x2] sm:$0xf] }
  0x71   : > { %251 = vrot.lane.b32.xlu0 %v214_v12, %s6384_s30  ;;  %v449_v12 = vld [vmem:[#allocation8 + $0x160] sm:$0xff] }
  0x72   : > { %5811 = vmatprep.subr.mxu0 %v449_v12 }
  0x74   : > { %261 = vrot.lane.b32.xlu1 %v217_v14, %s6385_s3  ;;  %v447_v14 = vld [vmem:[#allocation8 + $0x150] sm:$0xff] }
  0x75   : > { %259 = vrot.lane.b32.xlu0 %v216_v15, %s6385_s3  ;;  %v446_v15 = vld [vmem:[#allocation8 + $0x148] sm:$0xff] }
  0x78   : > { %269 = vrot.lane.b32.xlu1 %v220_v18, %s6387_s4 }
  0x79   : > { %267 = vrot.lane.b32.xlu0 %v219_v19, %s6387_s4 }
  0x7c   : > { %277 = vrot.lane.b32.xlu1 %v222_v21, %s6388_s5 }
  0x7d   : > { %275 = vrot.lane.b32.xlu0 %v221_v22, %s6388_s5 }
  0x80   : > { %285 = vrot.lane.b32.xlu1 %v224_v25, %s6389_s6 }
  0x81   : > { %283 = vrot.lane.b32.xlu0 %v223_v26, %s6389_s6 }
  0x84   : > { %572 = vrot.lane.b32.xlu1 %v535_v10, %s6384_s30 }
  0x88   : > { %588 = vrot.lane.b32.xlu1 %v539_v11, %s6389_s6 }
  0xbe   : > { %v228_v27 = vpop.permute.xlu0 %227 }
  0xbf   : > { %v290_v39 = vsel %vm289_vm3, %v206_v37, %v228_v27  ;;  %v461_v27 = vunpack.c.0.s8 %v460_v24  ;;  %v433_v24 = vld [vmem:[#allocation8 + $0xe0] sm:$0xff] }
  0xd2   : > { %v236_v28 = vpop.permute.xlu1 %235 }
  0xd3   : > { %v293_v46 = vsel %vm292_vm4, %v290_v39, %v236_v28 }
  0xda   : > { %v238_v29 = vpop.permute.xlu1 %237 }
  0xdb   : > { %v230_v30 = vpop.permute.xlu0 %229 }
  0xdc   : > { %v291_v40 = vsel %vm289_vm3, %v207_v38, %v230_v30  ;;  %v6688_v30 = vsub.s32 %v461_v27, %v6652_v53  ;;  %v432_v27 = vld [vmem:[#allocation8 + $0xd8] sm:$0xff] }
  0xdd   : > { %v294_v47 = vsel %vm292_vm4, %v291_v40, %v238_v29 }
  0xde   : > { %v246_v31 = vpop.permute.xlu1 %245 }
  0xdf   : > { %v244_v32 = vpop.permute.xlu0 %243  ;;  %v297_v48 = vsel %vm295_vm6, %v294_v47, %v246_v31  ;;  %v429_v47 = vld [vmem:[#allocation8 + $0xc0] sm:$0xff] }
  0xe0   : > { %v296_v49 = vsel %vm295_vm6, %v293_v46, %v244_v32  ;;  %v445_v46 = vld [vmem:[#allocation8 + $0x140] sm:$0xff] }
  0xe1   : > { %5671 = vmatprep.subr.mxu1 %v445_v46  ;;  %v2907_v46 = vld [vmem:[#allocation5 + $0xa] sm:$0xff] }
  0xe2   : > { %v254_v33 = vpop.permute.xlu1 %253  ;;  %5672 = vmatpush3.msra.mxu1 %v429_v47  ;;  %v3065_v47 = vld [vmem:[#allocation5 + $0x198] sm:$0xff] }
  0xe3   : > { %v252_v34 = vpop.permute.xlu0 %251  ;;  %v300_v54 = vsel %vm298_vm7, %v297_v48, %v254_v33  ;;  %v6692_v33 = vsub.s32 0, %v6652_v53  ;;  %v444_v48 = vld [vmem:[#allocation8 + $0x138] sm:$0xff]  ;;  %v442_v53 = vld [vmem:[#allocation8 + $0x128] sm:$0xff] }
  0xe4   : > { %v299_v55 = vsel %vm298_vm7, %v296_v49, %v252_v34  ;;  %5673 = vmatprep.subr.mxu1 %v444_v48  ;;  %v3097_v48 = vld [vmem:[#allocation5 + $0x199] sm:$0xff] }
  0xe6   : > { %v262_v35 = vpop.permute.xlu1 %261 }
  0xe7   : > { %v260_v36 = vpop.permute.xlu0 %259  ;;  %v303_v56 = vsel %vm301_vm8, %v300_v54, %v262_v35  ;;  %v426_v54 = vld [vmem:[#allocation8 + $0xa8] sm:$0xff] }
  0xe8   : > { %v302_v57 = vsel %vm301_vm8, %v299_v55, %v260_v36 }
  0xea   : > { %v270_v41 = vpop.permute.xlu1 %269 }
  0xeb   : > { %v268_v42 = vpop.permute.xlu0 %267  ;;  %v306_v58 = vsel %vm304_vm9, %v303_v56, %v270_v41 }
  0xec   : > { %v305_v59 = vsel %vm304_vm9, %v302_v57, %v268_v42  ;;  %v559_v57 = vld [vmem:[#allocation3 + $0x28] sm:$0xf] }
  0xee   : > { %v278_v50 = vpop.permute.xlu1 %277 }
  0xef   : > { %v276_v51 = vpop.permute.xlu0 %275  ;;  %v309_v60 = vsel %vm307_vm10, %v306_v58, %v278_v50  ;;  %v428_v50 = vld [vmem:[#allocation8 + $0xb8] sm:$0xff] }
  0xf0   : > { %v308_v61 = vsel %vm307_vm10, %v305_v59, %v276_v51  ;;  %5674 = vmatpush3.msra.mxu1 %v428_v50  ;;  %v443_v51 = vld [vmem:[#allocation8 + $0x130] sm:$0xff] }
  0xf1   : > { %5675 = vmatprep.subr.mxu1 %v443_v51 }
  0xf2   : > { %v286_v62 = vpop.permute.xlu1 %285  ;;  %5676 = vmatpush3.msra.mxu1 %v427_v52 }
  0xf3   : > { %v284_v1 = vpop.permute.xlu0 %283  ;;  %v312_v2 = vsel %vm310_vm11, %v309_v60, %v286_v62  ;;  %5677 = vmatprep.subr.mxu1 %v442_v53 }
  0xf4   : > { %v311_v3 = vsel %vm310_vm11, %v308_v61, %v284_v1  ;;  %5678 = vmatpush3.msra.mxu1 %v426_v54  ;;  %v563_v61 = vld [vmem:[#allocation3 + $0x29] sm:$0xf] }
  0xf5   : > { %v315_v4 = vcombine.low %v311_v3, %v312_v2  ;;  %v441_v1 = vld [vmem:[#allocation8 + $0x120] sm:$0xff]  ;;  %v440_v3 = vld [vmem:[#allocation8 + $0x118] sm:$0xff] }
  0xf6   : > { %5679 = vmatprep.subr.mxu1 %v441_v1  ;;  %v425_v2 = vld [vmem:[#allocation8 + $0xa0] sm:$0xff] }
  0xf7   : > { %v322_v5 = vrot.slane %v315_v4, %v6663_v63  ;;  %5680 = vmatpush3.msra.mxu1 %v425_v2  ;;  %v424_v4 = vld [vmem:[#allocation8 + $0x98] sm:$0xff] }
  0xf8   : > { %5681 = vmatprep.subr.mxu1 %v440_v3 }
  0xf9   : > { %5809 = vmatmul.mubr.msk.f32.vlgmr.msra.gmra.mxu0 %vm323_vm12, %v322_v5  ;;  %5682 = vmatpush3.msra.mxu1 %v424_v4 }
  0xfa   : > { %5812 = vmatpush3.msra.mxu0 %v449_v12  ;;  %v422_v12 = vld [vmem:[#allocation8 + $0x88] sm:$0xff] }
  0xfb   : > { %5813 = vmatprep.subr.mxu0 %v448_v13 }
  0xfc   : > { %5814 = vmatpush3.msra.mxu0 %v448_v13  ;;  %v437_v13 = vld [vmem:[#allocation8 + $0x100] sm:$0xff] }
  0xfd   : > { %5815 = vmatprep.subr.mxu0 %v447_v14 }
  0xfe   : > { %5816 = vmatpush3.msra.mxu0 %v447_v14  ;;  %v421_v14 = vld [vmem:[#allocation8 + $0x80] sm:$0xff] }
  0xff   : > { %5817 = vmatprep.subr.mxu0 %v446_v15 }
 0x100   : > { %5818 = vmatpush3.msra.mxu0 %v446_v15 }
 0x101   : > { %1572 = vmatprep.subr.mxu0 %v6380_v0 }
 0x1b9   : > { %v392_v6 = vpop.f32.mrf.mxu0 }
 0x1ba   : > { %v396_v7 = vmul.f32 %v392_v6, %v392_v6 }
 0x1bb   : > { %v5810_v8 = vpop.f32.mrf.mxu0 }
 0x1bc   : > { %v398_v9 = vsel %vm397_vm13, %v396_v7, 0.0  ;;  %v439_v7 = vld [vmem:[#allocation8 + $0x110] sm:$0xff] }
 0x1bd   : > { %399 = vadd.xlane.f32.xlu0 %v398_v9  ;;  %v423_v8 = vld [vmem:[#allocation8 + $0x90] sm:$0xff]  ;;  %5683 = vmatprep.subr.mxu1 %v439_v7  ;;  %v438_v9 = vld [vmem:[#allocation8 + $0x108] sm:$0xff] }
 0x1be   : > { %5684 = vmatpush3.msra.mxu1 %v423_v8 }
 0x1bf   : > { %5685 = vmatprep.subr.mxu1 %v438_v9 }
 0x1c0   : > { %5686 = vmatpush3.msra.mxu1 %v422_v12 }
 0x1c1   : > { %5687 = vmatprep.subr.mxu1 %v437_v13 }
 0x1c2   : > { %5688 = vmatpush3.msra.mxu1 %v421_v14 }
 0x246   : > { %v400_v16 = vpop.xlane.xlu0 %399 }
 0x247   : > { %6097 = vrsqrt.f32 %v400_v16  ;;  %vm403_vm0 = vcmp.eq.f32.partialorder %v400_v16, inf  ;;  %v406_v19 = vand.u32 2147483648, %v400_v16  ;;  %vm405_vm1 = vcmp.eq.f32.partialorder %v400_v16, 0.0 }
 0x254   : > { %v6098_v17 = vpop.eup %6097 }
 0x255   : > { %v402_v18 = vmul.f32 %v6098_v17, %v400_v16  ;;  %v436_v17 = vld [vmem:[#allocation8 + $0xf8] sm:$0xff] }
 0x256   : > { %5689 = vmatprep.subr.mxu1 %v436_v17 }
 0x257   : > { %v404_v20 = vsel %vm403_vm0, %v400_v16, %v402_v18  ;;  %v420_v18 = vld [vmem:[#allocation8 + $0x78] sm:$0xff] }
 0x258   : > { %v407_v21 = vsel %vm405_vm1, %v406_v19, %v404_v20  ;;  %v435_v19 = vld [vmem:[#allocation8 + $0xf0] sm:$0xff]  ;;  %5690 = vmatpush3.msra.mxu1 %v420_v18 }
 0x259   : > { %v408_v22 = vadd.f32 1e-08, %v407_v21  ;;  %v419_v20 = vld [vmem:[#allocation8 + $0x70] sm:$0xff]  ;;  %5691 = vmatprep.subr.mxu1 %v435_v19 }
 0x25a   : > { %5692 = vmatpush3.msra.mxu1 %v419_v20 }
 0x25b   : > { %6099 = vrcp.f32 %v408_v22  ;;  %v434_v22 = vld [vmem:[#allocation8 + $0xe8] sm:$0xff] }
 0x25c   : > { %5693 = vmatprep.subr.mxu1 %v434_v22 }
 0x25d   : > { %5694 = vmatpush3.msra.mxu1 %v418_v23 }
 0x25e   : > { %5695 = vmatprep.subr.mxu1 %v433_v24 }
 0x268   : > { %v6100_v25 = vpop.eup %6099 }
 0x269   : > { %v410_v26 = vmul.f32 5.656854, %v6100_v25  ;;  %v417_v25 = vld [vmem:[#allocation8 + $0x60] sm:$0xff] }
 0x26a   : > { %5696 = vmatpush3.msra.mxu1 %v417_v25 }
 0x26b   : > { %v411_v28 = vmul.f32 %v410_v26, %v392_v6  ;;  %5697 = vmatprep.subr.mxu1 %v432_v27 }
 0x26d   : > { %v412_v29 = vmul.f32 0.2, %v411_v28 }
 0x26f   : > { %v413_v31 = vmax.f32 %v411_v28, %v412_v29  ;;  %v416_v28 = vld [vmem:[#allocation8 + $0x58] sm:$0xff]  ;;  %v431_v29 = vld [vmem:[#allocation8 + $0xd0] sm:$0xff] }
 0x270   : > { %5698 = vmatpush3.msra.mxu1 %v416_v28 }
 0x271   : > { %v457_v32 = vrot.slane %v413_v31, %v6663_v63  ;;  %v415_v31 = vld [vmem:[#allocation8 + $0x50] sm:$0xff]  ;;  %5699 = vmatprep.subr.mxu1 %v431_v29 }
 0x272   : > { %5700 = vmatpush3.msra.mxu1 %v415_v31 }
 0x273   : > { %v458_v34 = vcombine.high %v457_v32, %v457_v32  ;;  %v465_v35 = vrot.slane %v457_v32, %v6688_v30 }
 0x275   : > { %v466_v36 = vcombine.high %v465_v35, %v465_v35  ;;  %v473_v37 = vrot.slane %v458_v34, %v6688_v30  ;;  %v478_v39 = vrot.slane %v465_v35, %v6692_v33  ;;  %v430_v34 = vld [vmem:[#allocation8 + $0xc8] sm:$0xff] }
 0x276   : > { %v414_v35 = vld [vmem:[#allocation8 + $0x48] sm:$0xff]  ;;  %5701 = vmatprep.subr.mxu1 %v430_v34 }
 0x277   : > { %v474_v38 = vcombine.high %v473_v37, %v473_v37  ;;  %v482_v40 = vrot.slane %v466_v36, %v6692_v33  ;;  %v486_v41 = vrot.slane %v473_v37, %v6692_v33  ;;  %5702 = vmatpush3.msra.mxu1 %v414_v35 }
 0x279   : > { %v490_v42 = vrot.slane %v474_v38, %v6692_v33  ;;  %v508_v43 = vcombine.low %v478_v39, %v482_v40 }
 0x27b   : > { %v515_v44 = vrot.slane %v508_v43, %v6663_v63  ;;  %v516_v45 = vcombine.low %v486_v41, %v490_v42  ;;  %v2874_v43 = vld [vmem:[#allocation5 + $0x1] sm:$0xff] }
 0x27d   : > { %v523_v49 = vrot.slane %v516_v45, %v6663_v63  ;;  %527 = vst.msk [vmem:[#allocation3 + $0x9] sm:$0xf] %vm397_vm13, %v515_v44  ;;  %528 = vst.msk [vmem:[#allocation3 + $0x11] sm:$0xf] %vm397_vm13, %v515_v44  ;;  %v2875_v44 = vld [vmem:[#allocation5 + $0x9] sm:$0xff] }
 0x27e   : > { %v2906_v45 = vld [vmem:[#allocation5 + $0x2] sm:$0xff] }
 0x27f   : > { %530 = vst.msk [vmem:[#allocation3 + $0x21] sm:$0xf] %vm397_vm13, %v523_v49  ;;  %529 = vst.msk [vmem:[#allocation3 + $0x19] sm:$0xf] %vm397_vm13, %v523_v49  ;;  %v573_v49 = vpop.permute.xlu1 %572  ;;  %vm1091_vm13 = vcmask 122880  }
 0x280   : > { %1104 = vst.msk [vmem:[#allocation4 + $0x29] sm:$0x1] %vm1091_vm13, %v6380_v0  ;;  %1092 = vst.msk [vmem:[#allocation4] sm:$0x1] %vm1091_vm13, %v6380_v0 }
 0x281   : > { %1093 = vst.msk [vmem:[#allocation4 + $0x10] sm:$0x1] %vm1091_vm13, %v6380_v0  ;;  %1094 = vst.msk [vmem:[#allocation4 + $0x20] sm:$0x1] %vm1091_vm13, %v6380_v0 }
 0x282   : > { %1095 = vst.msk [vmem:[#allocation4 + $0x30] sm:$0x1] %vm1091_vm13, %v6380_v0  ;;  %1096 = vst.msk [vmem:[#allocation4 + $0x40] sm:$0x1] %vm1091_vm13, %v6380_v0 }
 0x283   : > { %v589_v50 = vpop.permute.xlu1 %588  ;;  %1097 = vst.msk [vmem:[#allocation4 + $0x50] sm:$0x1] %vm1091_vm13, %v6380_v0  ;;  %1098 = vst.msk [vmem:[#allocation4 + $0x60] sm:$0x1] %vm1091_vm13, %v6380_v0 }
 0x284   : > { %v560_v55 = vld [vmem:[#allocation3 + $0x11] sm:$0xf]  ;;  %v551_v56 = vld [vmem:[#allocation3 + $0xa] sm:$0xf]  ;;  %1099 = vst.msk [vmem:[#allocation4 + $0x70] sm:$0x1] %vm1091_vm13, %v6380_v0 }
 0x285   : > { %652 = vrot.lane.b32.xlu0 %v560_v55, %s6392_s7  ;;  %620 = vrot.lane.b32.xlu1 %v551_v56, %s6384_s30  ;;  %v552_v60 = vld [vmem:[#allocation3 + $0x12] sm:$0xf]  ;;  %v536_v62 = vld [vmem:[#allocation3 + $0x9] sm:$0xf]  ;;  %1100 = vst.msk [vmem:[#allocation4 + $0x80] sm:$0x1] %vm1091_vm13, %v6380_v0 }
 0x286   : > { %v6095_v58 = vld [vmem:[#allocation3 + $0x12] ss:$8 sps:$4 sm:$0xff]   ;;  %v6096_v59 = vld [vmem:[#allocation3 + $0x22] ss:$8 sps:$4 sm:$0xff]   ;;  %1101 = vst.msk [vmem:[#allocation4 + $0x90] sm:$0x1] %vm1091_vm13, %v6380_v0 }
 0x287   : > { %5819 = vmatprep.mubr.msk.f32.mxu0 %vm298_vm7, %v6095_v58  ;;  %v556_v5 = vld [vmem:[#allocation3 + $0x10] sm:$0xf]  ;;  %v538_v6 = vld [vmem:[#allocation3 + $0x19] sm:$0xf]  ;;  %v540_v10 = vld [vmem:[#allocation3 + $0xa] sm:$0xf] }
 0x288   : > { %5820 = vmatmul.mubr.msk.f32.vlgmr.msra.gmra.mxu0 %vm298_vm7, %v6096_v59  ;;  %v542_v11 = vld [vmem:[#allocation3 + $0x1a] sm:$0xf]  ;;  %v543_v15 = vld [vmem:[#allocation3 + $0x8] sm:$0xf]  ;;  %v546_v16 = vld [vmem:[#allocation3 + $0x20] sm:$0xf] }
 0x289   : > { %642 = vrot.lane.b32.xlu0 %v559_v57, %s6389_s6  ;;  %622 = vrot.lane.b32.xlu1 %v552_v60, %s6384_s30  ;;  %v544_v21 = vld [vmem:[#allocation3 + $0x10] sm:$0xf]  ;;  %v557_v26 = vld [vmem:[#allocation3 + $0x18] sm:$0xf]  ;;  %v554_v39 = vld [vmem:[#allocation3 + $0x22] sm:$0xf] }
 0x28a   : > { %v561_v32 = vld [vmem:[#allocation3 + $0x19] sm:$0xf]  ;;  %v537_v36 = vld [vmem:[#allocation3 + $0x11] sm:$0xf]  ;;  %v558_v40 = vld [vmem:[#allocation3 + $0x20] sm:$0xf] }
 0x28b   : > { %v541_v37 = vld [vmem:[#allocation3 + $0x12] sm:$0xf]  ;;  %v553_v38 = vld [vmem:[#allocation3 + $0x1a] sm:$0xf]  ;;  %v562_v41 = vld [vmem:[#allocation3 + $0x21] sm:$0xf] }
 0x28c   : > { %v545_v42 = vld [vmem:[#allocation3 + $0x18] sm:$0xf]  ;;  %v531_v58 = vld [vmem:[#allocation3] sm:$0xf]  ;;  %v547_v60 = vld [vmem:[#allocation3 + $0x9] sm:$0xf] }
 0x28d   : > { %658 = vrot.lane.b32.xlu0 %v563_v61, %s6392_s7  ;;  %574 = vrot.lane.b32.xlu1 %v536_v62, %s6384_s30  ;;  %v532_v1 = vld [vmem:[#allocation3 + $0x8] sm:$0xf]  ;;  %v664_v2 = vsel %vm298_vm7, %v531_v58, %v573_v49  ;;  %v548_v3 = vld [vmem:[#allocation3 + $0x11] sm:$0xf]  ;;  %v550_v24 = vld [vmem:[#allocation3 + $0x21] sm:$0xf] }
 0x28e   : > { %v549_v28 = vld [vmem:[#allocation3 + $0x19] sm:$0xf]  ;;  %v3066_v49 = vld [vmem:[#allocation5 + $0x1a0] sm:$0xff]  ;;  %1103 = vst.msk [vmem:[#allocation4 + $0x19] sm:$0x1] %vm1091_vm13, %v6380_v0 }
 0x28f   : > { %1105 = vst.msk [vmem:[#allocation4 + $0x39] sm:$0x1] %vm1091_vm13, %v6380_v0  ;;  %1106 = vst.msk [vmem:[#allocation4 + $0x49] sm:$0x1] %vm1091_vm13, %v6380_v0 }
 0x290   : > { %1107 = vst.msk [vmem:[#allocation4 + $0x59] sm:$0x1] %vm1091_vm13, %v6380_v0  ;;  %1108 = vst.msk [vmem:[#allocation4 + $0x69] sm:$0x1] %vm1091_vm13, %v6380_v0 }
 0x291   : > { %636 = vrot.lane.b32.xlu1 %v556_v5, %s6389_s6  ;;  %578 = vrot.lane.b32.xlu0 %v538_v6, %s6384_s30  ;;  %1109 = vst.msk [vmem:[#allocation4 + $0x79] sm:$0x1] %vm1091_vm13, %v6380_v0  ;;  %1110 = vst.msk [vmem:[#allocation4 + $0x89] sm:$0x1] %vm1091_vm13, %v6380_v0 }
 0x292   : > { %1102 = vst.msk [vmem:[#allocation4 + $0x9] sm:$0x1] %vm1091_vm13, %v6380_v0  ;;  %1111 = vst.msk [vmem:[#allocation4 + $0x99] sm:$0x1] %vm1091_vm13, %v6380_v0  ;;  %vm1539_vm13 = vcmask 916480  }
 0x295   : > { %590 = vrot.lane.b32.xlu1 %v540_v10, %s6389_s6  ;;  %594 = vrot.lane.b32.xlu0 %v542_v11, %s6389_s6  ;;  %v668_v11 = vsel %vm310_vm11, %v664_v2, %v589_v50  ;;  %v3098_v50 = vld [vmem:[#allocation5 + $0x1a1] sm:$0xff] }
 0x299   : > { %604 = vrot.lane.b32.xlu1 %v543_v15, %s6392_s7  ;;  %610 = vrot.lane.b32.xlu0 %v546_v16, %s6392_s7 }
 0x29d   : > { %606 = vrot.lane.b32.xlu1 %v544_v21, %s6392_s7  ;;  %3165 = vrot.lane.b32.xlu0 %v2875_v44, %s6381_s14 }
 0x2a1   : > { %638 = vrot.lane.b32.xlu1 %v557_v26, %s6389_s6  ;;  %3865 = vrot.lane.b32.xlu0 %v3066_v49, %s6387_s4 }
 0x2a5   : > { %654 = vrot.lane.b32.xlu1 %v561_v32, %s6392_s7  ;;  %3993 = vrot.lane.b32.xlu0 %v3098_v50, %s6388_s5 }
 0x2a9   : > { %576 = vrot.lane.b32.xlu1 %v537_v36, %s6384_s30 }
 0x2ad   : > { %592 = vrot.lane.b32.xlu1 %v541_v37, %s6389_s6  ;;  %v534_v37 = vld [vmem:[#allocation3 + $0x18] sm:$0xf] }
 0x2b1   : > { %624 = vrot.lane.b32.xlu1 %v553_v38, %s6384_s30 }
 0x2b5   : > { %626 = vrot.lane.b32.xlu1 %v554_v39, %s6384_s30  ;;  %v533_v39 = vld [vmem:[#allocation3 + $0x10] sm:$0xf] }
 0x2b9   : > { %640 = vrot.lane.b32.xlu1 %v558_v40, %s6389_s6 }
 0x2bd   : > { %656 = vrot.lane.b32.xlu1 %v562_v41, %s6392_s7 }
 0x2c1   : > { %608 = vrot.lane.b32.xlu1 %v545_v42, %s6392_s7 }
 0x2c5   : > { %3163 = vrot.lane.b32.xlu1 %v2874_v43, %s6381_s14 }
 0x2c9   : > { %3291 = vrot.lane.b32.xlu1 %v2906_v45, %s6382_s15 }
 0x2cd   : > { %3293 = vrot.lane.b32.xlu1 %v2907_v46, %s6382_s15 }
 0x2d1   : > { %3863 = vrot.lane.b32.xlu1 %v3065_v47, %s6387_s4 }
 0x2d5   : > { %3991 = vrot.lane.b32.xlu1 %v3097_v48, %s6388_s5 }
 0x2f7   : > { %v621_v51 = vpop.permute.xlu1 %620  ;;  %v653_v59 = vpop.permute.xlu0 %652 }
 0x2f8   : > { %v677_v62 = vsel %vm298_vm7, %v547_v60, %v621_v51 }
 0x2fb   : > { %v623_v52 = vpop.permute.xlu1 %622  ;;  %v643_v14 = vpop.permute.xlu0 %642 }
 0x2fc   : > { %v678_v6 = vsel %vm298_vm7, %v548_v3, %v623_v52 }
 0x2ff   : > { %v575_v53 = vpop.permute.xlu1 %574  ;;  %v659_v19 = vpop.permute.xlu0 %658 }
 0x300   : > { %v665_v4 = vsel %vm298_vm7, %v532_v1, %v575_v53 }
 0x303   : > { %v637_v54 = vpop.permute.xlu1 %636  ;;  %v579_v22 = vpop.permute.xlu0 %578 }
 0x304   : > { %v681_v5 = vsel %vm310_vm11, %v677_v62, %v637_v54  ;;  %v667_v41 = vsel %vm298_vm7, %v534_v37, %v579_v22 }
 0x305   : > { %v685_v12 = vsel %vm672_vm2, %v681_v5, %v653_v59 }
 0x307   : > { %v591_v55 = vpop.permute.xlu1 %590  ;;  %v595_v26 = vpop.permute.xlu0 %594 }
 0x308   : > { %v669_v7 = vsel %vm310_vm11, %v665_v4, %v591_v55  ;;  %v671_v43 = vsel %vm310_vm11, %v667_v41, %v595_v26 }
 0x30b   : > { %v605_v56 = vpop.permute.xlu1 %604  ;;  %v611_v38 = vpop.permute.xlu0 %610 }
 0x30c   : > { %v673_v15 = vsel %vm672_vm2, %v668_v11, %v605_v56  ;;  %v676_v46 = vsel %vm672_vm2, %v671_v43, %v611_v38 }
 0x30f   : > { %v607_v57 = vpop.permute.xlu1 %606 }
 0x310   : > { %v674_v8 = vsel %vm672_vm2, %v669_v7, %v607_v57 }
 0x311   : > { %v5579_v17 = vcombine.low %v673_v15, %v674_v8  ;;  %v918_v8 = vld [vmem:[#allocation8 + $0x1e0] sm:$0xff]  ;;  %v912_v15 = vld [vmem:[#allocation8 + $0x1b0] sm:$0xff] }
 0x312   : > { %1573 = vmatpush1.msra.mxu0 %v918_v8 }
 0x313   : > { %v639_v61 = vpop.permute.xlu1 %638  ;;  %1574 = vmatprep.subr.mxu0 %v6380_v0 }
 0x314   : > { %v682_v9 = vsel %vm310_vm11, %v678_v6, %v639_v61 }
 0x317   : > { %v655_v10 = vpop.permute.xlu1 %654 }
 0x318   : > { %v686_v13 = vsel %vm672_vm2, %v682_v9, %v655_v10  ;;  %v917_v9 = vld [vmem:[#allocation8 + $0x1d8] sm:$0xff]  ;;  %v916_v10 = vld [vmem:[#allocation8 + $0x1d0] sm:$0xff] }
 0x319   : > { %v5580_v16 = vcombine.low %v685_v12, %v686_v13  ;;  %1575 = vmatpush1.msra.mxu0 %v917_v9  ;;  %v915_v12 = vld [vmem:[#allocation8 + $0x1c8] sm:$0xff]  ;;  %v914_v13 = vld [vmem:[#allocation8 + $0x1c0] sm:$0xff] }
 0x31a   : > { %1576 = vmatprep.subr.mxu0 %v6380_v0 }
 0x31b   : > { %783 = vmatprep.mubr.f32.mxu1 %v5580_v16  ;;  %v577_v18 = vpop.permute.xlu1 %576  ;;  %1577 = vmatpush1.msra.mxu0 %v916_v10  ;;  %v911_v16 = vld [vmem:[#allocation8 + $0x1a8] sm:$0xff] }
 0x31c   : > { %784 = vmatmul.mubr.f32.vlgmr.msra.gmra.mxu1 %v5579_v17  ;;  %v666_v42 = vsel %vm298_vm7, %v533_v39, %v577_v18  ;;  %1578 = vmatprep.subr.mxu0 %v6380_v0  ;;  %v910_v17 = vld [vmem:[#allocation8 + $0x1a0] sm:$0xff]  ;;  %v6831_v18 = vpop.permute.xlu0 %3165 }
 0x31d   : > { %1579 = vmatpush1.msra.mxu0 %v915_v12 }
 0x31e   : > { %1580 = vmatprep.subr.mxu0 %v6380_v0 }
 0x31f   : > { %v593_v20 = vpop.permute.xlu1 %592  ;;  %1581 = vmatpush1.msra.mxu0 %v914_v13 }
 0x320   : > { %v670_v44 = vsel %vm310_vm11, %v666_v42, %v593_v20  ;;  %1582 = vmatprep.subr.mxu0 %v6380_v0  ;;  %v6835_v22 = vpop.permute.xlu0 %3865 }
 0x323   : > { %v625_v21 = vpop.permute.xlu1 %624 }
 0x324   : > { %v679_v31 = vsel %vm298_vm7, %v549_v28, %v625_v21 }
 0x327   : > { %v627_v23 = vpop.permute.xlu1 %626 }
 0x328   : > { %v680_v25 = vsel %vm298_vm7, %v550_v24, %v627_v23 }
 0x329   : > { %v684_v29 = vsel %vm310_vm11, %v680_v25, %v643_v14  ;;  %v913_v14 = vld [vmem:[#allocation8 + $0x1b8] sm:$0xff] }
 0x32a   : > { %v688_v35 = vsel %vm672_vm2, %v684_v29, %v659_v19  ;;  %1583 = vmatpush1.msra.mxu0 %v913_v14  ;;  %v909_v19 = vld [vmem:[#allocation8 + $0x198] sm:$0xff] }
 0x32b   : > { %v641_v27 = vpop.permute.xlu1 %640  ;;  %1584 = vmatprep.subr.mxu0 %v6380_v0 }
 0x32c   : > { %v683_v32 = vsel %vm310_vm11, %v679_v31, %v641_v27  ;;  %1585 = vmatpush1.msra.mxu0 %v912_v15  ;;  %v6838_v27 = vpop.permute.xlu0 %3993 }
 0x32d   : > { %1586 = vmatprep.subr.mxu0 %v6380_v0 }
 0x32e   : > { %1587 = vmatpush1.msra.mxu0 %v911_v16  ;;  %v908_v16 = vld [vmem:[#allocation8 + $0x190] sm:$0xff] }
 0x32f   : > { %v657_v34 = vpop.permute.xlu1 %656  ;;  %1588 = vmatprep.subr.mxu0 %v6380_v0 }
 0x330   : > { %v687_v36 = vsel %vm672_vm2, %v683_v32, %v657_v34  ;;  %1589 = vmatpush1.msra.mxu0 %v910_v17  ;;  %v907_v17 = vld [vmem:[#allocation8 + $0x188] sm:$0xff] }
 0x331   : > { %v5582_v40 = vcombine.low %v687_v36, %v688_v35  ;;  %1590 = vmatprep.subr.mxu0 %v6380_v0 }
 0x332   : > { %1591 = vmatpush1.msra.mxu0 %v909_v19 }
 0x333   : > { %788 = vmatprep.mubr.f32.mxu1 %v5582_v40  ;;  %v609_v45 = vpop.permute.xlu1 %608  ;;  %1592 = vmatprep.subr.mxu0 %v6380_v0 }
 0x334   : > { %v675_v47 = vsel %vm672_vm2, %v670_v44, %v609_v45  ;;  %1593 = vmatpush1.msra.mxu0 %v908_v16 }
 0x335   : > { %v5581_v48 = vcombine.low %v675_v47, %v676_v46  ;;  %1594 = vmatprep.subr.mxu0 %v6380_v0 }
 0x336   : > { %1595 = vmatpush1.msra.mxu0 %v907_v17 }
 0x337   : > { %789 = vmatmul.mubr.f32.gmra.mxu1 %v5581_v48  ;;  %v6814_v3 = vpop.permute.xlu1 %3163  ;;  %1596 = vmatprep.subr.mxu0 %v6380_v0 }
 0x33b   : > { %v6816_v4 = vpop.permute.xlu1 %3291 }
 0x33f   : > { %v6818_v5 = vpop.permute.xlu1 %3293 }
 0x343   : > { %v6820_v6 = vpop.permute.xlu1 %3863 }
 0x347   : > { %v6822_v7 = vpop.permute.xlu1 %3991 }
 0x348   : > { %v5821_v51 = vpop.f32.mrf.mxu0 }
 0x34a   : > { %v860_v55 = vpop.f32.mrf.mxu0 }
 0x3dc   : > { %v5703_v52 = vpop.f32.mrf.mxu1 }
 0x3de   : > { %v5704_v53 = vpop.f32.mrf.mxu1 }
 0x3df   : > { %v5705_v54 = vadd.f32 %v5704_v53, %v5703_v52 }
 0x3e1   : > { %v6762_v56 = vadd.f32 %v5705_v54, %v860_v55 }
 0x3e3   : > { %v869_v57 = vmul.f32 %v6762_v56, %v6762_v56 }
 0x3e5   : > { %v871_v58 = vsel %vm292_vm4, %v869_v57, 0.0 }
 0x3e6   : > { %872 = vadd.xlane.f32.xlu1 %v871_v58 }
 0x3f7   : > { %v5706_v59 = vpop.f32.mrf.mxu1 }
 0x3f9   : > { %v5707_v60 = vpop.f32.mrf.mxu1 }
 0x3fa   : > { %v5708_v61 = vadd.f32 %v5707_v60, %v5706_v59 }
 0x3fc   : > { %v6767_v62 = vadd.f32 %v5821_v51, %v5708_v61 }
 0x3fe   : > { %v870_v1 = vmul.f32 %v6767_v62, %v6767_v62 }
 0x400   : > { %v874_v2 = vsel %vm292_vm4, %v870_v1, 0.0 }
 0x401   : > { %875 = vadd.xlane.f32.xlu0 %v874_v2 }
 0x46f   : > { %v873_v11 = vpop.xlane.xlu1 %872 }
 0x470   : > { %6101 = vrsqrt.f32 %v873_v11  ;;  %vm879_vm14 = vcmp.eq.f32.partialorder %v873_v11, inf  ;;  %v882_v23 = vand.u32 2147483648, %v873_v11  ;;  %vm881_vm15 = vcmp.eq.f32.partialorder %v873_v11, 0.0 }
 0x47d   : > { %v6102_v20 = vpop.eup %6101 }
 0x47e   : > { %v878_v21 = vmul.f32 %v6102_v20, %v873_v11 }
 0x480   : > { %v880_v24 = vsel %vm879_vm14, %v873_v11, %v878_v21 }
 0x481   : > { %v883_v25 = vsel %vm881_vm15, %v882_v23, %v880_v24  ;;  %v906_v23 = vld [vmem:[#allocation8 + $0x180] sm:$0xff]  ;;  %v905_v24 = vld [vmem:[#allocation8 + $0x178] sm:$0xff] }
 0x482   : > { %v891_v26 = vadd.f32 1e-08, %v883_v25  ;;  %1597 = vmatpush1.msra.mxu0 %v906_v23 }
 0x483   : > { %1598 = vmatprep.subr.mxu0 %v6380_v0 }
 0x484   : > { %6103 = vrcp.f32 %v891_v26  ;;  %v1209_v26 = vld [vmem:[#allocation4 + $0x2] sm:$0xff]  ;;  %1599 = vmatpush1.msra.mxu0 %v905_v24 }
 0x485   : > { %1600 = vmatprep.subr.mxu0 %v6380_v0 }
 0x48a   : > { %v876_v28 = vpop.xlane.xlu0 %875 }
 0x48b   : > { %6105 = vrsqrt.f32 %v876_v28  ;;  %vm886_vm0 = vcmp.eq.f32.partialorder %v876_v28, inf  ;;  %v889_v40 = vand.u32 2147483648, %v876_v28  ;;  %vm888_vm1 = vcmp.eq.f32.partialorder %v876_v28, 0.0 }
 0x491   : > { %v6104_v29 = vpop.eup %6103 }
 0x492   : > { %v894_v31 = vmul.f32 4.0, %v6104_v29  ;;  %v904_v29 = vld [vmem:[#allocation8 + $0x170] sm:$0xff] }
 0x493   : > { %1601 = vmatpush1.msra.mxu0 %v904_v29 }
 0x494   : > { %v897_v32 = vmul.f32 %v894_v31, %v6762_v56  ;;  %1602 = vmatprep.subr.mxu0 %v6380_v0 }
 0x496   : > { %v899_v34 = vmul.f32 0.2, %v897_v32 }
 0x498   : > { %v6106_v35 = vpop.eup %6105  ;;  %v901_v36 = vmax.f32 %v897_v32, %v899_v34 }
 0x499   : > { %v885_v37 = vmul.f32 %v6106_v35, %v876_v28 }
 0x49a   : > { %v923_v38 = vcombine.high %v901_v36, %v901_v36  ;;  %v931_v39 = vrot.slane %v901_v36, %v6688_v30 }
 0x49b   : > { %v887_v41 = vsel %vm886_vm0, %v876_v28, %v885_v37  ;;  %v1201_v28 = vld [vmem:[#allocation4 + $0x1] sm:$0xff] }
 0x49c   : > { %v932_v42 = vcombine.high %v931_v39, %v931_v39  ;;  %v939_v43 = vrot.slane %v931_v39, %v6688_v30  ;;  %v955_v44 = vrot.slane %v923_v38, %v6688_v30  ;;  %v890_v45 = vsel %vm888_vm1, %v889_v40, %v887_v41 }
 0x49d   : > { %v892_v46 = vadd.f32 1e-08, %v890_v45 }
 0x49e   : > { %v946_v47 = vrot.slane %v932_v42, %v6688_v30  ;;  %v947_v48 = vcombine.high %v939_v43, %v939_v43  ;;  %v956_v49 = vcombine.high %v955_v44, %v955_v44  ;;  %v963_v50 = vrot.slane %v955_v44, %v6688_v30 }
 0x49f   : > { %6107 = vrcp.f32 %v892_v46  ;;  %v1024_v55 = vrot.slane %v939_v43, %v6692_v33  ;;  %v920_v46 = vld [vmem:[#allocation8 + $0x1f0] sm:$0xff] }
 0x4a0   : > { %v948_v51 = vcombine.high %v946_v47, %v946_v47  ;;  %v970_v52 = vrot.slane %v956_v49, %v6688_v30  ;;  %v971_v53 = vcombine.high %v963_v50, %v963_v50  ;;  %v1028_v54 = vrot.slane %v946_v47, %v6692_v33 }
 0x4a1   : > { %v1032_v56 = vrot.slane %v947_v48, %v6692_v33  ;;  %v1040_v59 = vrot.slane %v963_v50, %v6692_v33 }
 0x4a2   : > { %v972_v57 = vcombine.high %v970_v52, %v970_v52  ;;  %v1036_v58 = vrot.slane %v948_v51, %v6692_v33  ;;  %v1044_v60 = vrot.slane %v970_v52, %v6692_v33  ;;  %v1112_v61 = vcombine.low %v1024_v55, %v1028_v54  ;;  %v919_v51 = vld [vmem:[#allocation8 + $0x1e8] sm:$0xff] }
 0x4a3   : > { %v1048_v1 = vrot.slane %v971_v53, %v6692_v33 }
 0x4a4   : > { %v1052_v2 = vrot.slane %v972_v57, %v6692_v33  ;;  %v1113_v8 = vcombine.low %v1032_v56, %v1036_v58  ;;  %v1129_v9 = vcombine.low %v1040_v59, %v1044_v60  ;;  %v1120_v10 = vrot.slane %v1112_v61, %v6663_v63 }
 0x4a6   : > { %v1127_v11 = vrot.slane %v1113_v8, %v6663_v63  ;;  %v1130_v12 = vcombine.low %v1048_v1, %v1052_v2  ;;  %v1137_v14 = vrot.slane %v1129_v9, %v6663_v63 }
 0x4a8   : > { %v1128_v13 = vcombine.low %v1120_v10, %v1127_v11  ;;  %v1144_v15 = vrot.slane %v1130_v12, %v6663_v63 }
 0x4aa   : > { %v1145_v19 = vcombine.low %v1137_v14, %v1144_v15  ;;  %1185 = vst.msk [vmem:[#allocation4 + $0x11] sm:$0xff] %vm292_vm4, %v1128_v13  ;;  %1186 = vst.msk [vmem:[#allocation4 + $0x21] sm:$0xff] %vm292_vm4, %v1128_v13 }
 0x4ac   : > { %v6108_v20 = vpop.eup %6107  ;;  %1187 = vst.msk [vmem:[#allocation4 + $0x31] sm:$0xff] %vm292_vm4, %v1145_v19  ;;  %1188 = vst.msk [vmem:[#allocation4 + $0x41] sm:$0xff] %vm292_vm4, %v1145_v19 }
 0x4ad   : > { %v896_v21 = vmul.f32 4.0, %v6108_v20 }
 0x4af   : > { %v898_v25 = vmul.f32 %v896_v21, %v6767_v62  ;;  %v903_v62 = vld [vmem:[#allocation8 + $0x168] sm:$0xff] }
 0x4b0   : > { %1603 = vmatpush1.msra.mxu0 %v903_v62 }
 0x4b1   : > { %v900_v31 = vmul.f32 0.2, %v898_v25  ;;  %v6867_v32 = vld [vmem:[#allocation4 + $0x22] sm:$0xff]  ;;  %v1210_v34 = vld [vmem:[#allocation4 + $0x12] sm:$0xff]  ;;  %1632 = vmatprep.subr.mxu0 %v6380_v0 }
 0x4b2   : > { %v1202_v35 = vld [vmem:[#allocation4 + $0x11] sm:$0xff]  ;;  %5585 = vmatprep.mubr.msk.f32.mxu0 %vm292_vm4, %v6867_v32  ;;  %v5960_v36 = vpack.i.bf16 %v1210_v34, %v1209_v26  ;;  %v6874_v40 = vld [vmem:[#allocation4 + $0x20] sm:$0xff]  ;;  %1633 = vmatpush2.msra.mxu0 %v920_v46  ;;  %v5975_v56 = vpack.i.bf16 %v6867_v32, %v1210_v34 }
 0x4b3   : > { %v5955_v37 = vpack.i.bf16 %v1202_v35, %v1201_v28  ;;  %v902_v38 = vmax.f32 %v898_v25, %v900_v31  ;;  %v6872_v39 = vld [vmem:[#allocation4 + $0x10] sm:$0xff]  ;;  %v1226_v41 = vld [vmem:[#allocation4 + $0x21] sm:$0xff]  ;;  %1634 = vmatprep.subr.mxu0 %v6380_v0 }
 0x4b4   : > { %5961 = vrot.lane.b32.xlu1 %v5960_v36, %s6384_s30  ;;  %v5965_v44 = vpack.i.bf16 %v6874_v40, %v6872_v39  ;;  %v5970_v45 = vpack.i.bf16 %v1226_v41, %v1202_v35  ;;  %v6884_v50 = vld [vmem:[#allocation4 + $0x30] sm:$0xff]  ;;  %1635 = vmatpush2.msra.mxu0 %v919_v51  ;;  %v6908_v20 = vld [vmem:[#allocation4 + $0x40] sm:$0xff] }
 0x4b5   : > { %5956 = vrot.lane.b32.xlu0 %v5955_v37, %s6382_s15  ;;  %v924_v42 = vcombine.high %v902_v38, %v902_v38  ;;  %v979_v43 = vrot.slane %v902_v38, %v6688_v30  ;;  %v5980_v57 = vpack.i.bf16 %v6884_v50, %v6874_v40  ;;  %v1251_v1 = vld [vmem:[#allocation4 + $0x31] sm:$0xff]  ;;  %v6000_v26 = vpack.i.bf16 %v6908_v20, %v6884_v50  ;;  %v1228_v34 = vld [vmem:[#allocation4 + $0x41] sm:$0xff] }
 0x4b6   : > { %v5985_v13 = vpack.i.bf16 %v1251_v1, %v1226_v41  ;;  %v6906_v19 = vld [vmem:[#allocation4 + $0x32] sm:$0xff]  ;;  %v6920_v35 = vld [vmem:[#allocation4 + $0x42] sm:$0xff] }
 0x4b7   : > { %v980_v47 = vcombine.high %v979_v43, %v979_v43  ;;  %v987_v48 = vrot.slane %v979_v43, %v6688_v30  ;;  %v1003_v49 = vrot.slane %v924_v42, %v6688_v30  ;;  %v5995_v25 = vpack.i.bf16 %v6906_v19, %v6867_v32 }
 0x4b8   : > { %5966 = vrot.lane.b32.xlu1 %v5965_v44, %s6387_s4  ;;  %v6005_v32 = vpack.i.bf16 %v1228_v34, %v1251_v1  ;;  %v6010_v37 = vpack.i.bf16 %v6920_v35, %v6906_v19 }
 0x4b9   : > { %5971 = vrot.lane.b32.xlu0 %v5970_v45, %s6389_s6  ;;  %v994_v52 = vrot.slane %v980_v47, %v6688_v30  ;;  %v995_v53 = vcombine.high %v987_v48, %v987_v48  ;;  %v1004_v54 = vcombine.high %v1003_v49, %v1003_v49  ;;  %v1011_v55 = vrot.slane %v1003_v49, %v6688_v30 }
 0x4ba   : > { %v1056_v2 = vrot.slane %v987_v48, %v6692_v33 }
 0x4bb   : > { %v996_v58 = vcombine.high %v994_v52, %v994_v52  ;;  %v1018_v59 = vrot.slane %v1004_v54, %v6688_v30  ;;  %v1019_v60 = vcombine.high %v1011_v55, %v1011_v55  ;;  %v1060_v61 = vrot.slane %v994_v52, %v6692_v33 }
 0x4bc   : > { %v1064_v8 = vrot.slane %v995_v53, %v6692_v33  ;;  %5976 = vrot.lane.b32.xlu1 %v5975_v56, %s6393_s8  ;;  %v1072_v10 = vrot.slane %v1011_v55, %v6692_v33 }
 0x4bd   : > { %5981 = vrot.lane.b32.xlu0 %v5980_v57, %s6392_s7  ;;  %v1020_v9 = vcombine.high %v1018_v59, %v1018_v59  ;;  %v1068_v0 = vrot.slane %v996_v58, %v6692_v33  ;;  %v1076_v11 = vrot.slane %v1018_v59, %v6692_v33  ;;  %v1146_v12 = vcombine.low %v1056_v2, %v1060_v61 }
 0x4be   : > { %v1080_v14 = vrot.slane %v1019_v60, %v6692_v33 }
 0x4bf   : > { %v1084_v15 = vrot.slane %v1020_v9, %v6692_v33  ;;  %v1147_v16 = vcombine.low %v1064_v8, %v1068_v0  ;;  %v1163_v17 = vcombine.low %v1072_v10, %v1076_v11  ;;  %v1154_v21 = vrot.slane %v1146_v12, %v6663_v63  ;;  %v1249_v8 = vld [vmem:[#allocation4 + $0x90] sm:$0xff]  ;;  %v1193_v12 = vld [vmem:[#allocation4] sm:$0xff] }
 0x4c0   : > { %5986 = vrot.lane.b32.xlu1 %v5985_v13, %s6394_s9  ;;  %v1257_v9 = vld [vmem:[#allocation4 + $0x91] sm:$0xff] }
 0x4c1   : > { %5991 = vrot.lane.b32.xlu0 %v5985_v13, %s6382_s15  ;;  %v1161_v23 = vrot.slane %v1147_v16, %v6663_v63  ;;  %v1164_v24 = vcombine.low %v1080_v14, %v1084_v15  ;;  %v1171_v29 = vrot.slane %v1163_v17, %v6663_v63 }
 0x4c3   : > { %v1162_v28 = vcombine.low %v1154_v21, %v1161_v23  ;;  %v1178_v31 = vrot.slane %v1164_v24, %v6663_v63 }
 0x4c4   : > { %5996 = vrot.lane.b32.xlu1 %v5995_v25, %s6384_s30 }
 0x4c5   : > { %6001 = vrot.lane.b32.xlu0 %v6000_v26, %s6387_s4  ;;  %v1179_v36 = vcombine.low %v1171_v29, %v1178_v31  ;;  %1189 = vst.msk [vmem:[#allocation4 + $0x51] sm:$0xff] %vm292_vm4, %v1162_v28  ;;  %1190 = vst.msk [vmem:[#allocation4 + $0x61] sm:$0xff] %vm292_vm4, %v1162_v28 }
 0x4c7   : > { %1191 = vst.msk [vmem:[#allocation4 + $0x71] sm:$0xff] %vm292_vm4, %v1179_v36  ;;  %1192 = vst.msk [vmem:[#allocation4 + $0x81] sm:$0xff] %vm292_vm4, %v1179_v36 }
 0x4c8   : > { %6006 = vrot.lane.b32.xlu1 %v6005_v32, %s6389_s6 }
 0x4c9   : > { %6011 = vrot.lane.b32.xlu0 %v6010_v37, %s6393_s8 }
 0x4cc   : > { %v6932_v62 = vld [vmem:[#allocation4 + $0x50] sm:$0xff]  ;;  %v6942_v45 = vld [vmem:[#allocation4 + $0x60] sm:$0xff] }
 0x4cd   : > { %v1253_v38 = vld [vmem:[#allocation4 + $0x51] sm:$0xff]  ;;  %v6015_v41 = vpack.i.bf16 %v6932_v62, %v6908_v20  ;;  %v1230_v46 = vld [vmem:[#allocation4 + $0x61] sm:$0xff]  ;;  %v6035_v47 = vpack.i.bf16 %v6942_v45, %v6932_v62 }
 0x4ce   : > { %v6020_v42 = vpack.i.bf16 %v1253_v38, %v1228_v34  ;;  %v6936_v43 = vld [vmem:[#allocation4 + $0x52] sm:$0xff]  ;;  %v6040_v48 = vpack.i.bf16 %v1230_v46, %v1253_v38  ;;  %v6948_v49 = vld [vmem:[#allocation4 + $0x62] sm:$0xff] }
 0x4cf   : > { %6016 = vrot.lane.b32.xlu1 %v6015_v41, %s6392_s7  ;;  %v6030_v44 = vpack.i.bf16 %v6936_v43, %v6920_v35  ;;  %v6950_v51 = vld [vmem:[#allocation4 + $0x70] sm:$0xff]  ;;  %v6045_v52 = vpack.i.bf16 %v6948_v49, %v6936_v43  ;;  %v1224_v57 = vld [vmem:[#allocation4 + $0x80] sm:$0xff] }
 0x4d0   : > { %6021 = vrot.lane.b32.xlu0 %v6020_v42, %s6394_s9  ;;  %v6050_v53 = vpack.i.bf16 %v6950_v51, %v6942_v45  ;;  %v1255_v54 = vld [vmem:[#allocation4 + $0x71] sm:$0xff]  ;;  %v6070_v59 = vpack.i.bf16 %v1224_v57, %v6950_v51  ;;  %v1232_v60 = vld [vmem:[#allocation4 + $0x81] sm:$0xff]  ;;  %v6085_v0 = vpack.i.bf16 %v1249_v8, %v1224_v57 }
 0x4d1   : > { %v6055_v55 = vpack.i.bf16 %v1255_v54, %v1230_v46  ;;  %v6960_v56 = vld [vmem:[#allocation4 + $0x72] sm:$0xff]  ;;  %v6967_v61 = vld [vmem:[#allocation4 + $0x82] sm:$0xff]  ;;  %v6075_v1 = vpack.i.bf16 %v1232_v60, %v1255_v54  ;;  %v6090_v10 = vpack.i.bf16 %v1257_v9, %v1232_v60 }
 0x4d2   : > { %v6065_v58 = vpack.i.bf16 %v6960_v56, %v6948_v49  ;;  %v6080_v2 = vpack.i.bf16 %v6967_v61, %v6960_v56 }
 0x4d3   : > { %6026 = vrot.lane.b32.xlu1 %v6020_v42, %s6382_s15 }
 0x4d4   : > { %6031 = vrot.lane.b32.xlu0 %v6030_v44, %s6384_s30 }
 0x4d7   : > { %6036 = vrot.lane.b32.xlu1 %v6035_v47, %s6387_s4 }
 0x4d8   : > { %6041 = vrot.lane.b32.xlu0 %v6040_v48, %s6389_s6 }
 0x4db   : > { %6046 = vrot.lane.b32.xlu1 %v6045_v52, %s6393_s8 }
 0x4dc   : > { %6051 = vrot.lane.b32.xlu0 %v6050_v53, %s6392_s7 }
 0x4df   : > { %6056 = vrot.lane.b32.xlu1 %v6055_v55, %s6394_s9 }
 0x4e0   : > { %6061 = vrot.lane.b32.xlu0 %v6055_v55, %s6382_s15 }
 0x4e3   : > { %6066 = vrot.lane.b32.xlu1 %v6065_v58, %s6384_s30 }
 0x4e4   : > { %6071 = vrot.lane.b32.xlu0 %v6070_v59, %s6387_s4 }
 0x4e7   : > { %6076 = vrot.lane.b32.xlu1 %v6075_v1, %s6389_s6 }
 0x4e8   : > { %6081 = vrot.lane.b32.xlu0 %v6080_v2, %s6393_s8 }
 0x4eb   : > { %6086 = vrot.lane.b32.xlu1 %v6085_v0, %s6392_s7 }
 0x4ec   : > { %6091 = vrot.lane.b32.xlu0 %v6090_v10, %s6394_s9 }
 0x526   : > { %v5962_v11 = vpop.permute.xlu1 %5961 }
 0x527   : > { %v5957_v13 = vpop.permute.xlu0 %5956  ;;  %v5963_v15 = vunpack.i.l.bf16 %v5962_v11  ;;  %v5964_v25 = vunpack.i.h.bf16 %v5962_v11 }
 0x528   : > { %v5958_v14 = vunpack.i.l.bf16 %v5957_v13  ;;  %v5959_v16 = vunpack.i.h.bf16 %v5957_v13 }
 0x52a   : > { %v1490_v17 = vsel %vm292_vm4, %v1193_v12, %v5958_v14  ;;  %v5967_v21 = vpop.permute.xlu1 %5966  ;;  %v1491_v29 = vsel %vm292_vm4, %v6872_v39, %v5959_v16 }
 0x52b   : > { %v5972_v23 = vpop.permute.xlu0 %5971  ;;  %v5968_v24 = vunpack.i.l.bf16 %v5967_v21  ;;  %v1498_v26 = vsel %vm298_vm7, %v1490_v17, %v5963_v15  ;;  %v5969_v31 = vunpack.i.h.bf16 %v5967_v21  ;;  %v1499_v38 = vsel %vm298_vm7, %v1491_v29, %v5964_v25 }
 0x52c   : > { %v5973_v28 = vunpack.i.l.bf16 %v5972_v23  ;;  %v5974_v41 = vunpack.i.h.bf16 %v5972_v23 }
 0x52d   : > { %v1506_v34 = vsel %vm304_vm9, %v1498_v26, %v5968_v24  ;;  %v1507_v46 = vsel %vm304_vm9, %v1499_v38, %v5969_v31 }
 0x52e   : > { %v5977_v36 = vpop.permute.xlu1 %5976  ;;  %v1514_v42 = vsel %vm310_vm11, %v1506_v34, %v5973_v28  ;;  %v1515_v54 = vsel %vm310_vm11, %v1507_v46, %v5974_v41 }
 0x52f   : > { %v5982_v32 = vpop.permute.xlu0 %5981  ;;  %v5978_v37 = vunpack.i.l.bf16 %v5977_v36  ;;  %v5979_v47 = vunpack.i.h.bf16 %v5977_v36 }
 0x530   : > { %v5983_v44 = vunpack.i.l.bf16 %v5982_v32  ;;  %v5984_v55 = vunpack.i.h.bf16 %v5982_v32 }
 0x531   : > { %v1523_v48 = vsel %vm1522_vm5, %v1514_v42, %v5978_v37  ;;  %v1524_v60 = vsel %vm1522_vm5, %v1515_v54, %v5979_v47 }
 0x532   : > { %v5987_v52 = vpop.permute.xlu1 %5986  ;;  %v1531_v57 = vsel %vm672_vm2, %v1523_v48, %v5983_v44  ;;  %v1532_v0 = vsel %vm672_vm2, %v1524_v60, %v5984_v55 }
 0x533   : > { %v5992_v39 = vpop.permute.xlu0 %5991  ;;  %v5988_v53 = vunpack.i.l.bf16 %v5987_v52  ;;  %v5989_v58 = vunpack.i.h.bf16 %v5987_v52 }
 0x534   : > { %v5993_v8 = vunpack.i.l.bf16 %v5992_v39  ;;  %v5994_v10 = vunpack.i.h.bf16 %v5992_v39 }
 0x535   : > { %v1540_v59 = vsel %vm1539_vm13, %v1531_v57, %v5988_v53  ;;  %v1541_v11 = vsel %vm1539_vm13, %v1532_v0, %v5989_v58 }
 0x536   : > { %1637 = vmatmul.mubr.f32.vlgmr.msra.gmra.mxu0 %v1540_v59  ;;  %v5997_v1 = vpop.permute.xlu1 %5996  ;;  %v1492_v14 = vsel %vm292_vm4, %v6874_v40, %v5993_v8  ;;  %v1493_v21 = vsel %vm292_vm4, %v6884_v50, %v5994_v10 }
 0x537   : > { %v6002_v2 = vpop.permute.xlu0 %6001  ;;  %5586 = vmatprep.mubr.msk.f32.mxu0 %vm292_vm4, %v6906_v19  ;;  %v5998_v9 = vunpack.i.l.bf16 %v5997_v1  ;;  %v5999_v12 = vunpack.i.h.bf16 %v5997_v1 }
 0x538   : > { %v6003_v15 = vunpack.i.l.bf16 %v6002_v2  ;;  %v6004_v23 = vunpack.i.h.bf16 %v6002_v2 }
 0x539   : > { %v1500_v16 = vsel %vm298_vm7, %v1492_v14, %v5998_v9  ;;  %v1501_v24 = vsel %vm298_vm7, %v1493_v21, %v5999_v12 }
 0x53a   : > { %1642 = vmatmul.mubr.f32.gmra.mxu0 %v1541_v11  ;;  %v6007_v13 = vpop.permute.xlu1 %6006  ;;  %v1508_v26 = vsel %vm304_vm9, %v1500_v16, %v6003_v15  ;;  %v1509_v29 = vsel %vm304_vm9, %v1501_v24, %v6004_v23 }
 0x53b   : > { %5587 = vmatprep.mubr.msk.f32.mxu0 %vm292_vm4, %v6920_v35  ;;  %v6008_v17 = vunpack.i.l.bf16 %v6007_v13  ;;  %v6012_v19 = vpop.permute.xlu0 %6011  ;;  %v6009_v25 = vunpack.i.h.bf16 %v6007_v13 }
 0x53c   : > { %v6013_v28 = vunpack.i.l.bf16 %v6012_v19  ;;  %v6014_v31 = vunpack.i.h.bf16 %v6012_v19 }
 0x53d   : > { %v1516_v40 = vsel %vm310_vm11, %v1508_v26, %v6008_v17  ;;  %v1517_v36 = vsel %vm310_vm11, %v1509_v29, %v6009_v25 }
 0x53e   : > { %v1525_v50 = vsel %vm1522_vm5, %v1516_v40, %v6013_v28  ;;  %v1526_v48 = vsel %vm1522_vm5, %v1517_v36, %v6014_v31 }
 0x541   : > { %v6017_v35 = vpop.permute.xlu1 %6016 }
 0x542   : > { %v6022_v34 = vpop.permute.xlu0 %6021  ;;  %v6019_v32 = vunpack.i.h.bf16 %v6017_v35  ;;  %v6018_v37 = vunpack.i.l.bf16 %v6017_v35 }
 0x543   : > { %v6023_v38 = vunpack.i.l.bf16 %v6022_v34  ;;  %v6024_v42 = vunpack.i.h.bf16 %v6022_v34 }
 0x544   : > { %v1533_v41 = vsel %vm672_vm2, %v1525_v50, %v6018_v37  ;;  %v1534_v39 = vsel %vm672_vm2, %v1526_v48, %v6019_v32 }
 0x545   : > { %v6027_v44 = vpop.permute.xlu1 %6026  ;;  %v1542_v47 = vsel %vm1539_vm13, %v1533_v41, %v6023_v38  ;;  %v1543_v59 = vsel %vm1539_vm13, %v1534_v39, %v6024_v42 }
 0x546   : > { %v6032_v46 = vpop.permute.xlu0 %6031  ;;  %v6028_v52 = vunpack.i.l.bf16 %v6027_v44  ;;  %1647 = vmatmul.mubr.f32.gmra.mxu0 %v1542_v47  ;;  %v6029_v54 = vunpack.i.h.bf16 %v6027_v44 }
 0x547   : > { %v6033_v53 = vunpack.i.l.bf16 %v6032_v46  ;;  %5588 = vmatprep.mubr.msk.f32.mxu0 %vm292_vm4, %v6936_v43  ;;  %v6034_v1 = vunpack.i.h.bf16 %v6032_v46 }
 0x548   : > { %v1494_v55 = vsel %vm292_vm4, %v6908_v20, %v6028_v52  ;;  %v1495_v43 = vsel %vm292_vm4, %v6932_v62, %v6029_v54 }
 0x549   : > { %v6037_v57 = vpop.permute.xlu1 %6036  ;;  %v1502_v2 = vsel %vm298_vm7, %v1494_v55, %v6033_v53  ;;  %v1503_v12 = vsel %vm298_vm7, %v1495_v43, %v6034_v1 }
 0x54a   : > { %v6042_v58 = vpop.permute.xlu0 %6041  ;;  %v6038_v60 = vunpack.i.l.bf16 %v6037_v57  ;;  %1652 = vmatmul.mubr.f32.gmra.mxu0 %v1543_v59  ;;  %v6039_v9 = vunpack.i.h.bf16 %v6037_v57 }
 0x54b   : > { %v6043_v8 = vunpack.i.l.bf16 %v6042_v58  ;;  %5589 = vmatprep.mubr.msk.f32.mxu0 %vm292_vm4, %v6948_v49  ;;  %v6044_v13 = vunpack.i.h.bf16 %v6042_v58 }
 0x54c   : > { %v1510_v0 = vsel %vm304_vm9, %v1502_v2, %v6038_v60  ;;  %v1511_v16 = vsel %vm304_vm9, %v1503_v12, %v6039_v9 }
 0x54d   : > { %v6047_v20 = vpop.permute.xlu1 %6046  ;;  %v1518_v14 = vsel %vm310_vm11, %v1510_v0, %v6043_v8  ;;  %v1519_v23 = vsel %vm310_vm11, %v1511_v16, %v6044_v13 }
 0x54e   : > { %v6052_v10 = vpop.permute.xlu0 %6051  ;;  %v6048_v11 = vunpack.i.l.bf16 %v6047_v20  ;;  %v6049_v17 = vunpack.i.h.bf16 %v6047_v20 }
 0x54f   : > { %v6053_v15 = vunpack.i.l.bf16 %v6052_v10  ;;  %v6054_v24 = vunpack.i.h.bf16 %v6052_v10 }
 0x550   : > { %v1527_v49 = vsel %vm1522_vm5, %v1518_v14, %v6048_v11  ;;  %v1528_v29 = vsel %vm1522_vm5, %v1519_v23, %v6049_v17 }
 0x551   : > { %v6057_v19 = vpop.permute.xlu1 %6056  ;;  %v1535_v26 = vsel %vm672_vm2, %v1527_v49, %v6053_v15  ;;  %v1536_v50 = vsel %vm672_vm2, %v1528_v29, %v6054_v24 }
 0x552   : > { %v6062_v21 = vpop.permute.xlu0 %6061  ;;  %v6058_v62 = vunpack.i.l.bf16 %v6057_v19  ;;  %v6059_v28 = vunpack.i.h.bf16 %v6057_v19 }
 0x553   : > { %v6063_v25 = vunpack.i.l.bf16 %v6062_v21  ;;  %v6064_v31 = vunpack.i.h.bf16 %v6062_v21 }
 0x554   : > { %v1544_v40 = vsel %vm1539_vm13, %v1535_v26, %v6058_v62  ;;  %v1545_v42 = vsel %vm1539_vm13, %v1536_v50, %v6059_v28 }
 0x555   : > { %v6067_v35 = vpop.permute.xlu1 %6066  ;;  %1657 = vmatmul.mubr.f32.gmra.mxu0 %v1544_v40  ;;  %v1496_v37 = vsel %vm292_vm4, %v6942_v45, %v6063_v25  ;;  %v1497_v44 = vsel %vm292_vm4, %v6950_v51, %v6064_v31 }
 0x556   : > { %v6072_v34 = vpop.permute.xlu0 %6071  ;;  %v6069_v36 = vunpack.i.h.bf16 %v6067_v35  ;;  %v6068_v32 = vunpack.i.l.bf16 %v6067_v35  ;;  %5590 = vmatprep.mubr.msk.f32.mxu0 %vm292_vm4, %v6960_v56 }
 0x557   : > { %v6073_v38 = vunpack.i.l.bf16 %v6072_v34  ;;  %v6074_v46 = vunpack.i.h.bf16 %v6072_v34 }
 0x558   : > { %v1504_v41 = vsel %vm298_vm7, %v1496_v37, %v6068_v32  ;;  %v1505_v52 = vsel %vm298_vm7, %v1497_v44, %v6069_v36 }
 0x559   : > { %v6077_v47 = vpop.permute.xlu1 %6076  ;;  %1662 = vmatmul.mubr.f32.gmra.mxu0 %v1545_v42  ;;  %v1512_v45 = vsel %vm304_vm9, %v1504_v41, %v6073_v38  ;;  %v1513_v55 = vsel %vm304_vm9, %v1505_v52, %v6074_v46 }
 0x55a   : > { %v6082_v48 = vpop.permute.xlu0 %6081  ;;  %v6079_v56 = vunpack.i.h.bf16 %v6077_v47  ;;  %v6078_v39 = vunpack.i.l.bf16 %v6077_v47  ;;  %5591 = vmatprep.mubr.msk.f32.mxu0 %vm292_vm4, %v6967_v61  ;;  %v1265_v61 = vld [vmem:[#allocation4 + $0x92] sm:$0xff] }
 0x55b   : > { %v6083_v53 = vunpack.i.l.bf16 %v6082_v48  ;;  %v6084_v57 = vunpack.i.h.bf16 %v6082_v48 }
 0x55c   : > { %v1520_v54 = vsel %vm310_vm11, %v1512_v45, %v6078_v39  ;;  %v1521_v59 = vsel %vm310_vm11, %v1513_v55, %v6079_v56 }
 0x55d   : > { %v6087_v51 = vpop.permute.xlu1 %6086  ;;  %v1529_v8 = vsel %vm1522_vm5, %v1520_v54, %v6083_v53  ;;  %v1530_v20 = vsel %vm1522_vm5, %v1521_v59, %v6084_v57 }
 0x55e   : > { %v6092_v58 = vpop.permute.xlu0 %6091  ;;  %v6089_v60 = vunpack.i.h.bf16 %v6087_v51  ;;  %v6088_v1 = vunpack.i.l.bf16 %v6087_v51 }
 0x55f   : > { %v6093_v2 = vunpack.i.l.bf16 %v6092_v58  ;;  %v6094_v9 = vunpack.i.h.bf16 %v6092_v58 }
 0x560   : > { %v1537_v43 = vsel %vm672_vm2, %v1529_v8, %v6088_v1  ;;  %v1538_v10 = vsel %vm672_vm2, %v1530_v20, %v6089_v60 }
 0x561   : > { %v1546_v0 = vsel %vm1539_vm13, %v1537_v43, %v6093_v2  ;;  %v1547_v11 = vsel %vm1539_vm13, %v1538_v10, %v6094_v9 }
 0x562   : > { %1667 = vmatmul.mubr.f32.gmra.mxu0 %v1546_v0 }
 0x563   : > { %5592 = vmatprep.mubr.msk.f32.mxu0 %vm292_vm4, %v1265_v61 }
 0x566   : > { %1672 = vmatmul.mubr.f32.gmra.mxu0 %v1547_v11 }
 0x5f6   : > { %v7053_v12 = vpop.f32.mrf.mxu0 }
 0x5f7   : > { %v1677_v13 = vmul.f32 %v7053_v12, %v7053_v12 }
 0x5f8   : > { %v1640_v14 = vpop.f32.mrf.mxu0 }
 0x5f9   : > { %v1685_v15 = vsel %vm289_vm3, %v1677_v13, 0.0 }
 0x5fa   : > { %v7058_v16 = vpop.f32.mrf.mxu0  ;;  %1686 = vadd.xlane.f32.xlu1 %v1685_v15 }
 0x5fb   : > { %v1678_v17 = vmul.f32 %v7058_v16, %v7058_v16 }
 0x5fc   : > { %v1645_v49 = vpop.f32.mrf.mxu0 }
 0x5fd   : > { %v1688_v19 = vsel %vm289_vm3, %v1678_v17, 0.0 }
 0x5fe   : > { %1689 = vadd.xlane.f32.xlu0 %v1688_v19 }
 0x606   : > { %v7063_v21 = vpop.f32.mrf.mxu0 }
 0x607   : > { %v1679_v62 = vmul.f32 %v7063_v21, %v7063_v21 }
 0x608   : > { %v1650_v23 = vpop.f32.mrf.mxu0 }
 0x609   : > { %v1691_v24 = vsel %vm289_vm3, %v1679_v62, 0.0 }
 0x60a   : > { %1692 = vadd.xlane.f32.xlu0 %v1691_v24  ;;  %v7068_v25 = vpop.f32.mrf.mxu0 }
 0x60b   : > { %v1680_v26 = vmul.f32 %v7068_v25, %v7068_v25 }
 0x60c   : > { %v1655_v28 = vpop.f32.mrf.mxu0 }
 0x60d   : > { %v1694_v40 = vsel %vm289_vm3, %v1680_v26, 0.0 }
 0x60e   : > { %1695 = vadd.xlane.f32.xlu0 %v1694_v40 }
 0x615   : > { %v7073_v29 = vpop.f32.mrf.mxu0 }
 0x616   : > { %v1681_v31 = vmul.f32 %v7073_v29, %v7073_v29 }
 0x617   : > { %v1660_v35 = vpop.f32.mrf.mxu0 }
 0x618   : > { %v1697_v34 = vsel %vm289_vm3, %v1681_v31, 0.0 }
 0x619   : > { %1698 = vadd.xlane.f32.xlu1 %v1697_v34  ;;  %v7078_v36 = vpop.f32.mrf.mxu0 }
 0x61a   : > { %v1682_v32 = vmul.f32 %v7078_v36, %v7078_v36 }
 0x61b   : > { %v1665_v37 = vpop.f32.mrf.mxu0 }
 0x61c   : > { %v1700_v38 = vsel %vm289_vm3, %v1682_v32, 0.0 }
 0x61d   : > { %1701 = vadd.xlane.f32.xlu0 %v1700_v38 }
 0x622   : > { %v7083_v50 = vpop.f32.mrf.mxu0 }
 0x623   : > { %v1683_v41 = vmul.f32 %v7083_v50, %v7083_v50 }
 0x624   : > { %v1670_v42 = vpop.f32.mrf.mxu0 }
 0x625   : > { %v1703_v44 = vsel %vm289_vm3, %v1683_v41, 0.0 }
 0x626   : > { %1704 = vadd.xlane.f32.xlu1 %v1703_v44  ;;  %v7088_v46 = vpop.f32.mrf.mxu0 }
 0x627   : > { %v1684_v47 = vmul.f32 %v7088_v46, %v7088_v46 }
 0x628   : > { %v1675_v48 = vpop.f32.mrf.mxu0 }
 0x629   : > { %v1706_v52 = vsel %vm289_vm3, %v1684_v47, 0.0 }
 0x62a   : > { %1707 = vadd.xlane.f32.xlu0 %v1706_v52 }
 0x683   : > { %v1687_v56 = vpop.xlane.xlu1 %1686 }
 0x684   : > { %6109 = vrsqrt.f32 %v1687_v56  ;;  %vm1711_vm2 = vcmp.eq.f32.partialorder %v1687_v56, inf  ;;  %v1714_v54 = vand.u32 2147483648, %v1687_v56  ;;  %vm1713_vm14 = vcmp.eq.f32.partialorder %v1687_v56, 0.0 }
 0x687   : > { %v1690_v39 = vpop.xlane.xlu0 %1689 }
 0x688   : > { %6111 = vrsqrt.f32 %v1690_v39  ;;  %vm1718_vm15 = vcmp.eq.f32.partialorder %v1690_v39, inf  ;;  %v1721_v1 = vand.u32 2147483648, %v1690_v39  ;;  %vm1720_vm0 = vcmp.eq.f32.partialorder %v1690_v39, 0.0 }
 0x691   : > { %v6110_v45 = vpop.eup %6109 }
 0x692   : > { %v1710_v53 = vmul.f32 %v6110_v45, %v1687_v56 }
 0x693   : > { %v1693_v55 = vpop.xlane.xlu0 %1692 }
 0x694   : > { %v1712_v57 = vsel %vm1711_vm2, %v1687_v56, %v1710_v53  ;;  %6113 = vrsqrt.f32 %v1693_v55  ;;  %vm1725_vm1 = vcmp.eq.f32.partialorder %v1693_v55, inf  ;;  %v1728_v11 = vand.u32 2147483648, %v1693_v55 }
 0x695   : > { %v6112_v51 = vpop.eup %6111  ;;  %v1715_v58 = vsel %vm1713_vm14, %v1714_v54, %v1712_v57  ;;  %vm1727_vm5 = vcmp.eq.f32.partialorder %v1693_v55, 0.0 }
 0x696   : > { %v1765_v59 = vadd.f32 1e-08, %v1715_v58  ;;  %v1717_v60 = vmul.f32 %v6112_v51, %v1690_v39 }
 0x697   : > { %v1696_v2 = vpop.xlane.xlu0 %1695 }
 0x698   : > { %6115 = vrcp.f32 %v1765_v59  ;;  %v1719_v8 = vsel %vm1718_vm15, %v1690_v39, %v1717_v60  ;;  %vm1732_vm13 = vcmp.eq.f32.partialorder %v1696_v2, inf  ;;  %v1735_v62 = vand.u32 2147483648, %v1696_v2 }
 0x699   : > { %v1722_v43 = vsel %vm1720_vm0, %v1721_v1, %v1719_v8  ;;  %6117 = vrsqrt.f32 %v1696_v2  ;;  %vm1734_vm2 = vcmp.eq.f32.partialorder %v1696_v2, 0.0 }
 0x69a   : > { %v1766_v61 = vadd.f32 1e-08, %v1722_v43 }
 0x69c   : > { %6119 = vrcp.f32 %v1766_v61 }
 0x6a1   : > { %v6114_v9 = vpop.eup %6113 }
 0x6a2   : > { %v1724_v0 = vmul.f32 %v6114_v9, %v1693_v55  ;;  %v7093_v20 = vpop.xlane.xlu1 %1698 }
 0x6a3   : > { %6121 = vrsqrt.f32 %v7093_v20  ;;  %vm1739_vm14 = vcmp.eq.f32.partialorder %v7093_v20, inf  ;;  %v1742_v57 = vand.u32 2147483648, %v7093_v20  ;;  %vm1741_vm15 = vcmp.eq.f32.partialorder %v7093_v20, 0.0 }
 0x6a4   : > { %v1726_v10 = vsel %vm1725_vm1, %v1693_v55, %v1724_v0 }
 0x6a5   : > { %v6116_v13 = vpop.eup %6115  ;;  %v1729_v17 = vsel %vm1727_vm5, %v1728_v11, %v1726_v10 }
 0x6a6   : > { %v6118_v14 = vpop.eup %6117  ;;  %v1774_v15 = vmul.f32 2.828427, %v6116_v13  ;;  %v1767_v24 = vadd.f32 1e-08, %v1729_v17  ;;  %v7098_v37 = vpop.xlane.xlu0 %1701 }
 0x6a7   : > { %v1731_v49 = vmul.f32 %v6118_v14, %v1696_v2  ;;  %v1749_v51 = vand.u32 2147483648, %v7098_v37  ;;  %vm1746_vm0 = vcmp.eq.f32.partialorder %v7098_v37, inf  ;;  %vm1748_vm1 = vcmp.eq.f32.partialorder %v7098_v37, 0.0 }
 0x6a8   : > { %v1789_v19 = vmul.f32 %v1774_v15, %v7053_v12  ;;  %6123 = vrcp.f32 %v1767_v24 }
 0x6a9   : > { %v6120_v23 = vpop.eup %6119  ;;  %v1733_v26 = vsel %vm1732_vm13, %v1696_v2, %v1731_v49 }
 0x6aa   : > { %v1797_v28 = vmul.f32 0.2, %v1789_v19  ;;  %v1776_v40 = vmul.f32 2.828427, %v6120_v23  ;;  %v1736_v31 = vsel %vm1734_vm2, %v1735_v62, %v1733_v26 }
 0x6ab   : > { %v1768_v35 = vadd.f32 1e-08, %v1736_v31 }
 0x6ac   : > { %v1805_v34 = vmax.f32 %v1789_v19, %v1797_v28  ;;  %v1790_v32 = vmul.f32 %v1776_v40, %v7058_v16 }
 0x6ad   : > { %6125 = vrcp.f32 %v1768_v35 }
 0x6ae   : > { %v1830_v38 = vcombine.high %v1805_v34, %v1805_v34  ;;  %v1837_v41 = vrot.slane %v1805_v34, %v6688_v30  ;;  %v1798_v12 = vmul.f32 0.2, %v1790_v32  ;;  %6127 = vrsqrt.f32 %v7098_v37 }
 0x6af   : > { %v7102_v42 = vpop.xlane.xlu1 %1704 }
 0x6b0   : > { %v1844_v44 = vrot.slane %v1830_v38, %v6688_v30  ;;  %v1845_v47 = vcombine.high %v1837_v41, %v1837_v41  ;;  %v1853_v48 = vrot.slane %v1837_v41, %v6688_v30  ;;  %v1806_v52 = vmax.f32 %v1790_v32, %v1798_v12  ;;  %v6122_v56 = vpop.eup %6121 }
 0x6b1   : > { %6129 = vrsqrt.f32 %v7102_v42  ;;  %v1738_v1 = vmul.f32 %v6122_v56, %v7093_v20  ;;  %vm1753_vm5 = vcmp.eq.f32.partialorder %v7102_v42, inf  ;;  %vm1755_vm13 = vcmp.eq.f32.partialorder %v7102_v42, 0.0 }
 0x6b2   : > { %v1846_v16 = vcombine.high %v1844_v44, %v1844_v44  ;;  %v1860_v39 = vrot.slane %v1844_v44, %v6688_v30  ;;  %v1867_v45 = vrot.slane %v1845_v47, %v6688_v30  ;;  %v1875_v53 = vcombine.high %v1853_v48, %v1853_v48 }
 0x6b3   : > { %v1879_v54 = vcombine.high %v1806_v52, %v1806_v52  ;;  %v1886_v55 = vrot.slane %v1806_v52, %v6688_v30  ;;  %v2225_v8 = vrot.slane %v1853_v48, %v6692_v33  ;;  %v1740_v23 = vsel %vm1739_vm14, %v7093_v20, %v1738_v1 }
 0x6b4   : > { %v1874_v58 = vrot.slane %v1846_v16, %v6688_v30  ;;  %v1877_v59 = vcombine.high %v1867_v45, %v1867_v45  ;;  %v2229_v60 = vrot.slane %v1867_v45, %v6692_v33  ;;  %v1876_v2 = vcombine.high %v1860_v39, %v1860_v39 }
 0x6b5   : > { %v1893_v43 = vrot.slane %v1879_v54, %v6688_v30  ;;  %v1894_v61 = vcombine.high %v1886_v55, %v1886_v55  ;;  %v2233_v0 = vrot.slane %v1875_v53, %v6692_v33  ;;  %v1902_v15 = vrot.slane %v1886_v55, %v6688_v30  ;;  %v6124_v31 = vpop.eup %6123 }
 0x6b6   : > { %v1878_v9 = vcombine.high %v1874_v58, %v1874_v58  ;;  %v2237_v10 = vrot.slane %v1877_v59, %v6692_v33  ;;  %v2245_v11 = vrot.slane %v1874_v58, %v6692_v33  ;;  %v2521_v13 = vcombine.low %v2225_v8, %v2229_v60 }
 0x6b7   : > { %v1895_v14 = vcombine.high %v1893_v43, %v1893_v43  ;;  %v1909_v17 = vrot.slane %v1893_v43, %v6688_v30  ;;  %v1916_v62 = vrot.slane %v1894_v61, %v6688_v30  ;;  %v2241_v24 = vrot.slane %v1860_v39, %v6692_v33 }
 0x6b8   : > { %v2253_v49 = vrot.slane %v1878_v9, %v6692_v33  ;;  %v2522_v19 = vcombine.low %v2233_v0, %v2237_v10  ;;  %v1924_v28 = vcombine.high %v1902_v15, %v1902_v15  ;;  %v2249_v35 = vrot.slane %v1876_v2, %v6692_v33 }
 0x6b9   : > { %v1923_v26 = vrot.slane %v1895_v14, %v6688_v30  ;;  %v1925_v40 = vcombine.high %v1909_v17, %v1909_v17  ;;  %v2529_v34 = vrot.slane %v2521_v13, %v6663_v63  ;;  %v1926_v38 = vcombine.high %v1916_v62, %v1916_v62 }
 0x6ba   : > { %v2536_v32 = vrot.slane %v2522_v19, %v6663_v63  ;;  %v6126_v41 = vpop.eup %6125  ;;  %v2538_v12 = vcombine.low %v2241_v24, %v2245_v11  ;;  %v2257_v47 = vrot.slane %v1902_v15, %v6692_v33  ;;  %v2261_v48 = vrot.slane %v1916_v62, %v6692_v33  ;;  %v7161_v24 = vpop.xlane.xlu0 %1707 }
 0x6bb   : > { %v1927_v44 = vcombine.high %v1923_v26, %v1923_v26  ;;  %v6128_v52 = vpop.eup %6127  ;;  %v2539_v16 = vcombine.low %v2249_v35, %v2253_v49  ;;  %v2265_v39 = vrot.slane %v1924_v28, %v6692_v33  ;;  %v2269_v45 = vrot.slane %v1926_v38, %v6692_v33 }
 0x6bc   : > { %v2537_v56 = vcombine.low %v2529_v34, %v2536_v32  ;;  %v2277_v53 = vrot.slane %v1923_v26, %v6692_v33  ;;  %v2281_v54 = vrot.slane %v1925_v40, %v6692_v33  ;;  %v2555_v58 = vcombine.low %v2257_v47, %v2261_v48 }
 0x6bd   : > { %v2285_v55 = vrot.slane %v1927_v44, %v6692_v33  ;;  %v2556_v60 = vcombine.low %v2265_v39, %v2269_v45  ;;  %v1778_v1 = vmul.f32 2.828427, %v6124_v31  ;;  %v1780_v2 = vmul.f32 2.828427, %v6126_v41 }
 0x6be   : > { %v6130_v59 = vpop.eup %6129  ;;  %2810 = vst.msk [vmem:[#allocation5 + $0x19] sm:$0xff] %vm289_vm3, %v2537_v56  ;;  %2812 = vst.msk [vmem:[#allocation5 + $0x31] sm:$0xff] %vm289_vm3, %v2537_v56  ;;  %v1743_v8 = vsel %vm1741_vm15, %v1742_v57, %v1740_v23  ;;  %v2273_v43 = vrot.slane %v1909_v17, %v6692_v33  ;;  %v2563_v61 = vrot.slane %v2555_v58, %v6663_v63  ;;  %v1756_v28 = vand.u32 2147483648, %v7102_v42 }
 0x6bf   : > { %v2573_v9 = vcombine.low %v2281_v54, %v2285_v55  ;;  %v1769_v0 = vadd.f32 1e-08, %v1743_v8  ;;  %v2570_v10 = vrot.slane %v2556_v60, %v6663_v63  ;;  %v1791_v11 = vmul.f32 %v1778_v1, %v7063_v21 }
 0x6c0   : > { %v1792_v13 = vmul.f32 %v1780_v2, %v7068_v25  ;;  %v1745_v14 = vmul.f32 %v6128_v52, %v7098_v37  ;;  %v2546_v15 = vrot.slane %v2538_v12, %v6663_v63  ;;  %v2553_v49 = vrot.slane %v2539_v16, %v6663_v63 }
 0x6c1   : > { %v2572_v20 = vcombine.low %v2273_v43, %v2277_v53  ;;  %v1752_v57 = vmul.f32 %v6130_v59, %v7102_v42  ;;  %v2571_v17 = vcombine.low %v2563_v61, %v2570_v10  ;;  %v1799_v19 = vmul.f32 0.2, %v1791_v11 }
 0x6c2   : > { %v1800_v62 = vmul.f32 0.2, %v1792_v13  ;;  %v1747_v23 = vsel %vm1746_vm0, %v7098_v37, %v1745_v14  ;;  %v2587_v21 = vrot.slane %v2573_v9, %v6663_v63  ;;  %6131 = vrcp.f32 %v1769_v0 }
 0x6c3   : > { %v1750_v25 = vsel %vm1748_vm1, %v1749_v51, %v1747_v23  ;;  %v1754_v26 = vsel %vm1753_vm5, %v7102_v42, %v1752_v57  ;;  %2814 = vst.msk [vmem:[#allocation5 + $0x49] sm:$0xff] %vm289_vm3, %v2571_v17  ;;  %2816 = vst.msk [vmem:[#allocation5 + $0x61] sm:$0xff] %vm289_vm3, %v2571_v17  ;;  %v1807_v40 = vmax.f32 %v1791_v11, %v1799_v19  ;;  %6133 = vrsqrt.f32 %v7161_v24 }
 0x6c4   : > { %v1808_v31 = vmax.f32 %v1792_v13, %v1800_v62  ;;  %v1770_v35 = vadd.f32 1e-08, %v1750_v25  ;;  %v2580_v34 = vrot.slane %v2572_v20, %v6663_v63  ;;  %v1757_v37 = vsel %vm1755_vm13, %v1756_v28, %v1754_v26 }
 0x6c5   : > { %v7178_v51 = vld [vmem:[#allocation5 + $0x18] sm:$0xff]  ;;  %v2554_v38 = vcombine.low %v2546_v15, %v2553_v49  ;;  %v1928_v41 = vcombine.high %v1807_v40, %v1807_v40  ;;  %v1935_v12 = vrot.slane %v1807_v40, %v6688_v30  ;;  %v1771_v48 = vadd.f32 1e-08, %v1757_v37  ;;  %v7197_v1 = vld [vmem:[#allocation5 + $0x30] sm:$0xff] }
 0x6c6   : > { %v2876_v32 = vld [vmem:[#allocation5 + $0x19] sm:$0xff]  ;;  %v1977_v44 = vcombine.high %v1808_v31, %v1808_v31  ;;  %v1984_v47 = vrot.slane %v1808_v31, %v6688_v30  ;;  %3419 = vrot.lane.b32.xlu1 %v7178_v51, %s6383_s29  ;;  %6135 = vrcp.f32 %v1770_v35  ;;  %v2588_v42 = vcombine.low %v2580_v34, %v2587_v21  ;;  %v2878_v20 = vld [vmem:[#allocation5 + $0x31] sm:$0xff] }
 0x6c7   : > { %3167 = vrot.lane.b32.xlu0 %v2876_v32, %s6381_s14  ;;  %2811 = vst.msk [vmem:[#allocation5 + $0x21] sm:$0xff] %vm289_vm3, %v2554_v38  ;;  %2813 = vst.msk [vmem:[#allocation5 + $0x39] sm:$0xff] %vm289_vm3, %v2554_v38  ;;  %v1942_v52 = vrot.slane %v1928_v41, %v6688_v30  ;;  %v1943_v56 = vcombine.high %v1935_v12, %v1935_v12  ;;  %v1951_v16 = vrot.slane %v1935_v12, %v6688_v30  ;;  %vm4764_vm15 = vcmask 31744  }
 0x6c8   : > { %v1991_v39 = vrot.slane %v1977_v44, %v6688_v30  ;;  %v1992_v45 = vcombine.high %v1984_v47, %v1984_v47  ;;  %v2000_v53 = vrot.slane %v1984_v47, %v6688_v30  ;;  %6137 = vrcp.f32 %v1771_v48  ;;  %2815 = vst.msk [vmem:[#allocation5 + $0x51] sm:$0xff] %vm289_vm3, %v2588_v42  ;;  %2817 = vst.msk [vmem:[#allocation5 + $0x69] sm:$0xff] %vm289_vm3, %v2588_v42 }
 0x6c9   : > { %v1763_v54 = vand.u32 2147483648, %v7161_v24  ;;  %v1944_v55 = vcombine.high %v1942_v52, %v1942_v52  ;;  %v1958_v58 = vrot.slane %v1942_v52, %v6688_v30  ;;  %v1965_v59 = vrot.slane %v1943_v56, %v6688_v30 }
 0x6ca   : > { %v1973_v60 = vcombine.high %v1951_v16, %v1951_v16  ;;  %3547 = vrot.lane.b32.xlu1 %v2876_v32, %s6384_s30  ;;  %v2289_v2 = vrot.slane %v1951_v16, %v6692_v33  ;;  %v1993_v8 = vcombine.high %v1991_v39, %v1991_v39  ;;  %v2007_v43 = vrot.slane %v1991_v39, %v6688_v30 }
 0x6cb   : > { %v2014_v61 = vrot.slane %v1992_v45, %v6688_v30  ;;  %3803 = vrot.lane.b32.xlu0 %v7197_v1, %s6387_s4  ;;  %v1972_v9 = vrot.slane %v1944_v55, %v6688_v30  ;;  %v1974_v0 = vcombine.high %v1958_v58, %v1958_v58  ;;  %v1975_v10 = vcombine.high %v1965_v59, %v1965_v59 }
 0x6cc   : > { %v2293_v11 = vrot.slane %v1965_v59, %v6692_v33  ;;  %v2297_v13 = vrot.slane %v1973_v60, %v6692_v33  ;;  %v2305_v14 = vrot.slane %v1958_v58, %v6692_v33  ;;  %v2021_v15 = vrot.slane %v1993_v8, %v6688_v30  ;;  %v1820_v8 = vld [vmem:[#allocation8 + $0x230] sm:$0xff] }
 0x6cd   : > { %v2022_v49 = vcombine.high %v2000_v53, %v2000_v53  ;;  %v1976_v57 = vcombine.high %v1972_v9, %v1972_v9  ;;  %v2301_v17 = vrot.slane %v1975_v10, %v6692_v33  ;;  %v2309_v19 = vrot.slane %v1972_v9, %v6692_v33 }
 0x6ce   : > { %v2313_v62 = vrot.slane %v1974_v0, %v6692_v33  ;;  %3171 = vrot.lane.b32.xlu1 %v2878_v20, %s6381_s14  ;;  %v2589_v23 = vcombine.low %v2289_v2, %v2293_v11  ;;  %v2023_v21 = vcombine.high %v2007_v43, %v2007_v43  ;;  %v2024_v25 = vcombine.high %v2014_v61, %v2014_v61  ;;  %v2971_v12 = vld [vmem:[#allocation5 + $0x21] sm:$0xff] }
 0x6cf   : > { %v2025_v26 = vcombine.high %v2021_v15, %v2021_v15  ;;  %vm1760_vm2 = vcmp.eq.f32.partialorder %v7161_v24, inf  ;;  %3423 = vrot.lane.b32.xlu0 %v7197_v1, %s6383_s29  ;;  %v2317_v28 = vrot.slane %v1976_v57, %v6692_v33  ;;  %v2590_v40 = vcombine.low %v2297_v13, %v2301_v17  ;;  %v6132_v34 = vpop.eup %6131 }
 0x6d0   : > { %v2606_v31 = vcombine.low %v2305_v14, %v2309_v19  ;;  %v2321_v35 = vrot.slane %v2000_v53, %v6692_v33  ;;  %v2597_v37 = vrot.slane %v2589_v23, %v6663_v63  ;;  %v2325_v32 = vrot.slane %v2014_v61, %v6692_v33  ;;  %v6134_v44 = vpop.eup %6133  ;;  %v1821_v53 = vld [vmem:[#allocation8 + $0x238] sm:$0xff] }
 0x6d1   : > { %v2329_v38 = vrot.slane %v2022_v49, %v6692_v33  ;;  %v2333_v41 = vrot.slane %v2024_v25, %v6692_v33  ;;  %v2604_v47 = vrot.slane %v2590_v40, %v6663_v63  ;;  %v2607_v48 = vcombine.low %v2313_v62, %v2317_v28  ;;  %5822 = vmatprep.subr.mxu1 %v1821_v53  ;;  %v1819_v49 = vld [vmem:[#allocation8 + $0x228] sm:$0xff]  ;;  %v1818_v25 = vld [vmem:[#allocation8 + $0x220] sm:$0xff]  ;;  %v3003_v28 = vld [vmem:[#allocation5 + $0x22] sm:$0xff] }
 0x6d2   : > { %v2614_v42 = vrot.slane %v2606_v31, %v6663_v63  ;;  %v2337_v52 = vrot.slane %v2007_v43, %v6692_v33  ;;  %3549 = vrot.lane.b32.xlu1 %v2971_v12, %s6384_s30  ;;  %v2341_v56 = vrot.slane %v2021_v15, %v6692_v33  ;;  %v2345_v16 = vrot.slane %v2023_v21, %v6692_v33 }
 0x6d3   : > { %v2349_v39 = vrot.slane %v2025_v26, %v6692_v33  ;;  %v2623_v45 = vcombine.low %v2321_v35, %v2325_v32  ;;  %3931 = vrot.lane.b32.xlu0 %v2878_v20, %s6388_s5  ;;  %v6136_v55 = vpop.eup %6135  ;;  %v2605_v58 = vcombine.low %v2597_v37, %v2604_v47  ;;  %v2621_v59 = vrot.slane %v2607_v48, %v6663_v63  ;;  %v1817_v37 = vld [vmem:[#allocation8 + $0x218] sm:$0xff] }
 0x6d4   : > { %v2624_v60 = vcombine.low %v2329_v38, %v2333_v41  ;;  %v1782_v2 = vmul.f32 2.828427, %v6132_v34  ;;  %v2640_v61 = vcombine.low %v2337_v52, %v2341_v56  ;;  %v1784_v0 = vmul.f32 2.828427, %v6136_v55  ;;  %5823 = vmatpush3.msra.mxu1 %v1821_v53  ;;  %v7254_v34 = vld [vmem:[#allocation5 + $0x20] sm:$0xff] }
 0x6d5   : > { %v2631_v43 = vrot.slane %v2623_v45, %v6663_v63  ;;  %v2641_v9 = vcombine.low %v2345_v16, %v2349_v39  ;;  %v6138_v10 = vpop.eup %6137  ;;  %2818 = vst.msk [vmem:[#allocation5 + $0x79] sm:$0xff] %vm289_vm3, %v2605_v58  ;;  %2820 = vst.msk [vmem:[#allocation5 + $0x91] sm:$0xff] %vm289_vm3, %v2605_v58  ;;  %v1759_v14 = vmul.f32 %v6134_v44, %v7161_v24  ;;  %5824 = vmatprep.subr.mxu1 %v1820_v8  ;;  %v1816_v44 = vld [vmem:[#allocation8 + $0x210] sm:$0xff]  ;;  %v3002_v52 = vld [vmem:[#allocation5 + $0x1a] sm:$0xff] }
 0x6d6   : > { %v2638_v11 = vrot.slane %v2624_v60, %v6663_v63  ;;  %v1793_v13 = vmul.f32 %v1782_v2, %v7073_v29  ;;  %3169 = vrot.lane.b32.xlu1 %v2971_v12, %s6381_s14  ;;  %v2622_v15 = vcombine.low %v2614_v42, %v2621_v59  ;;  %v2648_v57 = vrot.slane %v2640_v61, %v6663_v63  ;;  %v1815_v61 = vld [vmem:[#allocation8 + $0x208] sm:$0xff] }
 0x6d7   : > { %v2655_v17 = vrot.slane %v2641_v9, %v6663_v63  ;;  %v1794_v19 = vmul.f32 %v1784_v0, %v7078_v36  ;;  %v1786_v62 = vmul.f32 2.828427, %v6138_v10  ;;  %3551 = vrot.lane.b32.xlu0 %v2878_v20, %s6384_s30  ;;  %v1761_v29 = vsel %vm1760_vm2, %v7161_v24, %v1759_v14  ;;  %5825 = vmatpush3.msra.mxu1 %v1820_v8 }
 0x6d8   : > { %v2639_v23 = vcombine.low %v2631_v43, %v2638_v11  ;;  %v1801_v21 = vmul.f32 0.2, %v1793_v13  ;;  %vm1762_vm14 = vcmp.eq.f32.partialorder %v7161_v24, 0.0  ;;  %2819 = vst.msk [vmem:[#allocation5 + $0x81] sm:$0xff] %vm289_vm3, %v2622_v15  ;;  %2821 = vst.msk [vmem:[#allocation5 + $0x99] sm:$0xff] %vm289_vm3, %v2622_v15  ;;  %5826 = vmatprep.subr.mxu1 %v1819_v49  ;;  %v7276_v43 = vld [vmem:[#allocation5 + $0x38] sm:$0xff] }
 0x6d9   : > { %v1802_v26 = vmul.f32 0.2, %v1794_v19  ;;  %v1795_v36 = vmul.f32 %v1786_v62, %v7083_v50  ;;  %v1764_v20 = vsel %vm1762_vm14, %v1763_v54, %v1761_v29  ;;  %v2656_v40 = vcombine.low %v2648_v57, %v2655_v17  ;;  %5827 = vmatpush3.msra.mxu1 %v1819_v49 }
 0x6da   : > { %2822 = vst.msk [vmem:[#allocation5 + $0xa9] sm:$0xff] %vm289_vm3, %v2639_v23  ;;  %2824 = vst.msk [vmem:[#allocation5 + $0xc1] sm:$0xff] %vm289_vm3, %v2639_v23  ;;  %v1809_v31 = vmax.f32 %v1793_v13, %v1801_v21  ;;  %v1772_v35 = vadd.f32 1e-08, %v1764_v20  ;;  %3677 = vrot.lane.b32.xlu1 %v3003_v28, %s6385_s3  ;;  %5828 = vmatprep.subr.mxu1 %v1818_v25 }
 0x6db   : > { %v1810_v32 = vmax.f32 %v1794_v19, %v1802_v26  ;;  %v1803_v50 = vmul.f32 0.2, %v1795_v36  ;;  %3421 = vrot.lane.b32.xlu0 %v7254_v34, %s6383_s29  ;;  %2823 = vst.msk [vmem:[#allocation5 + $0xb1] sm:$0xff] %vm289_vm3, %v2656_v40  ;;  %2825 = vst.msk [vmem:[#allocation5 + $0xc9] sm:$0xff] %vm289_vm3, %v2656_v40  ;;  %5829 = vmatpush3.msra.mxu1 %v1818_v25  ;;  %v1814_v26 = vld [vmem:[#allocation8 + $0x200] sm:$0xff] }
 0x6dc   : > { %v2026_v24 = vcombine.high %v1809_v31, %v1809_v31  ;;  %v2033_v54 = vrot.slane %v1809_v31, %v6688_v30  ;;  %6139 = vrcp.f32 %v1772_v35  ;;  %5830 = vmatprep.subr.mxu1 %v1817_v37  ;;  %v7293_v31 = vld [vmem:[#allocation5 + $0x32] sm:$0xff] }
 0x6dd   : > { %v2075_v38 = vcombine.high %v1810_v32, %v1810_v32  ;;  %v2082_v41 = vrot.slane %v1810_v32, %v6688_v30  ;;  %v7262_v12 = vmax.f32 %v1795_v36, %v1803_v50  ;;  %5831 = vmatpush3.msra.mxu1 %v1817_v37 }
 0x6de   : > { %v2040_v47 = vrot.slane %v2026_v24, %v6688_v30  ;;  %v2041_v48 = vcombine.high %v2033_v54, %v2033_v54  ;;  %v2049_v42 = vrot.slane %v2033_v54, %v6688_v30  ;;  %3297 = vrot.lane.b32.xlu1 %v3003_v28, %s6382_s15  ;;  %5832 = vmatprep.subr.mxu1 %v1816_v44 }
 0x6df   : > { %v2089_v56 = vrot.slane %v2075_v38, %v6688_v30  ;;  %v2090_v16 = vcombine.high %v2082_v41, %v2082_v41  ;;  %v2098_v39 = vrot.slane %v2082_v41, %v6688_v30  ;;  %3675 = vrot.lane.b32.xlu0 %v3002_v52, %s6385_s3  ;;  %v2124_v8 = vcombine.high %v7262_v12, %v7262_v12 }
 0x6e0   : > { %v2042_v45 = vcombine.high %v2040_v47, %v2040_v47  ;;  %v2056_v53 = vrot.slane %v2040_v47, %v6688_v30  ;;  %v2063_v55 = vrot.slane %v2041_v48, %v6688_v30  ;;  %v2071_v58 = vcombine.high %v2049_v42, %v2049_v42  ;;  %5833 = vmatpush3.msra.mxu1 %v1816_v44 }
 0x6e1   : > { %v2091_v59 = vcombine.high %v2089_v56, %v2089_v56  ;;  %v2105_v60 = vrot.slane %v2089_v56, %v6688_v30  ;;  %v2112_v2 = vrot.slane %v2090_v16, %v6688_v30  ;;  %v2353_v13 = vrot.slane %v2049_v42, %v6692_v33  ;;  %5834 = vmatprep.subr.mxu1 %v1815_v61  ;;  %v3068_v56 = vld [vmem:[#allocation5 + $0x39] sm:$0xff]  ;;  %v1813_v16 = vld [vmem:[#allocation8 + $0x1f8] sm:$0xff] }
 0x6e2   : > { %v2070_v9 = vrot.slane %v2042_v45, %v6688_v30  ;;  %v2072_v0 = vcombine.high %v2056_v53, %v2056_v53  ;;  %v2073_v10 = vcombine.high %v2063_v55, %v2063_v55  ;;  %v2357_v11 = vrot.slane %v2063_v55, %v6692_v33  ;;  %3805 = vrot.lane.b32.xlu1 %v7276_v43, %s6387_s4 }
 0x6e3   : > { %v2361_v14 = vrot.slane %v2071_v58, %v6692_v33  ;;  %v2369_v15 = vrot.slane %v2056_v53, %v6692_v33  ;;  %v2119_v49 = vrot.slane %v2091_v59, %v6688_v30  ;;  %3295 = vrot.lane.b32.xlu0 %v3002_v52, %s6382_s15  ;;  %v2120_v62 = vcombine.high %v2098_v39, %v2098_v39 }
 0x6e4   : > { %v2074_v57 = vcombine.high %v2070_v9, %v2070_v9  ;;  %v2365_v17 = vrot.slane %v2073_v10, %v6692_v33  ;;  %v2373_v19 = vrot.slane %v2070_v9, %v6692_v33  ;;  %v2657_v23 = vcombine.low %v2353_v13, %v2357_v11  ;;  %5835 = vmatpush3.msra.mxu1 %v1815_v61 }
 0x6e5   : > { %v2121_v21 = vcombine.high %v2105_v60, %v2105_v60  ;;  %v2122_v29 = vcombine.high %v2112_v2, %v2112_v2  ;;  %v2123_v25 = vcombine.high %v2119_v49, %v2119_v49  ;;  %v2377_v36 = vrot.slane %v2072_v0, %v6692_v33  ;;  %5836 = vmatprep.subr.mxu1 %v1814_v26 }
 0x6e6   : > { %v2381_v20 = vrot.slane %v2074_v57, %v6692_v33  ;;  %v2658_v28 = vcombine.low %v2361_v14, %v2365_v17  ;;  %v2674_v40 = vcombine.low %v2369_v15, %v2373_v19  ;;  %3425 = vrot.lane.b32.xlu1 %v7276_v43, %s6383_s29  ;;  %v2665_v35 = vrot.slane %v2657_v23, %v6663_v63  ;;  %v3100_v57 = vld [vmem:[#allocation5 + $0x3a] sm:$0xff] }
 0x6e7   : > { %v2385_v37 = vrot.slane %v2098_v39, %v6692_v33  ;;  %v2389_v32 = vrot.slane %v2112_v2, %v6692_v33  ;;  %v2397_v50 = vrot.slane %v2122_v29, %v6692_v33  ;;  %4059 = vrot.lane.b32.xlu0 %v7293_v31, %s6389_s6  ;;  %v2393_v38 = vrot.slane %v2120_v62, %v6692_v33 }
 0x6e8   : > { %v2672_v24 = vrot.slane %v2658_v28, %v6663_v63  ;;  %v2675_v54 = vcombine.low %v2377_v36, %v2381_v20  ;;  %v2401_v41 = vrot.slane %v2105_v60, %v6692_v33  ;;  %v2405_v47 = vrot.slane %v2119_v49, %v6692_v33  ;;  %5837 = vmatpush3.msra.mxu1 %v1814_v26 }
 0x6e9   : > { %v6140_v44 = vpop.eup %6139  ;;  %v2409_v48 = vrot.slane %v2121_v21, %v6692_v33  ;;  %v2413_v42 = vrot.slane %v2123_v25, %v6692_v33  ;;  %v2691_v52 = vcombine.low %v2385_v37, %v2389_v32  ;;  %v2692_v53 = vcombine.low %v2393_v38, %v2397_v50  ;;  %5838 = vmatprep.subr.mxu1 %v1813_v16 }
 0x6ea   : > { %v2673_v39 = vcombine.low %v2665_v35, %v2672_v24  ;;  %v2689_v45 = vrot.slane %v2675_v54, %v6663_v63  ;;  %v2131_v55 = vrot.slane %v7262_v12, %v6688_v30  ;;  %3933 = vrot.lane.b32.xlu1 %v3068_v56, %s6388_s5  ;;  %v2708_v59 = vcombine.low %v2401_v41, %v2405_v47 }
 0x6eb   : > { %v2699_v58 = vrot.slane %v2691_v52, %v6663_v63  ;;  %v2709_v60 = vcombine.low %v2409_v48, %v2413_v42  ;;  %v2138_v2 = vrot.slane %v2124_v8, %v6688_v30  ;;  %3553 = vrot.lane.b32.xlu0 %v3068_v56, %s6384_s30  ;;  %v2706_v61 = vrot.slane %v2692_v53, %v6663_v63 }
 0x6ec   : > { %2826 = vst.msk [vmem:[#allocation5 + $0xd9] sm:$0xff] %vm289_vm3, %v2673_v39  ;;  %2828 = vst.msk [vmem:[#allocation5 + $0xf1] sm:$0xff] %vm289_vm3, %v2673_v39  ;;  %v2139_v9 = vcombine.high %v2131_v55, %v2131_v55  ;;  %v2147_v0 = vrot.slane %v2131_v55, %v6688_v30  ;;  %v1788_v12 = vmul.f32 2.828427, %v6140_v44  ;;  %v2682_v10 = vrot.slane %v2674_v40, %v6663_v63 }
 0x6ed   : > { %v2140_v11 = vcombine.high %v2138_v2, %v2138_v2  ;;  %v2154_v13 = vrot.slane %v2138_v2, %v6688_v30  ;;  %5839 = vmatpush3.msra.mxu1 %v1813_v16  ;;  %v2707_v8 = vcombine.low %v2699_v58, %v2706_v61  ;;  %v2723_v14 = vrot.slane %v2709_v60, %v6663_v63 }
 0x6ee   : > { %v2161_v15 = vrot.slane %v2139_v9, %v6688_v30  ;;  %v2169_v49 = vcombine.high %v2147_v0, %v2147_v0  ;;  %3679 = vrot.lane.b32.xlu1 %v7293_v31, %s6385_s3  ;;  %v2716_v17 = vrot.slane %v2708_v59, %v6663_v63  ;;  %v1796_v23 = vmul.f32 %v1788_v12, %v7088_v46 }
 0x6ef   : > { %v2168_v19 = vrot.slane %v2140_v11, %v6688_v30  ;;  %v2170_v62 = vcombine.high %v2154_v13, %v2154_v13  ;;  %4061 = vrot.lane.b32.xlu0 %v3100_v57, %s6389_s6  ;;  %2830 = vst.msk [vmem:[#allocation5 + $0x109] sm:$0xff] %vm289_vm3, %v2707_v8  ;;  %2832 = vst.msk [vmem:[#allocation5 + $0x121] sm:$0xff] %vm289_vm3, %v2707_v8  ;;  %v2417_v29 = vrot.slane %v2147_v0, %v6692_v33 }
 0x6f0   : > { %v2171_v21 = vcombine.high %v2161_v15, %v2161_v15  ;;  %v2421_v25 = vrot.slane %v2161_v15, %v6692_v33  ;;  %v2690_v26 = vcombine.low %v2682_v10, %v2689_v45  ;;  %v2433_v20 = vrot.slane %v2154_v13, %v6692_v33 }
 0x6f1   : > { %v2172_v36 = vcombine.high %v2168_v19, %v2168_v19  ;;  %v2437_v28 = vrot.slane %v2168_v19, %v6692_v33  ;;  %v1804_v40 = vmul.f32 0.2, %v1796_v23  ;;  %v2425_v46 = vrot.slane %v2169_v49, %v6692_v33  ;;  %v2880_v49 = vld [vmem:[#allocation5 + $0x49] sm:$0xff] }
 0x6f2   : > { %v2429_v35 = vrot.slane %v2171_v21, %v6692_v33  ;;  %v2725_v37 = vcombine.low %v2417_v29, %v2421_v25  ;;  %3173 = vrot.lane.b32.xlu1 %v3068_v56, %s6381_s14  ;;  %2827 = vst.msk [vmem:[#allocation5 + $0xe1] sm:$0xff] %vm289_vm3, %v2690_v26  ;;  %2829 = vst.msk [vmem:[#allocation5 + $0xf9] sm:$0xff] %vm289_vm3, %v2690_v26  ;;  %v2724_v32 = vcombine.low %v2716_v17, %v2723_v14  ;;  %v7349_v56 = vld [vmem:[#allocation5 + $0x48] sm:$0xff] }
 0x6f3   : > { %v2441_v50 = vrot.slane %v2170_v62, %v6692_v33  ;;  %v2445_v24 = vrot.slane %v2172_v36, %v6692_v33  ;;  %v1812_v54 = vmax.f32 %v1796_v23, %v1804_v40  ;;  %3299 = vrot.lane.b32.xlu0 %v7293_v31, %s6382_s15  ;;  %v2742_v41 = vcombine.low %v2433_v20, %v2437_v28  ;;  %v2882_v26 = vld [vmem:[#allocation5 + $0x61] sm:$0xff] }
 0x6f4   : > { %v2726_v38 = vcombine.low %v2425_v46, %v2429_v35  ;;  %2831 = vst.msk [vmem:[#allocation5 + $0x111] sm:$0xff] %vm289_vm3, %v2724_v32  ;;  %2833 = vst.msk [vmem:[#allocation5 + $0x129] sm:$0xff] %vm289_vm3, %v2724_v32  ;;  %v2733_v42 = vrot.slane %v2725_v37, %v6663_v63  ;;  %v7389_v46 = vld [vmem:[#allocation5 + $0x60] sm:$0xff]  ;;  %v3006_v35 = vld [vmem:[#allocation5 + $0x4a] sm:$0xff] }
 0x6f5   : > { %v2743_v44 = vcombine.low %v2441_v50, %v2445_v24  ;;  %v2173_v47 = vcombine.high %v1812_v54, %v1812_v54  ;;  %v2180_v48 = vrot.slane %v1812_v54, %v6688_v30  ;;  %v2750_v55 = vrot.slane %v2742_v41, %v6663_v63  ;;  %v3007_v37 = vld [vmem:[#allocation5 + $0x52] sm:$0xff]  ;;  %v7409_v32 = vld [vmem:[#allocation5 + $0x68] sm:$0xff] }
 0x6f6   : > { %v2740_v52 = vrot.slane %v2726_v38, %v6663_v63  ;;  %3681 = vrot.lane.b32.xlu1 %v3100_v57, %s6385_s3  ;;  %v3103_v50 = vld [vmem:[#allocation5 + $0x62] sm:$0xff]  ;;  %v3104_v54 = vld [vmem:[#allocation5 + $0x6a] sm:$0xff]  ;;  %v7424_v38 = vld [vmem:[#allocation5 + $0x78] sm:$0xff] }
 0x6f7   : > { %v2757_v31 = vrot.slane %v2743_v44, %v6663_v63  ;;  %v2187_v16 = vrot.slane %v2173_v47, %v6688_v30  ;;  %v2188_v39 = vcombine.high %v2180_v48, %v2180_v48  ;;  %v2196_v45 = vrot.slane %v2180_v48, %v6688_v30  ;;  %3807 = vrot.lane.b32.xlu0 %v7349_v56, %s6387_s4  ;;  %v3072_v24 = vld [vmem:[#allocation5 + $0x69] sm:$0xff] }
 0x6f8   : > { %v2741_v53 = vcombine.low %v2733_v42, %v2740_v52  ;;  %v2884_v42 = vld [vmem:[#allocation5 + $0x79] sm:$0xff] }
 0x6f9   : > { %v2189_v58 = vcombine.high %v2187_v16, %v2187_v16  ;;  %v2203_v59 = vrot.slane %v2187_v16, %v6688_v30  ;;  %v2210_v60 = vrot.slane %v2188_v39, %v6688_v30  ;;  %v2218_v2 = vcombine.high %v2196_v45, %v2196_v45  ;;  %v2886_v16 = vld [vmem:[#allocation5 + $0x91] sm:$0xff] }
 0x6fa   : > { %2834 = vst.msk [vmem:[#allocation5 + $0x139] sm:$0xff] %vm289_vm3, %v2741_v53  ;;  %2836 = vst.msk [vmem:[#allocation5 + $0x151] sm:$0xff] %vm289_vm3, %v2741_v53  ;;  %3301 = vrot.lane.b32.xlu1 %v3100_v57, %s6382_s15  ;;  %v2758_v61 = vcombine.low %v2750_v55, %v2757_v31  ;;  %v2449_v11 = vrot.slane %v2196_v45, %v6692_v33  ;;  %v7441_v53 = vld [vmem:[#allocation5 + $0x80] sm:$0xff]  ;;  %v7445_v55 = vld [vmem:[#allocation5 + $0x90] sm:$0xff] }
 0x6fb   : > { %v2217_v9 = vrot.slane %v2189_v58, %v6688_v30  ;;  %v2219_v0 = vcombine.high %v2203_v59, %v2203_v59  ;;  %v2220_v12 = vcombine.high %v2210_v60, %v2210_v60  ;;  %v2453_v10 = vrot.slane %v2210_v60, %v6692_v33  ;;  %3427 = vrot.lane.b32.xlu0 %v7349_v56, %s6383_s29  ;;  %v2842_v60 = vld [vmem:[#allocation5] sm:$0xff] }
 0x6fc   : > { %v2457_v13 = vrot.slane %v2218_v2, %v6692_v33  ;;  %2835 = vst.msk [vmem:[#allocation5 + $0x141] sm:$0xff] %vm289_vm3, %v2758_v61  ;;  %2837 = vst.msk [vmem:[#allocation5 + $0x159] sm:$0xff] %vm289_vm3, %v2758_v61  ;;  %v2465_v30 = vrot.slane %v2203_v59, %v6692_v33  ;;  %v4155_v61 = vsel %vm289_vm3, %v2842_v60, %v6814_v3 }
 0x6fd   : > { %v2221_v8 = vcombine.high %v2217_v9, %v2217_v9  ;;  %v2461_v14 = vrot.slane %v2220_v12, %v6692_v33  ;;  %v2469_v15 = vrot.slane %v2217_v9, %v6692_v33  ;;  %v2759_v57 = vcombine.low %v2449_v11, %v2453_v10 }
 0x6fe   : > { %3175 = vrot.lane.b32.xlu1 %v2880_v49, %s6381_s14  ;;  %v2473_v17 = vrot.slane %v2219_v0, %v6692_v33  ;;  %v3074_v0 = vld [vmem:[#allocation5 + $0x81] sm:$0xff]  ;;  %v4187_v12 = vsel %vm292_vm4, %v4155_v61, %v6816_v4 }
 0x6ff   : > { %v2477_v19 = vrot.slane %v2221_v8, %v6692_v33  ;;  %v2760_v62 = vcombine.low %v2457_v13, %v2461_v14  ;;  %v2776_v23 = vcombine.low %v2465_v30, %v2469_v15  ;;  %3935 = vrot.lane.b32.xlu0 %v2880_v49, %s6388_s5  ;;  %v2767_v21 = vrot.slane %v2759_v57, %v6663_v63  ;;  %v7385_v33 = vld [vmem:[#allocation5 + $0x50] sm:$0xff]  ;;  %v3010_v8 = vld [vmem:[#allocation5 + $0x7a] sm:$0xff]  ;;  %v2843_v14 = vld [vmem:[#allocation5 + $0x8] sm:$0xff] }
 0x701   : > { %v2774_v29 = vrot.slane %v2760_v62, %v6663_v63  ;;  %v2777_v25 = vcombine.low %v2473_v17, %v2477_v19  ;;  %v2784_v20 = vrot.slane %v2776_v23, %v6663_v63 }
 0x702   : > { %3179 = vrot.lane.b32.xlu1 %v2882_v26, %s6381_s14 }
 0x703   : > { %v2775_v36 = vcombine.low %v2767_v21, %v2774_v29  ;;  %v2791_v28 = vrot.slane %v2777_v25, %v6663_v63  ;;  %3555 = vrot.lane.b32.xlu0 %v2880_v49, %s6384_s30  ;;  %v3070_v63 = vld [vmem:[#allocation5 + $0x51] sm:$0xff]  ;;  %v4156_v49 = vsel %vm289_vm3, %v2843_v14, %v6831_v18  ;;  %v3011_v29 = vld [vmem:[#allocation5 + $0x82] sm:$0xff] }
 0x704   : > { %v4188_v17 = vsel %vm292_vm4, %v4156_v49, %v6818_v5  ;;  %v2890_v49 = vld [vmem:[#allocation5 + $0xc1] sm:$0xff] }
 0x705   : > { %2838 = vst.msk [vmem:[#allocation5 + $0x169] sm:$0xff] %vm289_vm3, %v2775_v36  ;;  %2840 = vst.msk [vmem:[#allocation5 + $0x181] sm:$0xff] %vm289_vm3, %v2775_v36  ;;  %v2792_v40 = vcombine.low %v2784_v20, %v2791_v28 }
 0x706   : > { %3809 = vrot.lane.b32.xlu1 %v7385_v33, %s6387_s4 }
 0x707   : > { %3811 = vrot.lane.b32.xlu0 %v7389_v46, %s6387_s4  ;;  %2839 = vst.msk [vmem:[#allocation5 + $0x171] sm:$0xff] %vm289_vm3, %v2792_v40  ;;  %2841 = vst.msk [vmem:[#allocation5 + $0x189] sm:$0xff] %vm289_vm3, %v2792_v40 }
 0x70a   : > { %3429 = vrot.lane.b32.xlu1 %v7385_v33, %s6383_s29 }
 0x70b   : > { %3431 = vrot.lane.b32.xlu0 %v7389_v46, %s6383_s29 }
 0x70e   : > { %3937 = vrot.lane.b32.xlu1 %v3070_v63, %s6388_s5 }
 0x70f   : > { %3939 = vrot.lane.b32.xlu0 %v2882_v26, %s6388_s5 }
 0x712   : > { %3683 = vrot.lane.b32.xlu1 %v3006_v35, %s6385_s3 }
 0x713   : > { %3559 = vrot.lane.b32.xlu0 %v2882_v26, %s6384_s30 }
 0x716   : > { %3177 = vrot.lane.b32.xlu1 %v3070_v63, %s6381_s14 }
 0x717   : > { %4063 = vrot.lane.b32.xlu0 %v3006_v35, %s6389_s6 }
 0x71a   : > { %3685 = vrot.lane.b32.xlu1 %v3007_v37, %s6385_s3 }
 0x71b   : > { %3557 = vrot.lane.b32.xlu0 %v3070_v63, %s6384_s30 }
 0x71e   : > { %3305 = vrot.lane.b32.xlu1 %v3007_v37, %s6382_s15 }
 0x71f   : > { %4065 = vrot.lane.b32.xlu0 %v3007_v37, %s6389_s6 }
 0x722   : > { %3813 = vrot.lane.b32.xlu1 %v7409_v32, %s6387_s4 }
 0x723   : > { %3303 = vrot.lane.b32.xlu0 %v3006_v35, %s6382_s15  ;;  %v7495_v35 = vld [vmem:[#allocation5 + $0x98] sm:$0xff] }
 0x726   : > { %3433 = vrot.lane.b32.xlu1 %v7409_v32, %s6383_s29 }
 0x727   : > { %4067 = vrot.lane.b32.xlu0 %v3103_v50, %s6389_s6 }
 0x72a   : > { %3941 = vrot.lane.b32.xlu1 %v3072_v24, %s6388_s5 }
 0x72b   : > { %3561 = vrot.lane.b32.xlu0 %v3072_v24, %s6384_s30 }
 0x72e   : > { %3687 = vrot.lane.b32.xlu1 %v3103_v50, %s6385_s3 }
 0x72f   : > { %4069 = vrot.lane.b32.xlu0 %v3104_v54, %s6389_s6 }
 0x732   : > { %3181 = vrot.lane.b32.xlu1 %v3072_v24, %s6381_s14 }
 0x733   : > { %3307 = vrot.lane.b32.xlu0 %v3103_v50, %s6382_s15 }
 0x736   : > { %3689 = vrot.lane.b32.xlu1 %v3104_v54, %s6385_s3 }
 0x737   : > { %3815 = vrot.lane.b32.xlu0 %v7424_v38, %s6387_s4 }
 0x738   : > { %v3420_v41 = vpop.permute.xlu1 %3419 }
 0x739   : > { %v7428_v44 = vpop.permute.xlu0 %3167  ;;  %v4219_v11 = vsel %vm295_vm6, %v4187_v12, %v3420_v41 }
 0x73a   : > { %3309 = vrot.lane.b32.xlu1 %v3104_v54, %s6382_s15  ;;  %v3107_v54 = vld [vmem:[#allocation5 + $0x92] sm:$0xff]  ;;  %v4157_v14 = vsel %vm289_vm3, %v7178_v51, %v7428_v44  ;;  %v7552_v44 = vld [vmem:[#allocation5 + $0xc0] sm:$0xff] }
 0x73b   : > { %3435 = vrot.lane.b32.xlu0 %v7424_v38, %s6383_s29 }
 0x73c   : > { %v3548_v47 = vpop.permute.xlu1 %3547 }
 0x73d   : > { %v3804_v48 = vpop.permute.xlu0 %3803  ;;  %v4251_v30 = vsel %vm298_vm7, %v4219_v11, %v3548_v47 }
 0x73e   : > { %3183 = vrot.lane.b32.xlu1 %v2884_v42, %s6381_s14 }
 0x73f   : > { %3943 = vrot.lane.b32.xlu0 %v2884_v42, %s6388_s5 }
 0x740   : > { %v7435_v52 = vpop.permute.xlu1 %3171 }
 0x741   : > { %v7437_v31 = vpop.permute.xlu0 %3423 }
 0x742   : > { %3187 = vrot.lane.b32.xlu1 %v2886_v16, %s6381_s14 }
 0x743   : > { %3563 = vrot.lane.b32.xlu0 %v2884_v42, %s6384_s30 }
 0x744   : > { %v3550_v39 = vpop.permute.xlu1 %3549 }
 0x745   : > { %v3932_v45 = vpop.permute.xlu0 %3931 }
 0x746   : > { %3817 = vrot.lane.b32.xlu1 %v7441_v53, %s6387_s4 }
 0x747   : > { %3819 = vrot.lane.b32.xlu0 %v7445_v55, %s6387_s4 }
 0x748   : > { %v7449_v58 = vpop.permute.xlu1 %3169 }
 0x749   : > { %v7451_v59 = vpop.permute.xlu0 %3551 }
 0x74a   : > { %3437 = vrot.lane.b32.xlu1 %v7441_v53, %s6383_s29 }
 0x74b   : > { %3439 = vrot.lane.b32.xlu0 %v7445_v55, %s6383_s29 }
 0x74c   : > { %v3678_v2 = vpop.permute.xlu1 %3677 }
 0x74d   : > { %v3422_v9 = vpop.permute.xlu0 %3421 }
 0x74e   : > { %3945 = vrot.lane.b32.xlu1 %v3074_v0, %s6388_s5  ;;  %v4220_v62 = vsel %vm295_vm6, %v4188_v17, %v3422_v9  ;;  %v7522_v9 = vld [vmem:[#allocation5 + $0xa8] sm:$0xff] }
 0x74f   : > { %3947 = vrot.lane.b32.xlu0 %v2886_v16, %s6388_s5  ;;  %v4252_v25 = vsel %vm298_vm7, %v4220_v62, %v3550_v39  ;;  %v3108_v39 = vld [vmem:[#allocation5 + $0x9a] sm:$0xff] }
 0x750   : > { %v7463_v10 = vpop.permute.xlu1 %3297  ;;  %v4284_v36 = vsel %vm301_vm8, %v4252_v25, %v3678_v2 }
 0x751   : > { %v3676_v13 = vpop.permute.xlu0 %3675 }
 0x752   : > { %3691 = vrot.lane.b32.xlu1 %v3010_v8, %s6385_s3  ;;  %v4283_v3 = vsel %vm301_vm8, %v4251_v30, %v3676_v13 }
 0x753   : > { %3567 = vrot.lane.b32.xlu0 %v2886_v16, %s6384_s30  ;;  %v4315_v57 = vsel %vm304_vm9, %v4283_v3, %v3804_v48  ;;  %v3076_v48 = vld [vmem:[#allocation5 + $0x99] sm:$0xff] }
 0x754   : > { %v3806_v15 = vpop.permute.xlu1 %3805  ;;  %v4347_v23 = vsel %vm307_vm10, %v4315_v57, %v3932_v45 }
 0x755   : > { %v7472_v4 = vpop.permute.xlu0 %3295  ;;  %v4316_v20 = vsel %vm304_vm9, %v4284_v36, %v3806_v15 }
 0x756   : > { %3185 = vrot.lane.b32.xlu1 %v3074_v0, %s6381_s14  ;;  %v4189_v30 = vsel %vm292_vm4, %v4157_v14, %v7472_v4  ;;  %v3015_v14 = vld [vmem:[#allocation5 + $0xb2] sm:$0xff] }
 0x757   : > { %4071 = vrot.lane.b32.xlu0 %v3010_v8, %s6389_s6  ;;  %v4221_v57 = vsel %vm295_vm6, %v4189_v30, %v7437_v31 }
 0x758   : > { %v7479_v19 = vpop.permute.xlu1 %3425  ;;  %v4253_v51 = vsel %vm298_vm7, %v4221_v57, %v7451_v59  ;;  %v4158_v59 = vsel %vm289_vm3, %v7254_v34, %v7449_v58  ;;  %v4159_v34 = vsel %vm289_vm3, %v7197_v1, %v7435_v52 }
 0x759   : > { %v4060_v21 = vpop.permute.xlu0 %4059 }
 0x75a   : > { %v4379_v18 = vsel %vm310_vm11, %v4347_v23, %v4060_v21  ;;  %3693 = vrot.lane.b32.xlu1 %v3011_v29, %s6385_s3  ;;  %v7546_v23 = vld [vmem:[#allocation5 + $0xb0] sm:$0xff] }
 0x75b   : > { %3565 = vrot.lane.b32.xlu0 %v3074_v0, %s6384_s30  ;;  %5840 = vmatprep.mubr.msk.f32.mxu1 %vm323_vm12, %v4379_v18 }
 0x75c   : > { %v3934_v26 = vpop.permute.xlu1 %3933 }
 0x75d   : > { %v7488_v5 = vpop.permute.xlu0 %3553  ;;  %v4348_v40 = vsel %vm307_vm10, %v4316_v20, %v3934_v26  ;;  %v4190_v26 = vsel %vm292_vm4, %v4158_v59, %v7463_v10 }
 0x75e   : > { %3313 = vrot.lane.b32.xlu1 %v3011_v29, %s6382_s15  ;;  %v4222_v20 = vsel %vm295_vm6, %v4190_v26, %v7479_v19  ;;  %v3080_v26 = vld [vmem:[#allocation5 + $0xc9] sm:$0xff] }
 0x75f   : > { %4073 = vrot.lane.b32.xlu0 %v3011_v29, %s6389_s6 }
 0x760   : > { %v3680_v28 = vpop.permute.xlu1 %3679 }
 0x761   : > { %v4062_v63 = vpop.permute.xlu0 %4061  ;;  %v4285_v4 = vsel %vm301_vm8, %v4253_v51, %v3680_v28  ;;  %v7622_v51 = vld [vmem:[#allocation5 + $0xc8] sm:$0xff] }
 0x762   : > { %v4380_v37 = vsel %vm310_vm11, %v4348_v40, %v4062_v63  ;;  %3821 = vrot.lane.b32.xlu1 %v7495_v35, %s6387_s4  ;;  %v3078_v40 = vld [vmem:[#allocation5 + $0xb1] sm:$0xff]  ;;  %v4254_v63 = vsel %vm298_vm7, %v4222_v20, %v7488_v5 }
 0x763   : > { %3311 = vrot.lane.b32.xlu0 %v3010_v8, %s6382_s15  ;;  %5841 = vmatmul.mubr.msk.f32.vlgmr.msra.gmra.mxu1 %vm323_vm12, %v4380_v37  ;;  %v2888_v8 = vld [vmem:[#allocation5 + $0xa9] sm:$0xff] }
 0x764   : > { %v7502_v50 = vpop.permute.xlu1 %3173 }
 0x765   : > { %v7504_v24 = vpop.permute.xlu0 %3299 }
 0x766   : > { %3441 = vrot.lane.b32.xlu1 %v7495_v35, %s6383_s29  ;;  %v4191_v10 = vsel %vm292_vm4, %v4159_v34, %v7504_v24 }
 0x767   : > { %4075 = vrot.lane.b32.xlu0 %v3107_v54, %s6389_s6 }
 0x768   : > { %v3682_v41 = vpop.permute.xlu1 %3681 }
 0x769   : > { %v3808_v47 = vpop.permute.xlu0 %3807  ;;  %v4286_v58 = vsel %vm301_vm8, %v4254_v63, %v3682_v41 }
 0x76a   : > { %3949 = vrot.lane.b32.xlu1 %v3076_v48, %s6388_s5  ;;  %v4317_v31 = vsel %vm304_vm9, %v4285_v4, %v3808_v47 }
 0x76b   : > { %3569 = vrot.lane.b32.xlu0 %v3076_v48, %s6384_s30 }
 0x76c   : > { %v7511_v42 = vpop.permute.xlu1 %3301 }
 0x76d   : > { %v3428_v16 = vpop.permute.xlu0 %3427 }
 0x76e   : > { %3695 = vrot.lane.b32.xlu1 %v3107_v54, %s6385_s3 }
 0x76f   : > { %4077 = vrot.lane.b32.xlu0 %v3108_v39, %s6389_s6 }
 0x770   : > { %v7515_v45 = vpop.permute.xlu1 %3175 }
 0x771   : > { %v3936_v60 = vpop.permute.xlu0 %3935 }
 0x772   : > { %3189 = vrot.lane.b32.xlu1 %v3076_v48, %s6381_s14  ;;  %v4349_v29 = vsel %vm307_vm10, %v4317_v31, %v3936_v60  ;;  %v3014_v48 = vld [vmem:[#allocation5 + $0xaa] sm:$0xff] }
 0x773   : > { %3315 = vrot.lane.b32.xlu0 %v3107_v54, %s6382_s15  ;;  %v4223_v54 = vsel %vm295_vm6, %v4191_v10, %v3428_v16  ;;  %v7649_v10 = vld [vmem:[#allocation5 + $0xd8] sm:$0xff] }
 0x774   : > { %v7519_v2 = vpop.permute.xlu1 %3179 }
 0x775   : > { %v3556_v61 = vpop.permute.xlu0 %3555 }
 0x776   : > { %3697 = vrot.lane.b32.xlu1 %v3108_v39, %s6385_s3 }
 0x777   : > { %3823 = vrot.lane.b32.xlu0 %v7522_v9, %s6387_s4 }
 0x778   : > { %v3810_v0 = vpop.permute.xlu1 %3809 }
 0x779   : > { %v3812_v12 = vpop.permute.xlu0 %3811  ;;  %v4318_v19 = vsel %vm304_vm9, %v4286_v58, %v3810_v0 }
 0x77a   : > { %3317 = vrot.lane.b32.xlu1 %v3108_v39, %s6382_s15  ;;  %v4255_v39 = vsel %vm298_vm7, %v4223_v54, %v3556_v61  ;;  %v4160_v61 = vsel %vm289_vm3, %v7276_v43, %v7502_v50 }
 0x77b   : > { %3443 = vrot.lane.b32.xlu0 %v7522_v9, %s6383_s29  ;;  %v4192_v30 = vsel %vm292_vm4, %v4160_v61, %v7511_v42 }
 0x77c   : > { %v7529_v11 = vpop.permute.xlu1 %3429 }
 0x77d   : > { %v7531_v13 = vpop.permute.xlu0 %3431 }
 0x77e   : > { %3191 = vrot.lane.b32.xlu1 %v2888_v8, %s6381_s14 }
 0x77f   : > { %3951 = vrot.lane.b32.xlu0 %v2888_v8, %s6388_s5 }
 0x780   : > { %v3938_v3 = vpop.permute.xlu1 %3937 }
 0x781   : > { %v3940_v15 = vpop.permute.xlu0 %3939  ;;  %v4350_v5 = vsel %vm307_vm10, %v4318_v19, %v3938_v3 }
 0x782   : > { %3195 = vrot.lane.b32.xlu1 %v2890_v49, %s6381_s14 }
 0x783   : > { %3571 = vrot.lane.b32.xlu0 %v2888_v8, %s6384_s30 }
 0x784   : > { %v3684_v17 = vpop.permute.xlu1 %3683 }
 0x785   : > { %v7544_v62 = vpop.permute.xlu0 %3559  ;;  %v4287_v52 = vsel %vm301_vm8, %v4255_v39, %v3684_v17  ;;  %v4161_v39 = vsel %vm289_vm3, %v7349_v56, %v7515_v45  ;;  %v7679_v45 = vld [vmem:[#allocation5 + $0xf0] sm:$0xff] }
 0x786   : > { %3825 = vrot.lane.b32.xlu1 %v7546_v23, %s6387_s4  ;;  %v4319_v16 = vsel %vm304_vm9, %v4287_v52, %v3812_v12  ;;  %v4224_v12 = vsel %vm295_vm6, %v4192_v30, %v7529_v11 }
 0x787   : > { %3827 = vrot.lane.b32.xlu0 %v7552_v44, %s6387_s4  ;;  %v4351_v0 = vsel %vm307_vm10, %v4319_v16, %v3940_v15  ;;  %v2894_v16 = vld [vmem:[#allocation5 + $0xf1] sm:$0xff] }
 0x788   : > { %v7558_v21 = vpop.permute.xlu1 %3177 }
 0x789   : > { %v4064_v18 = vpop.permute.xlu0 %4063 }
 0x78a   : > { %v4381_v25 = vsel %vm310_vm11, %v4349_v29, %v4064_v18  ;;  %3445 = vrot.lane.b32.xlu1 %v7546_v23, %s6383_s29  ;;  %v3111_v18 = vld [vmem:[#allocation5 + $0xc2] sm:$0xff] }
 0x78b   : > { %3447 = vrot.lane.b32.xlu0 %v7552_v44, %s6383_s29  ;;  %5843 = vmatprep.mubr.msk.f32.mxu1 %vm323_vm12, %v4381_v25 }
 0x78c   : > { %v3686_v36 = vpop.permute.xlu1 %3685 }
 0x78d   : > { %v3558_v28 = vpop.permute.xlu0 %3557 }
 0x78e   : > { %3953 = vrot.lane.b32.xlu1 %v3078_v40, %s6388_s5  ;;  %v4256_v43 = vsel %vm298_vm7, %v4224_v12, %v3558_v28  ;;  %v3112_v28 = vld [vmem:[#allocation5 + $0xca] sm:$0xff] }
 0x78f   : > { %3955 = vrot.lane.b32.xlu0 %v2890_v49, %s6388_s5  ;;  %v4288_v42 = vsel %vm301_vm8, %v4256_v43, %v3686_v36 }
 0x790   : > { %v7585_v37 = vpop.permute.xlu1 %3305 }
 0x791   : > { %v4066_v47 = vpop.permute.xlu0 %4065 }
 0x792   : > { %v4382_v1 = vsel %vm310_vm11, %v4350_v5, %v4066_v47  ;;  %3699 = vrot.lane.b32.xlu1 %v3014_v48, %s6385_s3 }
 0x793   : > { %3575 = vrot.lane.b32.xlu0 %v2890_v49, %s6384_s30  ;;  %5844 = vmatmul.mubr.msk.f32.gmra.mxu1 %vm323_vm12, %v4382_v1 }
 0x794   : > { %v3814_v24 = vpop.permute.xlu1 %3813 }
 0x795   : > { %v7595_v41 = vpop.permute.xlu0 %3303  ;;  %v4320_v49 = vsel %vm304_vm9, %v4288_v42, %v3814_v24 }
 0x796   : > { %3193 = vrot.lane.b32.xlu1 %v3078_v40, %s6381_s14  ;;  %v4193_v1 = vsel %vm292_vm4, %v4161_v39, %v7595_v41  ;;  %v3019_v39 = vld [vmem:[#allocation5 + $0xe2] sm:$0xff] }
 0x797   : > { %4079 = vrot.lane.b32.xlu0 %v3014_v48, %s6389_s6  ;;  %v4225_v61 = vsel %vm295_vm6, %v4193_v1, %v7531_v13 }
 0x798   : > { %v7600_v60 = vpop.permute.xlu1 %3433  ;;  %v4257_v56 = vsel %vm298_vm7, %v4225_v61, %v7544_v62  ;;  %v4162_v62 = vsel %vm289_vm3, %v7385_v33, %v7558_v21  ;;  %v4163_v33 = vsel %vm289_vm3, %v7389_v46, %v7519_v2 }
 0x799   : > { %v4068_v8 = vpop.permute.xlu0 %4067 }
 0x79a   : > { %v4383_v3 = vsel %vm310_vm11, %v4351_v0, %v4068_v8  ;;  %3701 = vrot.lane.b32.xlu1 %v3015_v14, %s6385_s3 }
 0x79b   : > { %3573 = vrot.lane.b32.xlu0 %v3078_v40, %s6384_s30  ;;  %5846 = vmatprep.mubr.msk.f32.mxu1 %vm323_vm12, %v4383_v3 }
 0x79c   : > { %v3942_v50 = vpop.permute.xlu1 %3941 }
 0x79d   : > { %v7615_v15 = vpop.permute.xlu0 %3561  ;;  %v4352_v11 = vsel %vm307_vm10, %v4320_v49, %v3942_v50  ;;  %v4194_v50 = vsel %vm292_vm4, %v4162_v62, %v7585_v37 }
 0x79e   : > { %3321 = vrot.lane.b32.xlu1 %v3015_v14, %s6382_s15  ;;  %v4226_v49 = vsel %vm295_vm6, %v4194_v50, %v7600_v60  ;;  %v3084_v50 = vld [vmem:[#allocation5 + $0xf9] sm:$0xff] }
 0x79f   : > { %4081 = vrot.lane.b32.xlu0 %v3015_v14, %s6389_s6  ;;  %v7673_v14 = vld [vmem:[#allocation5 + $0xe0] sm:$0xff] }
 0x7a0   : > { %v3688_v57 = vpop.permute.xlu1 %3687 }
 0x7a1   : > { %v4070_v17 = vpop.permute.xlu0 %4069  ;;  %v4289_v41 = vsel %vm301_vm8, %v4257_v56, %v3688_v57  ;;  %v7749_v56 = vld [vmem:[#allocation5 + $0xf8] sm:$0xff] }
 0x7a2   : > { %v4384_v4 = vsel %vm310_vm11, %v4352_v11, %v4070_v17  ;;  %3829 = vrot.lane.b32.xlu1 %v7622_v51, %s6387_s4  ;;  %v3082_v11 = vld [vmem:[#allocation5 + $0xe1] sm:$0xff]  ;;  %v4258_v17 = vsel %vm298_vm7, %v4226_v49, %v7615_v15 }
 0x7a3   : > { %3319 = vrot.lane.b32.xlu0 %v3014_v48, %s6382_s15  ;;  %5847 = vmatmul.mubr.msk.f32.gmra.mxu1 %vm323_vm12, %v4384_v4  ;;  %v2892_v48 = vld [vmem:[#allocation5 + $0xd9] sm:$0xff] }
 0x7a4   : > { %v7629_v31 = vpop.permute.xlu1 %3181 }
 0x7a5   : > { %v7631_v29 = vpop.permute.xlu0 %3307 }
 0x7a6   : > { %3449 = vrot.lane.b32.xlu1 %v7622_v51, %s6383_s29  ;;  %v4195_v37 = vsel %vm292_vm4, %v4163_v33, %v7631_v29 }
 0x7a7   : > { %4083 = vrot.lane.b32.xlu0 %v3111_v18, %s6389_s6 }
 0x7a8   : > { %v3690_v25 = vpop.permute.xlu1 %3689 }
 0x7a9   : > { %v3816_v59 = vpop.permute.xlu0 %3815  ;;  %v4290_v21 = vsel %vm301_vm8, %v4258_v17, %v3690_v25 }
 0x7aa   : > { %3957 = vrot.lane.b32.xlu1 %v3080_v26, %s6388_s5  ;;  %v4321_v13 = vsel %vm304_vm9, %v4289_v41, %v3816_v59 }
 0x7ab   : > { %3577 = vrot.lane.b32.xlu0 %v3080_v26, %s6384_s30 }
 0x7ac   : > { %v7638_v36 = vpop.permute.xlu1 %3309 }
 0x7ad   : > { %v3436_v20 = vpop.permute.xlu0 %3435 }
 0x7ae   : > { %3703 = vrot.lane.b32.xlu1 %v3111_v18, %s6385_s3 }
 0x7af   : > { %4085 = vrot.lane.b32.xlu0 %v3112_v28, %s6389_s6 }
 0x7b0   : > { %v7642_v40 = vpop.permute.xlu1 %3183 }
 0x7b1   : > { %v3944_v63 = vpop.permute.xlu0 %3943 }
 0x7b2   : > { %3197 = vrot.lane.b32.xlu1 %v3080_v26, %s6381_s14  ;;  %v4353_v3 = vsel %vm307_vm10, %v4321_v13, %v3944_v63  ;;  %v3018_v26 = vld [vmem:[#allocation5 + $0xda] sm:$0xff] }
 0x7b3   : > { %3323 = vrot.lane.b32.xlu0 %v3111_v18, %s6382_s15  ;;  %v4227_v18 = vsel %vm295_vm6, %v4195_v37, %v3436_v20  ;;  %v7776_v37 = vld [vmem:[#allocation5 + $0x108] sm:$0xff] }
 0x7b4   : > { %v7646_v34 = vpop.permute.xlu1 %3187 }
 0x7b5   : > { %v3564_v58 = vpop.permute.xlu0 %3563 }
 0x7b6   : > { %3705 = vrot.lane.b32.xlu1 %v3112_v28, %s6385_s3 }
 0x7b7   : > { %3831 = vrot.lane.b32.xlu0 %v7649_v10, %s6387_s4 }
 0x7b8   : > { %v3818_v19 = vpop.permute.xlu1 %3817 }
 0x7b9   : > { %v3820_v54 = vpop.permute.xlu0 %3819  ;;  %v4322_v60 = vsel %vm304_vm9, %v4290_v21, %v3818_v19 }
 0x7ba   : > { %3325 = vrot.lane.b32.xlu1 %v3112_v28, %s6382_s15  ;;  %v4259_v28 = vsel %vm298_vm7, %v4227_v18, %v3564_v58  ;;  %v4164_v58 = vsel %vm289_vm3, %v7409_v32, %v7629_v31 }
 0x7bb   : > { %3451 = vrot.lane.b32.xlu0 %v7649_v10, %s6383_s29  ;;  %v4196_v1 = vsel %vm292_vm4, %v4164_v58, %v7638_v36 }
 0x7bc   : > { %v7656_v5 = vpop.permute.xlu1 %3437 }
 0x7bd   : > { %v7658_v47 = vpop.permute.xlu0 %3439 }
 0x7be   : > { %3199 = vrot.lane.b32.xlu1 %v2892_v48, %s6381_s14 }
 0x7bf   : > { %3959 = vrot.lane.b32.xlu0 %v2892_v48, %s6388_s5 }
 0x7c0   : > { %v3946_v52 = vpop.permute.xlu1 %3945 }
 0x7c1   : > { %v3948_v24 = vpop.permute.xlu0 %3947  ;;  %v4354_v15 = vsel %vm307_vm10, %v4322_v60, %v3946_v52 }
 0x7c2   : > { %3203 = vrot.lane.b32.xlu1 %v2894_v16, %s6381_s14 }
 0x7c3   : > { %3579 = vrot.lane.b32.xlu0 %v2892_v48, %s6384_s30 }
 0x7c4   : > { %v3692_v0 = vpop.permute.xlu1 %3691 }
 0x7c5   : > { %v7671_v8 = vpop.permute.xlu0 %3567  ;;  %v4291_v2 = vsel %vm301_vm8, %v4259_v28, %v3692_v0  ;;  %v4165_v28 = vsel %vm289_vm3, %v7424_v38, %v7642_v40  ;;  %v7806_v40 = vld [vmem:[#allocation5 + $0x120] sm:$0xff] }
 0x7c6   : > { %3833 = vrot.lane.b32.xlu1 %v7673_v14, %s6387_s4  ;;  %v4323_v20 = vsel %vm304_vm9, %v4291_v2, %v3820_v54  ;;  %v4228_v54 = vsel %vm295_vm6, %v4196_v1, %v7656_v5 }
 0x7c7   : > { %3835 = vrot.lane.b32.xlu0 %v7679_v45, %s6387_s4  ;;  %v4355_v19 = vsel %vm307_vm10, %v4323_v20, %v3948_v24  ;;  %v2898_v20 = vld [vmem:[#allocation5 + $0x121] sm:$0xff] }
 0x7c8   : > { %v7685_v30 = vpop.permute.xlu1 %3185 }
 0x7c9   : > { %v4072_v12 = vpop.permute.xlu0 %4071 }
 0x7ca   : > { %v4385_v43 = vsel %vm310_vm11, %v4353_v3, %v4072_v12  ;;  %3453 = vrot.lane.b32.xlu1 %v7673_v14, %s6383_s29  ;;  %v3115_v12 = vld [vmem:[#allocation5 + $0xf2] sm:$0xff] }
 0x7cb   : > { %3455 = vrot.lane.b32.xlu0 %v7679_v45, %s6383_s29  ;;  %5849 = vmatprep.mubr.msk.f32.mxu1 %vm323_vm12, %v4385_v43 }
 0x7cc   : > { %v3694_v42 = vpop.permute.xlu1 %3693 }
 0x7cd   : > { %v3566_v57 = vpop.permute.xlu0 %3565 }
 0x7ce   : > { %3961 = vrot.lane.b32.xlu1 %v3082_v11, %s6388_s5  ;;  %v4260_v32 = vsel %vm298_vm7, %v4228_v54, %v3566_v57  ;;  %v3116_v57 = vld [vmem:[#allocation5 + $0xfa] sm:$0xff] }
 0x7cf   : > { %3963 = vrot.lane.b32.xlu0 %v2894_v16, %s6388_s5  ;;  %v4292_v36 = vsel %vm301_vm8, %v4260_v32, %v3694_v42 }
 0x7d0   : > { %v7712_v4 = vpop.permute.xlu1 %3313 }
 0x7d1   : > { %v4074_v59 = vpop.permute.xlu0 %4073 }
 0x7d2   : > { %v4386_v46 = vsel %vm310_vm11, %v4354_v15, %v4074_v59  ;;  %3707 = vrot.lane.b32.xlu1 %v3018_v26, %s6385_s3 }
 0x7d3   : > { %3583 = vrot.lane.b32.xlu0 %v2894_v16, %s6384_s30  ;;  %5850 = vmatmul.mubr.msk.f32.gmra.mxu1 %vm323_vm12, %v4386_v46 }
 0x7d4   : > { %v3822_v29 = vpop.permute.xlu1 %3821 }
 0x7d5   : > { %v7722_v25 = vpop.permute.xlu0 %3311  ;;  %v4324_v16 = vsel %vm304_vm9, %v4292_v36, %v3822_v29 }
 0x7d6   : > { %3201 = vrot.lane.b32.xlu1 %v3082_v11, %s6381_s14  ;;  %v4197_v46 = vsel %vm292_vm4, %v4165_v28, %v7722_v25  ;;  %v3023_v28 = vld [vmem:[#allocation5 + $0x112] sm:$0xff] }
 0x7d7   : > { %4087 = vrot.lane.b32.xlu0 %v3018_v26, %s6389_s6  ;;  %v4229_v58 = vsel %vm295_vm6, %v4197_v46, %v7658_v47 }
 0x7d8   : > { %v7727_v63 = vpop.permute.xlu1 %3441  ;;  %v4261_v38 = vsel %vm298_vm7, %v4229_v58, %v7671_v8  ;;  %v4166_v8 = vsel %vm289_vm3, %v7441_v53, %v7685_v30  ;;  %v4167_v53 = vsel %vm289_vm3, %v7445_v55, %v7646_v34 }
 0x7d9   : > { %v4076_v48 = vpop.permute.xlu0 %4075 }
 0x7da   : > { %v4387_v52 = vsel %vm310_vm11, %v4355_v19, %v4076_v48  ;;  %3709 = vrot.lane.b32.xlu1 %v3019_v39, %s6385_s3 }
 0x7db   : > { %3581 = vrot.lane.b32.xlu0 %v3082_v11, %s6384_s30  ;;  %5852 = vmatprep.mubr.msk.f32.mxu1 %vm323_vm12, %v4387_v52 }
 0x7dc   : > { %v3950_v31 = vpop.permute.xlu1 %3949 }
 0x7dd   : > { %v7742_v24 = vpop.permute.xlu0 %3569  ;;  %v4356_v5 = vsel %vm307_vm10, %v4324_v16, %v3950_v31  ;;  %v4198_v31 = vsel %vm292_vm4, %v4166_v8, %v7712_v4 }
 0x7de   : > { %3329 = vrot.lane.b32.xlu1 %v3019_v39, %s6382_s15  ;;  %v4230_v16 = vsel %vm295_vm6, %v4198_v31, %v7727_v63  ;;  %v3088_v31 = vld [vmem:[#allocation5 + $0x129] sm:$0xff] }
 0x7df   : > { %4089 = vrot.lane.b32.xlu0 %v3019_v39, %s6389_s6  ;;  %v7800_v39 = vld [vmem:[#allocation5 + $0x110] sm:$0xff] }
 0x7e0   : > { %v3696_v61 = vpop.permute.xlu1 %3695 }
 0x7e1   : > { %v4078_v0 = vpop.permute.xlu0 %4077  ;;  %v4293_v25 = vsel %vm301_vm8, %v4261_v38, %v3696_v61  ;;  %v7876_v38 = vld [vmem:[#allocation5 + $0x128] sm:$0xff] }
 0x7e2   : > { %v4388_v41 = vsel %vm310_vm11, %v4356_v5, %v4078_v0  ;;  %3837 = vrot.lane.b32.xlu1 %v7749_v56, %s6387_s4  ;;  %v3086_v5 = vld [vmem:[#allocation5 + $0x111] sm:$0xff]  ;;  %v4262_v0 = vsel %vm298_vm7, %v4230_v16, %v7742_v24 }
 0x7e3   : > { %3327 = vrot.lane.b32.xlu0 %v3018_v26, %s6382_s15  ;;  %5853 = vmatmul.mubr.msk.f32.gmra.mxu1 %vm323_vm12, %v4388_v41  ;;  %v2896_v26 = vld [vmem:[#allocation5 + $0x109] sm:$0xff] }
 0x7e4   : > { %v7756_v13 = vpop.permute.xlu1 %3189 }
 0x7e5   : > { %v7758_v3 = vpop.permute.xlu0 %3315 }
 0x7e6   : > { %3457 = vrot.lane.b32.xlu1 %v7749_v56, %s6383_s29  ;;  %v4199_v4 = vsel %vm292_vm4, %v4167_v53, %v7758_v3 }
 0x7e7   : > { %4091 = vrot.lane.b32.xlu0 %v3115_v12, %s6389_s6 }
 0x7e8   : > { %v3698_v43 = vpop.permute.xlu1 %3697 }
 0x7e9   : > { %v3824_v62 = vpop.permute.xlu0 %3823  ;;  %v4294_v30 = vsel %vm301_vm8, %v4262_v0, %v3698_v43 }
 0x7ea   : > { %3965 = vrot.lane.b32.xlu1 %v3084_v50, %s6388_s5  ;;  %v4325_v47 = vsel %vm304_vm9, %v4293_v25, %v3824_v62 }
 0x7eb   : > { %3585 = vrot.lane.b32.xlu0 %v3084_v50, %s6384_s30 }
 0x7ec   : > { %v7765_v42 = vpop.permute.xlu1 %3317 }
 0x7ed   : > { %v3444_v49 = vpop.permute.xlu0 %3443 }
 0x7ee   : > { %3711 = vrot.lane.b32.xlu1 %v3115_v12, %s6385_s3 }
 0x7ef   : > { %4093 = vrot.lane.b32.xlu0 %v3116_v57, %s6389_s6 }
 0x7f0   : > { %v7769_v11 = vpop.permute.xlu1 %3191 }
 0x7f1   : > { %v3952_v17 = vpop.permute.xlu0 %3951 }
 0x7f2   : > { %3205 = vrot.lane.b32.xlu1 %v3084_v50, %s6381_s14  ;;  %v4357_v52 = vsel %vm307_vm10, %v4325_v47, %v3952_v17  ;;  %v3022_v50 = vld [vmem:[#allocation5 + $0x10a] sm:$0xff] }
 0x7f3   : > { %3331 = vrot.lane.b32.xlu0 %v3115_v12, %s6382_s15  ;;  %v4231_v12 = vsel %vm295_vm6, %v4199_v4, %v3444_v49  ;;  %v7903_v4 = vld [vmem:[#allocation5 + $0x138] sm:$0xff] }
 0x7f4   : > { %v7773_v33 = vpop.permute.xlu1 %3195 }
 0x7f5   : > { %v3572_v21 = vpop.permute.xlu0 %3571 }
 0x7f6   : > { %3713 = vrot.lane.b32.xlu1 %v3116_v57, %s6385_s3 }
 0x7f7   : > { %3839 = vrot.lane.b32.xlu0 %v7776_v37, %s6387_s4 }
 0x7f8   : > { %v3826_v60 = vpop.permute.xlu1 %3825 }
 0x7f9   : > { %v3828_v18 = vpop.permute.xlu0 %3827  ;;  %v4326_v63 = vsel %vm304_vm9, %v4294_v30, %v3826_v60 }
 0x7fa   : > { %3333 = vrot.lane.b32.xlu1 %v3116_v57, %s6382_s15  ;;  %v4263_v57 = vsel %vm298_vm7, %v4231_v12, %v3572_v21  ;;  %v4168_v21 = vsel %vm289_vm3, %v7495_v35, %v7756_v13 }
 0x7fb   : > { %3459 = vrot.lane.b32.xlu0 %v7776_v37, %s6383_s29  ;;  %v4200_v46 = vsel %vm292_vm4, %v4168_v21, %v7765_v42 }
 0x7fc   : > { %v7783_v15 = vpop.permute.xlu1 %3445 }
 0x7fd   : > { %v7785_v59 = vpop.permute.xlu0 %3447 }
 0x7fe   : > { %3207 = vrot.lane.b32.xlu1 %v2896_v26, %s6381_s14 }
 0x7ff   : > { %3967 = vrot.lane.b32.xlu0 %v2896_v26, %s6388_s5 }
 0x800   : > { %v3954_v2 = vpop.permute.xlu1 %3953 }
 0x801   : > { %v3956_v29 = vpop.permute.xlu0 %3955  ;;  %v4358_v24 = vsel %vm307_vm10, %v4326_v63, %v3954_v2 }
 0x802   : > { %3211 = vrot.lane.b32.xlu1 %v2898_v20, %s6381_s14 }
 0x803   : > { %3587 = vrot.lane.b32.xlu0 %v2896_v26, %s6384_s30 }
 0x804   : > { %v3700_v19 = vpop.permute.xlu1 %3699 }
 0x805   : > { %v7798_v48 = vpop.permute.xlu0 %3575  ;;  %v4295_v34 = vsel %vm301_vm8, %v4263_v57, %v3700_v19  ;;  %v4169_v57 = vsel %vm289_vm3, %v7522_v9, %v7769_v11  ;;  %v7933_v11 = vld [vmem:[#allocation5 + $0x150] sm:$0xff] }
 0x806   : > { %3841 = vrot.lane.b32.xlu1 %v7800_v39, %s6387_s4  ;;  %v4327_v49 = vsel %vm304_vm9, %v4295_v34, %v3828_v18  ;;  %v4232_v18 = vsel %vm295_vm6, %v4200_v46, %v7783_v15 }
 0x807   : > { %3843 = vrot.lane.b32.xlu0 %v7806_v40, %s6387_s4  ;;  %v4359_v60 = vsel %vm307_vm10, %v4327_v49, %v3956_v29  ;;  %v2902_v49 = vld [vmem:[#allocation5 + $0x151] sm:$0xff] }
 0x808   : > { %v7812_v1 = vpop.permute.xlu1 %3193 }
 0x809   : > { %v4080_v54 = vpop.permute.xlu0 %4079 }
 0x80a   : > { %v4389_v32 = vsel %vm310_vm11, %v4357_v52, %v4080_v54  ;;  %3461 = vrot.lane.b32.xlu1 %v7800_v39, %s6383_s29  ;;  %v3119_v54 = vld [vmem:[#allocation5 + $0x122] sm:$0xff] }
 0x80b   : > { %3463 = vrot.lane.b32.xlu0 %v7806_v40, %s6383_s29  ;;  %5855 = vmatprep.mubr.msk.f32.mxu1 %vm323_vm12, %v4389_v32 }
 0x80c   : > { %v3702_v36 = vpop.permute.xlu1 %3701 }
 0x80d   : > { %v3574_v61 = vpop.permute.xlu0 %3573 }
 0x80e   : > { %3969 = vrot.lane.b32.xlu1 %v3086_v5, %s6388_s5  ;;  %v4264_v35 = vsel %vm298_vm7, %v4232_v18, %v3574_v61  ;;  %v3120_v61 = vld [vmem:[#allocation5 + $0x12a] sm:$0xff] }
 0x80f   : > { %3971 = vrot.lane.b32.xlu0 %v2898_v20, %s6388_s5  ;;  %v4296_v42 = vsel %vm301_vm8, %v4264_v35, %v3702_v36 }
 0x810   : > { %v7839_v41 = vpop.permute.xlu1 %3321 }
 0x811   : > { %v4082_v62 = vpop.permute.xlu0 %4081 }
 0x812   : > { %v4390_v55 = vsel %vm310_vm11, %v4358_v24, %v4082_v62  ;;  %3715 = vrot.lane.b32.xlu1 %v3022_v50, %s6385_s3 }
 0x813   : > { %3591 = vrot.lane.b32.xlu0 %v2898_v20, %s6384_s30  ;;  %5856 = vmatmul.mubr.msk.f32.gmra.mxu1 %vm323_vm12, %v4390_v55 }
 0x814   : > { %v3830_v3 = vpop.permute.xlu1 %3829 }
 0x815   : > { %v7849_v43 = vpop.permute.xlu0 %3319  ;;  %v4328_v20 = vsel %vm304_vm9, %v4296_v42, %v3830_v3 }
 0x816   : > { %3209 = vrot.lane.b32.xlu1 %v3086_v5, %s6381_s14  ;;  %v4201_v55 = vsel %vm292_vm4, %v4169_v57, %v7849_v43  ;;  %v3027_v57 = vld [vmem:[#allocation5 + $0x142] sm:$0xff] }
 0x817   : > { %4095 = vrot.lane.b32.xlu0 %v3022_v50, %s6389_s6  ;;  %v4233_v21 = vsel %vm295_vm6, %v4201_v55, %v7785_v59 }
 0x818   : > { %v7854_v17 = vpop.permute.xlu1 %3449  ;;  %v4265_v9 = vsel %vm298_vm7, %v4233_v21, %v7798_v48  ;;  %v4170_v48 = vsel %vm289_vm3, %v7546_v23, %v7812_v1  ;;  %v4171_v23 = vsel %vm289_vm3, %v7552_v44, %v7773_v33 }
 0x819   : > { %v4084_v26 = vpop.permute.xlu0 %4083 }
 0x81a   : > { %v4391_v2 = vsel %vm310_vm11, %v4359_v60, %v4084_v26  ;;  %3717 = vrot.lane.b32.xlu1 %v3023_v28, %s6385_s3 }
 0x81b   : > { %3589 = vrot.lane.b32.xlu0 %v3086_v5, %s6384_s30  ;;  %5858 = vmatprep.mubr.msk.f32.mxu1 %vm323_vm12, %v4391_v2 }
 0x81c   : > { %v3958_v13 = vpop.permute.xlu1 %3957 }
 0x81d   : > { %v7869_v29 = vpop.permute.xlu0 %3577  ;;  %v4360_v15 = vsel %vm307_vm10, %v4328_v20, %v3958_v13  ;;  %v4202_v13 = vsel %vm292_vm4, %v4170_v48, %v7839_v41 }
 0x81e   : > { %3337 = vrot.lane.b32.xlu1 %v3023_v28, %s6382_s15  ;;  %v4234_v20 = vsel %vm295_vm6, %v4202_v13, %v7854_v17  ;;  %v3092_v13 = vld [vmem:[#allocation5 + $0x159] sm:$0xff] }
 0x81f   : > { %4097 = vrot.lane.b32.xlu0 %v3023_v28, %s6389_s6  ;;  %v7927_v28 = vld [vmem:[#allocation5 + $0x140] sm:$0xff] }
 0x820   : > { %v3704_v58 = vpop.permute.xlu1 %3703 }
 0x821   : > { %v4086_v19 = vpop.permute.xlu0 %4085  ;;  %v4297_v43 = vsel %vm301_vm8, %v4265_v9, %v3704_v58  ;;  %v8003_v9 = vld [vmem:[#allocation5 + $0x158] sm:$0xff] }
 0x822   : > { %v4392_v25 = vsel %vm310_vm11, %v4360_v15, %v4086_v19  ;;  %3845 = vrot.lane.b32.xlu1 %v7876_v38, %s6387_s4  ;;  %v3090_v15 = vld [vmem:[#allocation5 + $0x141] sm:$0xff]  ;;  %v4266_v19 = vsel %vm298_vm7, %v4234_v20, %v7869_v29 }
 0x823   : > { %3335 = vrot.lane.b32.xlu0 %v3022_v50, %s6382_s15  ;;  %5859 = vmatmul.mubr.msk.f32.gmra.mxu1 %vm323_vm12, %v4392_v25  ;;  %v2900_v50 = vld [vmem:[#allocation5 + $0x139] sm:$0xff] }
 0x824   : > { %v7883_v47 = vpop.permute.xlu1 %3197 }
 0x825   : > { %v7885_v52 = vpop.permute.xlu0 %3323 }
 0x826   : > { %3465 = vrot.lane.b32.xlu1 %v7876_v38, %s6383_s29  ;;  %v4203_v41 = vsel %vm292_vm4, %v4171_v23, %v7885_v52 }
 0x827   : > { %4099 = vrot.lane.b32.xlu0 %v3119_v54, %s6389_s6 }
 0x828   : > { %v3706_v32 = vpop.permute.xlu1 %3705 }
 0x829   : > { %v3832_v8 = vpop.permute.xlu0 %3831  ;;  %v4298_v1 = vsel %vm301_vm8, %v4266_v19, %v3706_v32 }
 0x82a   : > { %3973 = vrot.lane.b32.xlu1 %v3088_v31, %s6388_s5  ;;  %v4329_v59 = vsel %vm304_vm9, %v4297_v43, %v3832_v8 }
 0x82b   : > { %3593 = vrot.lane.b32.xlu0 %v3088_v31, %s6384_s30 }
 0x82c   : > { %v7892_v36 = vpop.permute.xlu1 %3325 }
 0x82d   : > { %v3452_v16 = vpop.permute.xlu0 %3451 }
 0x82e   : > { %3719 = vrot.lane.b32.xlu1 %v3119_v54, %s6385_s3 }
 0x82f   : > { %4101 = vrot.lane.b32.xlu0 %v3120_v61, %s6389_s6 }
 0x830   : > { %v7896_v5 = vpop.permute.xlu1 %3199 }
 0x831   : > { %v3960_v0 = vpop.permute.xlu0 %3959 }
 0x832   : > { %3213 = vrot.lane.b32.xlu1 %v3088_v31, %s6381_s14  ;;  %v4361_v2 = vsel %vm307_vm10, %v4329_v59, %v3960_v0  ;;  %v3026_v31 = vld [vmem:[#allocation5 + $0x13a] sm:$0xff] }
 0x833   : > { %3339 = vrot.lane.b32.xlu0 %v3119_v54, %s6382_s15  ;;  %v4235_v54 = vsel %vm295_vm6, %v4203_v41, %v3452_v16  ;;  %v8032_v41 = vld [vmem:[#allocation5 + $0x168] sm:$0xff] }
 0x834   : > { %v7900_v53 = vpop.permute.xlu1 %3203 }
 0x835   : > { %v3580_v30 = vpop.permute.xlu0 %3579 }
 0x836   : > { %3721 = vrot.lane.b32.xlu1 %v3120_v61, %s6385_s3 }
 0x837   : > { %3847 = vrot.lane.b32.xlu0 %v7903_v4, %s6387_s4 }
 0x838   : > { %v3834_v63 = vpop.permute.xlu1 %3833 }
 0x839   : > { %v3836_v12 = vpop.permute.xlu0 %3835  ;;  %v4330_v17 = vsel %vm304_vm9, %v4298_v1, %v3834_v63 }
 0x83a   : > { %3341 = vrot.lane.b32.xlu1 %v3120_v61, %s6382_s15  ;;  %v4267_v61 = vsel %vm298_vm7, %v4235_v54, %v3580_v30  ;;  %v4172_v30 = vsel %vm289_vm3, %v7622_v51, %v7883_v47 }
 0x83b   : > { %3467 = vrot.lane.b32.xlu0 %v7903_v4, %s6383_s29  ;;  %v4204_v55 = vsel %vm292_vm4, %v4172_v30, %v7892_v36 }
 0x83c   : > { %v7910_v24 = vpop.permute.xlu1 %3453 }
 0x83d   : > { %v7912_v62 = vpop.permute.xlu0 %3455 }
 0x83e   : > { %3215 = vrot.lane.b32.xlu1 %v2900_v50, %s6381_s14 }
 0x83f   : > { %3975 = vrot.lane.b32.xlu0 %v2900_v50, %s6388_s5 }
 0x840   : > { %v3962_v34 = vpop.permute.xlu1 %3961 }
 0x841   : > { %v3964_v3 = vpop.permute.xlu0 %3963  ;;  %v4362_v29 = vsel %vm307_vm10, %v4330_v17, %v3962_v34 }
 0x842   : > { %3219 = vrot.lane.b32.xlu1 %v2902_v49, %s6381_s14 }
 0x843   : > { %3595 = vrot.lane.b32.xlu0 %v2900_v50, %s6384_s30 }
 0x844   : > { %v3708_v60 = vpop.permute.xlu1 %3707 }
 0x845   : > { %v7925_v26 = vpop.permute.xlu0 %3583  ;;  %v4299_v33 = vsel %vm301_vm8, %v4267_v61, %v3708_v60  ;;  %v4173_v61 = vsel %vm289_vm3, %v7649_v10, %v7896_v5  ;;  %v3063_v5 = vld [vmem:[#allocation5 + $0x180] sm:$0xff] }
 0x846   : > { %3849 = vrot.lane.b32.xlu1 %v7927_v28, %s6387_s4  ;;  %v4331_v16 = vsel %vm304_vm9, %v4299_v33, %v3836_v12  ;;  %v4236_v12 = vsel %vm295_vm6, %v4204_v55, %v7910_v24 }
 0x847   : > { %3851 = vrot.lane.b32.xlu0 %v7933_v11, %s6387_s4  ;;  %v4363_v63 = vsel %vm307_vm10, %v4331_v16, %v3964_v3  ;;  %v8050_v16 = vld [vmem:[#allocation5 + $0x170] sm:$0xff] }
 0x848   : > { %v7939_v46 = vpop.permute.xlu1 %3201 }
 0x849   : > { %v4088_v18 = vpop.permute.xlu0 %4087 }
 0x84a   : > { %v4393_v35 = vsel %vm310_vm11, %v4361_v2, %v4088_v18  ;;  %3469 = vrot.lane.b32.xlu1 %v7927_v28, %s6383_s29  ;;  %v3123_v18 = vld [vmem:[#allocation5 + $0x152] sm:$0xff] }
 0x84b   : > { %3471 = vrot.lane.b32.xlu0 %v7933_v11, %s6383_s29  ;;  %5861 = vmatprep.mubr.msk.f32.mxu1 %vm323_vm12, %v4393_v35 }
 0x84c   : > { %v3710_v42 = vpop.permute.xlu1 %3709 }
 0x84d   : > { %v3582_v58 = vpop.permute.xlu0 %3581 }
 0x84e   : > { %3977 = vrot.lane.b32.xlu1 %v3090_v15, %s6388_s5  ;;  %v4268_v51 = vsel %vm298_vm7, %v4236_v12, %v3582_v58  ;;  %v3124_v58 = vld [vmem:[#allocation5 + $0x15a] sm:$0xff]  ;;  %v3094_v12 = vld [vmem:[#allocation5 + $0x171] sm:$0xff] }
 0x84f   : > { %3979 = vrot.lane.b32.xlu0 %v2902_v49, %s6388_s5  ;;  %v4300_v36 = vsel %vm301_vm8, %v4268_v51, %v3710_v42 }
 0x850   : > { %v7966_v25 = vpop.permute.xlu1 %3329 }
 0x851   : > { %v4090_v8 = vpop.permute.xlu0 %4089 }
 0x852   : > { %v4394_v44 = vsel %vm310_vm11, %v4362_v29, %v4090_v8  ;;  %3723 = vrot.lane.b32.xlu1 %v3026_v31, %s6385_s3 }
 0x853   : > { %3599 = vrot.lane.b32.xlu0 %v2902_v49, %s6384_s30  ;;  %5862 = vmatmul.mubr.msk.f32.gmra.mxu1 %vm323_vm12, %v4394_v44 }
 0x854   : > { %v3838_v52 = vpop.permute.xlu1 %3837 }
 0x855   : > { %v7976_v32 = vpop.permute.xlu0 %3327  ;;  %v4332_v49 = vsel %vm304_vm9, %v4300_v36, %v3838_v52 }
 0x856   : > { %3217 = vrot.lane.b32.xlu1 %v3090_v15, %s6381_s14  ;;  %v4205_v44 = vsel %vm292_vm4, %v4173_v61, %v7976_v32 }
 0x857   : > { %4103 = vrot.lane.b32.xlu0 %v3026_v31, %s6389_s6  ;;  %v4237_v30 = vsel %vm295_vm6, %v4205_v44, %v7912_v62 }
 0x858   : > { %v7981_v0 = vpop.permute.xlu1 %3457  ;;  %v4269_v10 = vsel %vm298_vm7, %v4237_v30, %v7925_v26  ;;  %v4174_v26 = vsel %vm289_vm3, %v7673_v14, %v7939_v46  ;;  %v4175_v14 = vsel %vm289_vm3, %v7679_v45, %v7900_v53 }
 0x859   : > { %v4092_v50 = vpop.permute.xlu0 %4091 }
 0x85a   : > { %v4395_v34 = vsel %vm310_vm11, %v4363_v63, %v4092_v50  ;;  %3725 = vrot.lane.b32.xlu1 %v3027_v57, %s6385_s3 }
 0x85b   : > { %3597 = vrot.lane.b32.xlu0 %v3090_v15, %s6384_s30  ;;  %5864 = vmatprep.mubr.msk.f32.mxu1 %vm323_vm12, %v4395_v34 }
 0x85c   : > { %v3966_v47 = vpop.permute.xlu1 %3965 }
 0x85d   : > { %v7996_v3 = vpop.permute.xlu0 %3585  ;;  %v4364_v24 = vsel %vm307_vm10, %v4332_v49, %v3966_v47  ;;  %v4206_v47 = vsel %vm292_vm4, %v4174_v26, %v7966_v25 }
 0x85e   : > { %3345 = vrot.lane.b32.xlu1 %v3027_v57, %s6382_s15  ;;  %v4238_v49 = vsel %vm295_vm6, %v4206_v47, %v7981_v0 }
 0x85f   : > { %4105 = vrot.lane.b32.xlu0 %v3027_v57, %s6389_s6 }
 0x860   : > { %v3712_v21 = vpop.permute.xlu1 %3711 }
 0x861   : > { %v4094_v60 = vpop.permute.xlu0 %4093  ;;  %v4301_v32 = vsel %vm301_vm8, %v4269_v10, %v3712_v21 }
 0x862   : > { %v4396_v43 = vsel %vm310_vm11, %v4364_v24, %v4094_v60  ;;  %3853 = vrot.lane.b32.xlu1 %v8003_v9, %s6387_s4  ;;  %v3030_v24 = vld [vmem:[#allocation5 + $0x16a] sm:$0xff]  ;;  %v4270_v60 = vsel %vm298_vm7, %v4238_v49, %v7996_v3 }
 0x863   : > { %3343 = vrot.lane.b32.xlu0 %v3026_v31, %s6382_s15  ;;  %5865 = vmatmul.mubr.msk.f32.gmra.mxu1 %vm323_vm12, %v4396_v43  ;;  %v2904_v31 = vld [vmem:[#allocation5 + $0x169] sm:$0xff]  ;;  %v3095_v43 = vld [vmem:[#allocation5 + $0x181] sm:$0xff] }
 0x864   : > { %v8010_v59 = vpop.permute.xlu1 %3205  ;;  %v3128_v49 = vld [vmem:[#allocation5 + $0x18a] sm:$0xff] }
 0x865   : > { %v8012_v2 = vpop.permute.xlu0 %3331 }
 0x866   : > { %3473 = vrot.lane.b32.xlu1 %v8003_v9, %s6383_s29  ;;  %v4207_v25 = vsel %vm292_vm4, %v4175_v14, %v8012_v2 }
 0x867   : > { %4107 = vrot.lane.b32.xlu0 %v3123_v18, %s6389_s6 }
 0x868   : > { %v8017_v35 = vpop.permute.xlu1 %3713 }
 0x869   : > { %v3840_v48 = vpop.permute.xlu0 %3839  ;;  %v4302_v46 = vsel %vm301_vm8, %v4270_v60, %v8017_v35  ;;  %v3130_v60 = vld [vmem:[#allocation5 + $0x1a2] sm:$0xff] }
 0x86a   : > { %3981 = vrot.lane.b32.xlu1 %v3092_v13, %s6388_s5  ;;  %v4333_v57 = vsel %vm304_vm9, %v4301_v32, %v3840_v48 }
 0x86b   : > { %3601 = vrot.lane.b32.xlu0 %v3092_v13, %s6384_s30 }
 0x86c   : > { %v8021_v42 = vpop.permute.xlu1 %3333 }
 0x86d   : > { %v3460_v20 = vpop.permute.xlu0 %3459 }
 0x86e   : > { %3727 = vrot.lane.b32.xlu1 %v3123_v18, %s6385_s3  ;;  %v4239_v3 = vsel %vm295_vm6, %v4207_v25, %v3460_v20 }
 0x86f   : > { %4109 = vrot.lane.b32.xlu0 %v3124_v58, %s6389_s6 }
 0x870   : > { %v8025_v15 = vpop.permute.xlu1 %3207 }
 0x871   : > { %v3968_v19 = vpop.permute.xlu0 %3967 }
 0x872   : > { %3221 = vrot.lane.b32.xlu1 %v3092_v13, %s6381_s14  ;;  %v4365_v62 = vsel %vm307_vm10, %v4333_v57, %v3968_v19  ;;  %v3031_v19 = vld [vmem:[#allocation5 + $0x172] sm:$0xff] }
 0x873   : > { %3347 = vrot.lane.b32.xlu0 %v3123_v18, %s6382_s15 }
 0x874   : > { %v8029_v23 = vpop.permute.xlu1 %3211 }
 0x875   : > { %v3588_v1 = vpop.permute.xlu0 %3587 }
 0x876   : > { %3729 = vrot.lane.b32.xlu1 %v3124_v58, %s6385_s3 }
 0x877   : > { %3855 = vrot.lane.b32.xlu0 %v8032_v41, %s6387_s4 }
 0x878   : > { %v3842_v17 = vpop.permute.xlu1 %3841 }
 0x879   : > { %v3844_v54 = vpop.permute.xlu0 %3843  ;;  %v4334_v0 = vsel %vm304_vm9, %v4302_v46, %v3842_v17  ;;  %v4176_v17 = vsel %vm289_vm3, %v7749_v56, %v8010_v59 }
 0x87a   : > { %3349 = vrot.lane.b32.xlu1 %v3124_v58, %s6382_s15  ;;  %v4271_v58 = vsel %vm298_vm7, %v4239_v3, %v3588_v1  ;;  %v4208_v44 = vsel %vm292_vm4, %v4176_v17, %v8021_v42 }
 0x87b   : > { %3475 = vrot.lane.b32.xlu0 %v8032_v41, %s6383_s29 }
 0x87c   : > { %v8039_v29 = vpop.permute.xlu1 %3461 }
 0x87d   : > { %v8041_v8 = vpop.permute.xlu0 %3463 }
 0x87e   : > { %3223 = vrot.lane.b32.xlu1 %v2904_v31, %s6381_s14 }
 0x87f   : > { %3983 = vrot.lane.b32.xlu0 %v2904_v31, %s6388_s5 }
 0x880   : > { %v3970_v33 = vpop.permute.xlu1 %3969 }
 0x881   : > { %v3972_v52 = vpop.permute.xlu0 %3971  ;;  %v4366_v48 = vsel %vm307_vm10, %v4334_v0, %v3970_v33 }
 0x882   : > { %3857 = vrot.lane.b32.xlu1 %v8050_v16, %s6387_s4 }
 0x883   : > { %3603 = vrot.lane.b32.xlu0 %v2904_v31, %s6384_s30 }
 0x884   : > { %v3716_v63 = vpop.permute.xlu1 %3715 }
 0x885   : > { %v8057_v50 = vpop.permute.xlu0 %3591  ;;  %v4303_v53 = vsel %vm301_vm8, %v4271_v58, %v3716_v63 }
 0x886   : > { %3477 = vrot.lane.b32.xlu1 %v8050_v16, %s6383_s29  ;;  %v4335_v20 = vsel %vm304_vm9, %v4303_v53, %v3844_v54  ;;  %v4240_v54 = vsel %vm295_vm6, %v4208_v44, %v8039_v29 }
 0x887   : > { %3859 = vrot.lane.b32.xlu0 %v3063_v5, %s6387_s4  ;;  %v4367_v31 = vsel %vm307_vm10, %v4335_v20, %v3972_v52  ;;  %v3064_v52 = vld [vmem:[#allocation5 + $0x188] sm:$0xff] }
 0x888   : > { %v8066_v55 = vpop.permute.xlu1 %3209 }
 0x889   : > { %v4096_v34 = vpop.permute.xlu0 %4095 }
 0x88a   : > { %v4397_v51 = vsel %vm310_vm11, %v4365_v62, %v4096_v34  ;;  %3985 = vrot.lane.b32.xlu1 %v3094_v12, %s6388_s5  ;;  %v3096_v34 = vld [vmem:[#allocation5 + $0x189] sm:$0xff] }
 0x88b   : > { %3479 = vrot.lane.b32.xlu0 %v3063_v5, %s6383_s29  ;;  %5867 = vmatprep.mubr.msk.f32.mxu1 %vm323_vm12, %v4397_v51 }
 0x88c   : > { %v3718_v36 = vpop.permute.xlu1 %3717 }
 0x88d   : > { %v3590_v21 = vpop.permute.xlu0 %3589 }
 0x88e   : > { %3731 = vrot.lane.b32.xlu1 %v3030_v24, %s6385_s3  ;;  %v4272_v30 = vsel %vm298_vm7, %v4240_v54, %v3590_v21  ;;  %v3129_v21 = vld [vmem:[#allocation5 + $0x19a] sm:$0xff] }
 0x88f   : > { %3987 = vrot.lane.b32.xlu0 %v3095_v43, %s6388_s5  ;;  %v4304_v42 = vsel %vm301_vm8, %v4272_v30, %v3718_v36 }
 0x890   : > { %v8092_v18 = vpop.permute.xlu1 %3337 }
 0x891   : > { %v4098_v13 = vpop.permute.xlu0 %4097 }
 0x892   : > { %v4398_v45 = vsel %vm310_vm11, %v4366_v48, %v4098_v13  ;;  %3225 = vrot.lane.b32.xlu1 %v3094_v12, %s6381_s14  ;;  %v4177_v13 = vsel %vm289_vm3, %v7776_v37, %v8025_v15 }
 0x893   : > { %3607 = vrot.lane.b32.xlu0 %v3095_v43, %s6384_s30  ;;  %5868 = vmatmul.mubr.msk.f32.gmra.mxu1 %vm323_vm12, %v4398_v45 }
 0x894   : > { %v3846_v2 = vpop.permute.xlu1 %3845 }
 0x895   : > { %v3336_v35 = vpop.permute.xlu0 %3335  ;;  %v4336_v63 = vsel %vm304_vm9, %v4304_v42, %v3846_v2 }
 0x896   : > { %3733 = vrot.lane.b32.xlu1 %v3031_v19, %s6385_s3  ;;  %v4209_v58 = vsel %vm292_vm4, %v4177_v13, %v3336_v35 }
 0x897   : > { %4111 = vrot.lane.b32.xlu0 %v3030_v24, %s6389_s6  ;;  %v4241_v2 = vsel %vm295_vm6, %v4209_v58, %v8041_v8  ;;  %v4178_v8 = vsel %vm289_vm3, %v7800_v39, %v8066_v55 }
 0x898   : > { %v8105_v1 = vpop.permute.xlu1 %3465  ;;  %v4273_v17 = vsel %vm298_vm7, %v4241_v2, %v8057_v50  ;;  %v4210_v50 = vsel %vm292_vm4, %v4178_v8, %v8092_v18 }
 0x899   : > { %v4100_v61 = vpop.permute.xlu0 %4099  ;;  %v4242_v54 = vsel %vm295_vm6, %v4210_v50, %v8105_v1 }
 0x89a   : > { %v4399_v33 = vsel %vm310_vm11, %v4367_v31, %v4100_v61  ;;  %3353 = vrot.lane.b32.xlu1 %v3031_v19, %s6382_s15 }
 0x89b   : > { %3605 = vrot.lane.b32.xlu0 %v3094_v12, %s6384_s30  ;;  %5870 = vmatprep.mubr.msk.f32.mxu1 %vm323_vm12, %v4399_v33  ;;  %v3127_v12 = vld [vmem:[#allocation5 + $0x182] sm:$0xff] }
 0x89c   : > { %v3974_v56 = vpop.permute.xlu1 %3973 }
 0x89d   : > { %v3594_v59 = vpop.permute.xlu0 %3593  ;;  %v4368_v29 = vsel %vm307_vm10, %v4336_v63, %v3974_v56 }
 0x89e   : > { %3861 = vrot.lane.b32.xlu1 %v3064_v52, %s6387_s4  ;;  %v4274_v56 = vsel %vm298_vm7, %v4242_v54, %v3594_v59 }
 0x89f   : > { %4113 = vrot.lane.b32.xlu0 %v3031_v19, %s6389_s6 }
 0x8a0   : > { %v3720_v10 = vpop.permute.xlu1 %3719 }
 0x8a1   : > { %v4102_v5 = vpop.permute.xlu0 %4101  ;;  %v4305_v31 = vsel %vm301_vm8, %v4273_v17, %v3720_v10 }
 0x8a2   : > { %v4400_v32 = vsel %vm310_vm11, %v4368_v29, %v4102_v5  ;;  %3481 = vrot.lane.b32.xlu1 %v3064_v52, %s6383_s29  ;;  %v4179_v52 = vsel %vm289_vm3, %v7806_v40, %v8029_v23 }
 0x8a3   : > { %3351 = vrot.lane.b32.xlu0 %v3030_v24, %s6382_s15  ;;  %5871 = vmatmul.mubr.msk.f32.gmra.mxu1 %vm323_vm12, %v4400_v32 }
 0x8a4   : > { %v8129_v57 = vpop.permute.xlu1 %3213 }
 0x8a5   : > { %v3340_v62 = vpop.permute.xlu0 %3339 }
 0x8a6   : > { %3989 = vrot.lane.b32.xlu1 %v3096_v34, %s6388_s5  ;;  %v4211_v39 = vsel %vm292_vm4, %v4179_v52, %v3340_v62 }
 0x8a7   : > { %4115 = vrot.lane.b32.xlu0 %v3127_v12, %s6389_s6 }
 0x8a8   : > { %v3722_v51 = vpop.permute.xlu1 %3721 }
 0x8a9   : > { %v3848_v26 = vpop.permute.xlu0 %3847  ;;  %v4306_v42 = vsel %vm301_vm8, %v4274_v56, %v3722_v51 }
 0x8aa   : > { %3609 = vrot.lane.b32.xlu1 %v3096_v34, %s6384_s30  ;;  %v4337_v61 = vsel %vm304_vm9, %v4305_v31, %v3848_v26 }
 0x8ab   : > { %3735 = vrot.lane.b32.xlu0 %v3127_v12, %s6385_s3 }
 0x8ac   : > { %v3342_v47 = vpop.permute.xlu1 %3341 }
 0x8ad   : > { %v3468_v36 = vpop.permute.xlu0 %3467 }
 0x8ae   : > { %4117 = vrot.lane.b32.xlu1 %v3128_v49, %s6389_s6  ;;  %v4243_v18 = vsel %vm295_vm6, %v4211_v39, %v3468_v36  ;;  %v4180_v36 = vsel %vm289_vm3, %v7876_v38, %v8129_v57 }
 0x8af   : > { %3737 = vrot.lane.b32.xlu0 %v3128_v49, %s6385_s3 }
 0x8b0   : > { %v3216_v24 = vpop.permute.xlu1 %3215 }
 0x8b1   : > { %v3976_v43 = vpop.permute.xlu0 %3975  ;;  %v4181_v23 = vsel %vm289_vm3, %v7903_v4, %v3216_v24 }
 0x8b2   : > { %4119 = vrot.lane.b32.xlu1 %v3129_v21, %s6389_s6  ;;  %v4369_v37 = vsel %vm307_vm10, %v4337_v61, %v3976_v43 }
 0x8b3   : > { %4121 = vrot.lane.b32.xlu0 %v3130_v60, %s6389_s6  ;;  %v4212_v60 = vsel %vm292_vm4, %v4180_v36, %v3342_v47 }
 0x8b4   : > { %v8139_v14 = vpop.permute.xlu1 %3219 }
 0x8b5   : > { %v3596_v46 = vpop.permute.xlu0 %3595 }
 0x8b6   : > { %v4275_v29 = vsel %vm298_vm7, %v4243_v18, %v3596_v46 }
 0x8b8   : > { %v3850_v25 = vpop.permute.xlu1 %3849 }
 0x8b9   : > { %v3852_v0 = vpop.permute.xlu0 %3851  ;;  %v4338_v55 = vsel %vm304_vm9, %v4306_v42, %v3850_v25 }
 0x8bc   : > { %v3470_v3 = vpop.permute.xlu1 %3469 }
 0x8bd   : > { %v3472_v48 = vpop.permute.xlu0 %3471  ;;  %v4244_v24 = vsel %vm295_vm6, %v4212_v60, %v3470_v3 }
 0x8c0   : > { %v3978_v45 = vpop.permute.xlu1 %3977 }
 0x8c1   : > { %v3980_v53 = vpop.permute.xlu0 %3979  ;;  %v4370_v10 = vsel %vm307_vm10, %v4338_v55, %v3978_v45 }
 0x8c4   : > { %v3724_v19 = vpop.permute.xlu1 %3723 }
 0x8c5   : > { %v3600_v20 = vpop.permute.xlu0 %3599  ;;  %v4307_v5 = vsel %vm301_vm8, %v4275_v29, %v3724_v19 }
 0x8c6   : > { %v4339_v62 = vsel %vm304_vm9, %v4307_v5, %v3852_v0 }
 0x8c7   : > { %v4371_v49 = vsel %vm307_vm10, %v4339_v62, %v3980_v53  ;;  %v8200_v53 = vpop.f32.mrf.mxu1 }
 0x8c8   : > { %v8151_v44 = vpop.permute.xlu1 %3217  ;;  %8969 = vst [vmem:[#allocation12_spill] sm:$0xff] %v8200_v53 }
 0x8c9   : > { %v4104_v15 = vpop.permute.xlu0 %4103  ;;  %v4182_v36 = vsel %vm289_vm3, %v7927_v28, %v8151_v44 }
 0x8ca   : > { %v4401_v35 = vsel %vm310_vm11, %v4369_v37, %v4104_v15 }
 0x8cb   : > { %5873 = vmatprep.mubr.msk.f32.mxu1 %vm323_vm12, %v4401_v35 }
 0x8cc   : > { %v3726_v33 = vpop.permute.xlu1 %3725 }
 0x8cd   : > { %v3598_v30 = vpop.permute.xlu0 %3597 }
 0x8ce   : > { %v4276_v43 = vsel %vm298_vm7, %v4244_v24, %v3598_v30 }
 0x8cf   : > { %v4308_v0 = vsel %vm301_vm8, %v4276_v43, %v3726_v33 }
 0x8d0   : > { %v8170_v63 = vpop.permute.xlu1 %3345 }
 0x8d1   : > { %v4106_v1 = vpop.permute.xlu0 %4105 }
 0x8d2   : > { %v4402_v59 = vsel %vm310_vm11, %v4370_v10, %v4106_v1 }
 0x8d3   : > { %5874 = vmatmul.mubr.msk.f32.gmra.mxu1 %vm323_vm12, %v4402_v59 }
 0x8d4   : > { %v3854_v40 = vpop.permute.xlu1 %3853 }
 0x8d5   : > { %v3344_v32 = vpop.permute.xlu0 %3343 }
 0x8d6   : > { %v4213_v34 = vsel %vm292_vm4, %v4181_v23, %v3344_v32 }
 0x8d7   : > { %v4245_v12 = vsel %vm295_vm6, %v4213_v34, %v3472_v48  ;;  %v4340_v48 = vsel %vm304_vm9, %v4308_v0, %v3854_v40 }
 0x8d8   : > { %v3474_v51 = vpop.permute.xlu1 %3473  ;;  %v4277_v26 = vsel %vm298_vm7, %v4245_v12, %v3600_v20  ;;  %v8204_v20 = vpop.f32.mrf.mxu1 }
 0x8d9   : > { %v4108_v21 = vpop.permute.xlu0 %4107  ;;  %8970 = vst [vmem:[#allocation13_spill] sm:$0xff] %v8204_v20 }
 0x8da   : > { %v4403_v4 = vsel %vm310_vm11, %v4371_v49, %v4108_v21  ;;  %v8206_v31 = vpop.f32.mrf.mxu1  ;;  %v4214_v21 = vsel %vm292_vm4, %v4182_v36, %v8170_v63 }
 0x8db   : > { %5876 = vmatprep.mubr.msk.f32.mxu1 %vm323_vm12, %v4403_v4  ;;  %v4246_v60 = vsel %vm295_vm6, %v4214_v21, %v3474_v51 }
 0x8dc   : > { %v3982_v46 = vpop.permute.xlu1 %3981  ;;  %v8208_v15 = vpop.f32.mrf.mxu1 }
 0x8dd   : > { %v3602_v25 = vpop.permute.xlu0 %3601  ;;  %v4372_v57 = vsel %vm307_vm10, %v4340_v48, %v3982_v46  ;;  %v4183_v46 = vsel %vm289_vm3, %v7933_v11, %v8139_v14 }
 0x8de   : > { %v8210_v8 = vpop.f32.mrf.mxu1  ;;  %v4278_v43 = vsel %vm298_vm7, %v4246_v60, %v3602_v25 }
 0x8e0   : > { %v3728_v38 = vpop.permute.xlu1 %3727  ;;  %v8212_v54 = vpop.f32.mrf.mxu1 }
 0x8e1   : > { %v4110_v13 = vpop.permute.xlu0 %4109  ;;  %v4309_v40 = vsel %vm301_vm8, %v4277_v26, %v3728_v38 }
 0x8e2   : > { %v4404_v47 = vsel %vm310_vm11, %v4372_v57, %v4110_v13  ;;  %v8214_v56 = vpop.f32.mrf.mxu1 }
 0x8e3   : > { %5877 = vmatmul.mubr.msk.f32.gmra.mxu1 %vm323_vm12, %v4404_v47 }
 0x8e4   : > { %v8198_v58 = vpop.permute.xlu1 %3221  ;;  %v8216_v39 = vpop.f32.mrf.mxu1 }
 0x8e5   : > { %v3348_v3 = vpop.permute.xlu0 %3347 }
 0x8e6   : > { %v8218_v18 = vpop.f32.mrf.mxu1  ;;  %v4215_v44 = vsel %vm292_vm4, %v4183_v46, %v3348_v3 }
 0x8e8   : > { %v3730_v45 = vpop.permute.xlu1 %3729  ;;  %v8220_v29 = vpop.f32.mrf.mxu1 }
 0x8e9   : > { %v3856_v2 = vpop.permute.xlu0 %3855  ;;  %v4310_v28 = vsel %vm301_vm8, %v4278_v43, %v3730_v45 }
 0x8ea   : > { %v8222_v5 = vpop.f32.mrf.mxu1  ;;  %v4341_v23 = vsel %vm304_vm9, %v4309_v40, %v3856_v2 }
 0x8ec   : > { %v8202_v19 = vpop.permute.xlu1 %3349  ;;  %v8231_v49 = vpop.f32.mrf.mxu1 }
 0x8ed   : > { %v3476_v17 = vpop.permute.xlu0 %3475 }
 0x8ee   : > { %v8237_v4 = vpop.f32.mrf.mxu1  ;;  %v4247_v51 = vsel %vm295_vm6, %v4215_v44, %v3476_v17 }
 0x8f0   : > { %v3224_v61 = vpop.permute.xlu1 %3223  ;;  %v8246_v63 = vpop.f32.mrf.mxu1 }
 0x8f1   : > { %v3984_v37 = vpop.permute.xlu0 %3983  ;;  %v4185_v2 = vsel %vm289_vm3, %v8032_v41, %v3224_v61 }
 0x8f2   : > { %v4373_v62 = vsel %vm307_vm10, %v4341_v23, %v3984_v37 }
 0x8f4   : > { %v3858_v35 = vpop.permute.xlu1 %3857 }
 0x8f5   : > { %v3604_v50 = vpop.permute.xlu0 %3603  ;;  %v4342_v0 = vsel %vm304_vm9, %v4310_v28, %v3858_v35 }
 0x8f6   : > { %v4279_v25 = vsel %vm298_vm7, %v4247_v51, %v3604_v50  ;;  %v4184_v50 = vsel %vm289_vm3, %v8003_v9, %v8198_v58 }
 0x8f8   : > { %v3478_v33 = vpop.permute.xlu1 %3477 }
 0x8f9   : > { %v3860_v30 = vpop.permute.xlu0 %3859 }
 0x8fc   : > { %v3986_v52 = vpop.permute.xlu1 %3985 }
 0x8fd   : > { %v3480_v42 = vpop.permute.xlu0 %3479  ;;  %v4374_v38 = vsel %vm307_vm10, %v4342_v0, %v3986_v52 }
 0x900   : > { %v3732_v55 = vpop.permute.xlu1 %3731 }
 0x901   : > { %v3988_v10 = vpop.permute.xlu0 %3987  ;;  %v4311_v11 = vsel %vm301_vm8, %v4279_v25, %v3732_v55  ;;  %v4216_v55 = vsel %vm292_vm4, %v4184_v50, %v8202_v19 }
 0x902   : > { %v4343_v17 = vsel %vm304_vm9, %v4311_v11, %v3860_v30  ;;  %v4248_v41 = vsel %vm295_vm6, %v4216_v55, %v3478_v33 }
 0x903   : > { %v4375_v40 = vsel %vm307_vm10, %v4343_v17, %v3988_v10 }
 0x904   : > { %v3226_v1 = vpop.permute.xlu1 %3225 }
 0x905   : > { %v3608_v59 = vpop.permute.xlu0 %3607  ;;  %v4186_v19 = vsel %vm289_vm3, %v8050_v16, %v3226_v1 }
 0x908   : > { %v3734_v32 = vpop.permute.xlu1 %3733 }
 0x909   : > { %v4112_v34 = vpop.permute.xlu0 %4111 }
 0x90a   : > { %v4405_v12 = vsel %vm310_vm11, %v4373_v62, %v4112_v34 }
 0x90b   : > { %5879 = vmatprep.mubr.msk.f32.mxu1 %vm323_vm12, %v4405_v12 }
 0x90c   : > { %v3354_v26 = vpop.permute.xlu1 %3353 }
 0x90d   : > { %v3606_v24 = vpop.permute.xlu0 %3605  ;;  %v4218_v33 = vsel %vm292_vm4, %v4186_v19, %v3354_v26  ;;  %v4744_v19 = vmul.f32 %v8246_v63, %v8246_v63 }
 0x90e   : > { %v4280_v62 = vsel %vm298_vm7, %v4248_v41, %v3606_v24 }
 0x90f   : > { %v4312_v10 = vsel %vm301_vm8, %v4280_v62, %v3734_v32  ;;  %v4745_v62 = vmul.f32 %v8237_v4, %v8237_v4 }
 0x910   : > { %v3862_v48 = vpop.permute.xlu1 %3861 }
 0x911   : > { %v4114_v57 = vpop.permute.xlu0 %4113 }
 0x912   : > { %v4406_v13 = vsel %vm310_vm11, %v4374_v38, %v4114_v57 }
 0x913   : > { %v8253_v14 = vpop.f32.mrf.mxu1  ;;  %5880 = vmatmul.mubr.msk.f32.gmra.mxu1 %vm323_vm12, %v4406_v13 }
 0x914   : > { %v4747_v47 = vmul.f32 %v8253_v14, %v8253_v14  ;;  %v3482_v3 = vpop.permute.xlu1 %3481 }
 0x915   : > { %v3352_v45 = vpop.permute.xlu0 %3351  ;;  %v4250_v36 = vsel %vm295_vm6, %v4218_v33, %v3482_v3 }
 0x916   : > { %v4810_v37 = vsel %vm4764_vm15, %v4747_v47, 0.0  ;;  %v4217_v35 = vsel %vm292_vm4, %v4185_v2, %v3352_v45 }
 0x917   : > { %4811 = vadd.xlane.f32.xlu0 %v4810_v37  ;;  %v4249_v61 = vsel %vm295_vm6, %v4217_v35, %v3480_v42  ;;  %v4344_v42 = vsel %vm304_vm9, %v4312_v10, %v3862_v48  ;;  %v8299_v48 = vpop.f32.mrf.mxu1  ;;  %v4804_v10 = vsel %vm4764_vm15, %v4745_v62, 0.0  ;;  %v4737_v62 = vmul.f32 %v8210_v8, %v8210_v8 }
 0x918   : > { %v3990_v52 = vpop.permute.xlu1 %3989  ;;  %v4281_v9 = vsel %vm298_vm7, %v4249_v61, %v3608_v59 }
 0x919   : > { %v4116_v23 = vpop.permute.xlu0 %4115  ;;  %v4376_v21 = vsel %vm307_vm10, %v4344_v42, %v3990_v52  ;;  %v4743_v42 = vmul.f32 %v8222_v5, %v8222_v5 }
 0x91a   : > { %v4407_v30 = vsel %vm310_vm11, %v4375_v40, %v4116_v23  ;;  %v4746_v23 = vmul.f32 %v8299_v48, %v8299_v48 }
 0x91b   : > { %5882 = vmatprep.mubr.msk.f32.mxu1 %vm323_vm12, %v4407_v30 }
 0x91c   : > { %v3610_v34 = vpop.permute.xlu1 %3609 }
 0x91d   : > { %v3736_v58 = vpop.permute.xlu0 %3735  ;;  %v4282_v24 = vsel %vm298_vm7, %v4250_v36, %v3610_v34  ;;  %v4807_v34 = vsel %vm4764_vm15, %v4746_v23, 0.0  ;;  %v4801_v36 = vsel %vm4764_vm15, %v4744_v19, 0.0  ;;  %v4738_v23 = vmul.f32 %v8216_v39, %v8216_v39 }
 0x91e   : > { %v4313_v12 = vsel %vm301_vm8, %v4281_v9, %v3736_v58  ;;  %v4736_v19 = vmul.f32 %v8212_v54, %v8212_v54 }
 0x91f   : > { %v4345_v59 = vsel %vm304_vm9, %v4313_v12, %v6820_v6 }
 0x920   : > { %v4118_v60 = vpop.permute.xlu1 %4117  ;;  %v4377_v46 = vsel %vm307_vm10, %v4345_v59, %v6822_v7  ;;  %v4798_v59 = vsel %vm4764_vm15, %v4743_v42, 0.0  ;;  %v4735_v42 = vmul.f32 %v8206_v31, %v8206_v31 }
 0x921   : > { %v4408_v16 = vsel %vm310_vm11, %v4376_v21, %v4118_v60  ;;  %v3738_v1 = vpop.permute.xlu0 %3737 }
 0x922   : > { %v4314_v32 = vsel %vm301_vm8, %v4282_v24, %v3738_v1  ;;  %5883 = vmatmul.mubr.msk.f32.gmra.mxu1 %vm323_vm12, %v4408_v16  ;;  %v4742_v24 = vmul.f32 %v8231_v49, %v8231_v49 }
 0x923   : > { %v4346_v26 = vsel %vm304_vm9, %v4314_v32, %v6835_v22  ;;  %v8301_v51 = vpop.f32.mrf.mxu1  ;;  %v4741_v32 = vmul.f32 %v8218_v18, %v8218_v18 }
 0x924   : > { %v4120_v43 = vpop.permute.xlu1 %4119  ;;  %v4378_v28 = vsel %vm307_vm10, %v4346_v26, %v6838_v27  ;;  %v4795_v26 = vsel %vm4764_vm15, %v4742_v24, 0.0  ;;  %v4734_v24 = vmul.f32 %v8208_v15, %v8208_v15 }
 0x925   : > { %v4409_v44 = vsel %vm310_vm11, %v4377_v46, %v4120_v43  ;;  %v4122_v6 = vpop.permute.xlu0 %4121  ;;  %v8303_v22 = vpop.f32.mrf.mxu1 }
 0x926   : > { %v4410_v0 = vsel %vm310_vm11, %v4378_v28, %v4122_v6  ;;  %5885 = vmatprep.mubr.msk.f32.mxu1 %vm323_vm12, %v4409_v44  ;;  %8971 = vst [vmem:[#allocation14_spill] sm:$0xff] %v8303_v22  ;;  %v4740_v28 = vmul.f32 %v8220_v29, %v8220_v29  ;;  %v4792_v44 = vsel %vm4764_vm15, %v4741_v32, 0.0  ;;  %v4733_v32 = vmul.f32 %v8200_v53, %v8200_v53 }
 0x927   : > { %5886 = vmatmul.mubr.msk.f32.gmra.mxu1 %vm323_vm12, %v4410_v0 }
 0x953   : > { %v8305_v38 = vpop.f32.mrf.mxu1 }
 0x955   : > { %v8307_v7 = vpop.f32.mrf.mxu1 }
 0x963   : > { %v8309_v27 = vpop.f32.mrf.mxu1 }
 0x965   : > { %v8311_v57 = vpop.f32.mrf.mxu1 }
 0x993   : > { %v8313_v25 = vpop.f32.mrf.mxu1 }
 0x994   : > { %v4755_v43 = vmul.f32 %v8313_v25, %v8313_v25 }
 0x995   : > { %v8315_v13 = vpop.f32.mrf.mxu1 }
 0x996   : > { %v4754_v6 = vmul.f32 %v8315_v13, %v8315_v13  ;;  %v4834_v0 = vsel %vm4764_vm15, %v4755_v43, 0.0 }
 0x9a3   : > { %v8317_v11 = vpop.f32.mrf.mxu1 }
 0x9a4   : > { %v4757_v21 = vmul.f32 %v8317_v11, %v8317_v11 }
 0x9a5   : > { %v8319_v47 = vpop.f32.mrf.mxu1 }
 0x9a6   : > { %v4756_v16 = vmul.f32 %v8319_v47, %v8319_v47  ;;  %v4840_v1 = vsel %vm4764_vm15, %v4757_v21, 0.0  ;;  %v4749_v21 = vmul.f32 %v8301_v51, %v8301_v51 }
 0x9a8   : > { %v4837_v46 = vsel %vm4764_vm15, %v4756_v16, 0.0  ;;  %v4748_v16 = vmul.f32 %v8303_v22, %v8303_v22 }
 0x9aa   : > { %v4813_v43 = vsel %vm4764_vm15, %v4748_v16, 0.0 }
 0x9d3   : > { %v8321_v3 = vpop.f32.mrf.mxu1 }
 0x9d4   : > { %v4759_v9 = vmul.f32 %v8321_v3, %v8321_v3 }
 0x9d5   : > { %v8323_v45 = vpop.f32.mrf.mxu1 }
 0x9d6   : > { %v4758_v12 = vmul.f32 %v8323_v45, %v8323_v45  ;;  %v4846_v33 = vsel %vm4764_vm15, %v4759_v9, 0.0  ;;  %v4751_v9 = vmul.f32 %v8305_v38, %v8305_v38 }
 0x9d8   : > { %v4843_v60 = vsel %vm4764_vm15, %v4758_v12, 0.0  ;;  %v4750_v12 = vmul.f32 %v8307_v7, %v8307_v7 }
 0x9e2   : > { %v8325_v2 = vpop.f32.mrf.mxu1 }
 0x9e3   : > { %v4761_v52 = vmul.f32 %v8325_v2, %v8325_v2 }
 0x9e4   : > { %v8327_v17 = vpop.f32.mrf.mxu1 }
 0x9e5   : > { %v4760_v61 = vmul.f32 %v8327_v17, %v8327_v17  ;;  %v4852_v30 = vsel %vm4764_vm15, %v4761_v52, 0.0  ;;  %v4789_v52 = vsel %vm4764_vm15, %v4740_v28, 0.0  ;;  %v4768_v28 = vsel %vm4764_vm15, %v4733_v32, 0.0 }
 0x9e7   : > { %v8329_v37 = vpop.f32.mrf.mxu1  ;;  %v4849_v58 = vsel %vm4764_vm15, %v4760_v61, 0.0  ;;  %v4752_v61 = vmul.f32 %v8311_v57, %v8311_v57 }
 0x9e8   : > { %v4763_v35 = vmul.f32 %v8329_v37, %v8329_v37 }
 0x9e9   : > { %v8333_v50 = vpop.f32.mrf.mxu1 }
 0x9ea   : > { %v4762_v55 = vmul.f32 %v8333_v50, %v8333_v50  ;;  %v4858_v40 = vsel %vm4764_vm15, %v4763_v35, 0.0  ;;  %v4739_v35 = vmul.f32 %v8214_v56, %v8214_v56 }
 0x9eb   : > { %4859 = vadd.xlane.f32.xlu1 %v4858_v40  ;;  %v4831_v40 = vsel %vm4764_vm15, %v4754_v6, 0.0  ;;  %v4812_v6 = vpop.xlane.xlu0 %4811 }
 0x9ec   : > { %v4855_v41 = vsel %vm4764_vm15, %v4762_v55, 0.0  ;;  %v4753_v55 = vmul.f32 %v8309_v27, %v8309_v27  ;;  %6141 = vrsqrt.f32 %v4812_v6  ;;  %vm4968_vm3 = vcmp.eq.f32.partialorder %v4812_v6, inf }
 0x9ed   : > { %4856 = vadd.xlane.f32.xlu0 %v4855_v41  ;;  %v4786_v41 = vsel %vm4764_vm15, %v4739_v35, 0.0  ;;  %vm4970_vm4 = vcmp.eq.f32.partialorder %v4812_v6, 0.0 }
 0x9ef   : > { %4853 = vadd.xlane.f32.xlu1 %v4852_v30  ;;  %v4828_v30 = vsel %vm4764_vm15, %v4753_v55, 0.0  ;;  %v4971_v55 = vand.u32 2147483648, %v4812_v6 }
 0x9f1   : > { %4808 = vadd.xlane.f32.xlu0 %v4807_v34  ;;  %v4783_v34 = vsel %vm4764_vm15, %v4738_v23, 0.0 }
 0x9f3   : > { %4850 = vadd.xlane.f32.xlu1 %v4849_v58  ;;  %v4825_v58 = vsel %vm4764_vm15, %v4752_v61, 0.0 }
 0x9f5   : > { %4805 = vadd.xlane.f32.xlu0 %v4804_v10  ;;  %v4780_v10 = vsel %vm4764_vm15, %v4737_v62, 0.0  ;;  %v5277_v62 = vld [vmem:[#allocation8 + $0x240] sm:$0x7] }
 0x9f6   : > { %5788 = vmatprep.mubr.msk.f32.mxu1 %vm4764_vm15, %v5277_v62 }
 0x9f7   : > { %4847 = vadd.xlane.f32.xlu1 %v4846_v33  ;;  %v4822_v33 = vsel %vm4764_vm15, %v4751_v9, 0.0 }
 0x9f9   : > { %4802 = vadd.xlane.f32.xlu0 %v4801_v36  ;;  %v4777_v36 = vsel %vm4764_vm15, %v4736_v19, 0.0 }
 0x9fb   : > { %4844 = vadd.xlane.f32.xlu1 %v4843_v60  ;;  %v4819_v60 = vsel %vm4764_vm15, %v4750_v12, 0.0 }
 0x9fd   : > { %4799 = vadd.xlane.f32.xlu0 %v4798_v59  ;;  %v4774_v59 = vsel %vm4764_vm15, %v4735_v42, 0.0 }
 0x9ff   : > { %4841 = vadd.xlane.f32.xlu1 %v4840_v1  ;;  %v4816_v1 = vsel %vm4764_vm15, %v4749_v21, 0.0 }
 0xa01   : > { %4796 = vadd.xlane.f32.xlu0 %v4795_v26  ;;  %v4771_v26 = vsel %vm4764_vm15, %v4734_v24, 0.0 }
 0xa03   : > { %4838 = vadd.xlane.f32.xlu1 %v4837_v46  ;;  %v4732_v46 = vmul.f32 %v8204_v20, %v8204_v20 }
 0xa05   : > { %4793 = vadd.xlane.f32.xlu0 %v4792_v44  ;;  %v4765_v44 = vsel %vm4764_vm15, %v4732_v46, 0.0 }
 0xa07   : > { %4835 = vadd.xlane.f32.xlu1 %v4834_v0  ;;  %v6142_v0 = vpop.eup %6141 }
 0xa08   : > { %v4967_v35 = vmul.f32 %v6142_v0, %v4812_v6 }
 0xa09   : > { %4790 = vadd.xlane.f32.xlu0 %v4789_v52 }
 0xa0a   : > { %v4969_v52 = vsel %vm4968_vm3, %v4812_v6, %v4967_v35 }
 0xa0b   : > { %4832 = vadd.xlane.f32.xlu1 %v4831_v40  ;;  %v4972_v40 = vsel %vm4970_vm4, %v4971_v55, %v4969_v52 }
 0xa0c   : > { %v5100_v23 = vadd.f32 1e-08, %v4972_v40 }
 0xa0d   : > { %4787 = vadd.xlane.f32.xlu0 %v4786_v41 }
 0xa0e   : > { %6143 = vrcp.f32 %v5100_v23 }
 0xa0f   : > { %4829 = vadd.xlane.f32.xlu1 %v4828_v30 }
 0xa11   : > { %4784 = vadd.xlane.f32.xlu0 %v4783_v34 }
 0xa13   : > { %4826 = vadd.xlane.f32.xlu1 %v4825_v58 }
 0xa15   : > { %4781 = vadd.xlane.f32.xlu0 %v4780_v10 }
 0xa17   : > { %4823 = vadd.xlane.f32.xlu1 %v4822_v33 }
 0xa19   : > { %4778 = vadd.xlane.f32.xlu0 %v4777_v36 }
 0xa1b   : > { %4820 = vadd.xlane.f32.xlu1 %v4819_v60  ;;  %v6144_v61 = vpop.eup %6143 }
 0xa1c   : > { %v5148_v9 = vmul.f32 2.0, %v6144_v61 }
 0xa1d   : > { %4775 = vadd.xlane.f32.xlu0 %v4774_v59 }
 0xa1e   : > { %v8439_v10 = vmul.f32 %v8253_v14, %v5148_v9 }
 0xa1f   : > { %4817 = vadd.xlane.f32.xlu1 %v4816_v1 }
 0xa20   : > { %v8448_v42 = vmul.f32 0.2, %v8439_v10 }
 0xa21   : > { %4772 = vadd.xlane.f32.xlu0 %v4771_v26 }
 0xa23   : > { %4814 = vadd.xlane.f32.xlu1 %v4813_v43 }
 0xa25   : > { %4769 = vadd.xlane.f32.xlu0 %v4768_v28 }
 0xa29   : > { %4766 = vadd.xlane.f32.xlu0 %v4765_v44 }
 0xa74   : > { %v4860_v41 = vpop.xlane.xlu1 %4859 }
 0xa75   : > { %6145 = vrsqrt.f32 %v4860_v41  ;;  %vm5080_vm6 = vcmp.eq.f32.partialorder %v4860_v41, inf  ;;  %vm5082_vm7 = vcmp.eq.f32.partialorder %v4860_v41, 0.0  ;;  %v5083_v16 = vand.u32 2147483648, %v4860_v41 }
 0xa76   : > { %v8426_v30 = vpop.xlane.xlu0 %4856 }
 0xa77   : > { %6147 = vrsqrt.f32 %v8426_v30  ;;  %vm5073_vm8 = vcmp.eq.f32.partialorder %v8426_v30, inf  ;;  %vm5075_vm9 = vcmp.eq.f32.partialorder %v8426_v30, 0.0  ;;  %v5076_v43 = vand.u32 2147483648, %v8426_v30 }
 0xa78   : > { %v8430_v34 = vpop.xlane.xlu1 %4853 }
 0xa79   : > { %6149 = vrsqrt.f32 %v8430_v34  ;;  %vm5066_vm10 = vcmp.eq.f32.partialorder %v8430_v34, inf  ;;  %vm5068_vm11 = vcmp.eq.f32.partialorder %v8430_v34, 0.0  ;;  %v5069_v44 = vand.u32 2147483648, %v8430_v34 }
 0xa7a   : > { %v8433_v58 = vpop.xlane.xlu0 %4808 }
 0xa7b   : > { %6151 = vrsqrt.f32 %v8433_v58  ;;  %vm4961_vm12 = vcmp.eq.f32.partialorder %v8433_v58, inf  ;;  %vm4963_vm0 = vcmp.eq.f32.partialorder %v8433_v58, 0.0  ;;  %v4964_v0 = vand.u32 2147483648, %v8433_v58 }
 0xa7c   : > { %v8436_v19 = vpop.xlane.xlu1 %4850 }
 0xa7d   : > { %6153 = vrsqrt.f32 %v8436_v19  ;;  %vm5059_vm1 = vcmp.eq.f32.partialorder %v8436_v19, inf  ;;  %vm5061_vm5 = vcmp.eq.f32.partialorder %v8436_v19, 0.0  ;;  %v5062_v61 = vand.u32 2147483648, %v8436_v19 }
 0xa7e   : > { %v8442_v12 = vpop.xlane.xlu0 %4805 }
 0xa7f   : > { %6155 = vrsqrt.f32 %v8442_v12  ;;  %vm4954_vm13 = vcmp.eq.f32.partialorder %v8442_v12, inf  ;;  %vm4956_vm2 = vcmp.eq.f32.partialorder %v8442_v12, 0.0 }
 0xa80   : > { %v8445_v33 = vpop.xlane.xlu1 %4847 }
 0xa81   : > { %6157 = vrsqrt.f32 %v8445_v33  ;;  %vm5052_vm14 = vcmp.eq.f32.partialorder %v8445_v33, inf  ;;  %vm5054_vm3 = vcmp.eq.f32.partialorder %v8445_v33, 0.0 }
 0xa82   : > { %v6146_v36 = vpop.eup %6145  ;;  %v8451_v21 = vpop.xlane.xlu0 %4802 }
 0xa83   : > { %v5079_v60 = vmul.f32 %v6146_v36, %v4860_v41  ;;  %6159 = vrsqrt.f32 %v8451_v21  ;;  %v4957_v36 = vand.u32 2147483648, %v8442_v12  ;;  %vm4947_vm4 = vcmp.eq.f32.partialorder %v8451_v21, inf }
 0xa84   : > { %v6148_v14 = vpop.eup %6147  ;;  %v8454_v24 = vpop.xlane.xlu1 %4844 }
 0xa85   : > { %v5072_v1 = vmul.f32 %v6148_v14, %v8426_v30  ;;  %6161 = vrsqrt.f32 %v8454_v24  ;;  %v5081_v26 = vsel %vm5080_vm6, %v4860_v41, %v5079_v60  ;;  %vm4949_vm6 = vcmp.eq.f32.partialorder %v8451_v21, 0.0 }
 0xa86   : > { %v6150_v32 = vpop.eup %6149  ;;  %v8464_v46 = vpop.xlane.xlu0 %4799  ;;  %v5084_v52 = vsel %vm5082_vm7, %v5083_v16, %v5081_v26  ;;  %vm5045_vm7 = vcmp.eq.f32.partialorder %v8454_v24, inf }
 0xa87   : > { %v5065_v28 = vmul.f32 %v6150_v32, %v8430_v34  ;;  %6163 = vrsqrt.f32 %v8464_v46  ;;  %v5074_v55 = vsel %vm5073_vm8, %v8426_v30, %v5072_v1  ;;  %v5116_v14 = vadd.f32 1e-08, %v5084_v52 }
 0xa88   : > { %v6152_v6 = vpop.eup %6151  ;;  %v8474_v35 = vpop.xlane.xlu1 %4841  ;;  %v5077_v16 = vsel %vm5075_vm9, %v5076_v43, %v5074_v55  ;;  %v4950_v52 = vand.u32 2147483648, %v8451_v21  ;;  %vm5047_vm8 = vcmp.eq.f32.partialorder %v8454_v24, 0.0  ;;  %vm4940_vm9 = vcmp.eq.f32.partialorder %v8464_v46, inf }
 0xa89   : > { %v4960_v40 = vmul.f32 %v6152_v6, %v8433_v58  ;;  %6165 = vrsqrt.f32 %v8474_v35  ;;  %v5067_v41 = vsel %vm5066_vm10, %v8430_v34, %v5065_v28  ;;  %v5055_v28 = vand.u32 2147483648, %v8445_v33 }
 0xa8a   : > { %v6154_v23 = vpop.eup %6153  ;;  %v8486_v62 = vpop.xlane.xlu0 %4796  ;;  %v5070_v30 = vsel %vm5068_vm11, %v5069_v44, %v5067_v41  ;;  %vm4942_vm10 = vcmp.eq.f32.partialorder %v8464_v46, 0.0  ;;  %vm5038_vm11 = vcmp.eq.f32.partialorder %v8474_v35, inf }
 0xa8b   : > { %v5058_v9 = vmul.f32 %v6154_v23, %v8436_v19  ;;  %6167 = vrsqrt.f32 %v8486_v62  ;;  %v4962_v32 = vsel %vm4961_vm12, %v8433_v58, %v4960_v40  ;;  %v5115_v40 = vadd.f32 1e-08, %v5077_v16 }
 0xa8c   : > { %v6156_v60 = vpop.eup %6155  ;;  %v8498_v1 = vpop.xlane.xlu1 %4838  ;;  %v4965_v41 = vsel %vm4963_vm0, %v4964_v0, %v4962_v32  ;;  %v5114_v16 = vadd.f32 1e-08, %v5070_v30  ;;  %v4943_v32 = vand.u32 2147483648, %v8464_v46  ;;  %vm5040_vm12 = vcmp.eq.f32.partialorder %v8474_v35, 0.0 }
 0xa8d   : > { %v4953_v26 = vmul.f32 %v6156_v60, %v8442_v12  ;;  %v5060_v43 = vsel %vm5059_vm1, %v8436_v19, %v5058_v9  ;;  %6169 = vrsqrt.f32 %v8498_v1  ;;  %v5048_v9 = vand.u32 2147483648, %v8454_v24 }
 0xa8e   : > { %v6158_v6 = vpop.eup %6157  ;;  %v8514_v55 = vpop.xlane.xlu0 %4793  ;;  %6171 = vrcp.f32 %v5116_v14  ;;  %v5099_v19 = vadd.f32 1e-08, %v4965_v41  ;;  %vm4933_vm0 = vcmp.eq.f32.partialorder %v8486_v62, inf  ;;  %vm4935_vm1 = vcmp.eq.f32.partialorder %v8486_v62, 0.0 }
 0xa8f   : > { %v4955_v23 = vsel %vm4954_vm13, %v8442_v12, %v4953_v26  ;;  %v5051_v34 = vmul.f32 %v6158_v6, %v8445_v33  ;;  %v5063_v26 = vsel %vm5061_vm5, %v5062_v61, %v5060_v43  ;;  %6173 = vrsqrt.f32 %v8514_v55 }
 0xa90   : > { %v6160_v44 = vpop.eup %6159  ;;  %v8526_v60 = vpop.xlane.xlu1 %4835  ;;  %v4958_v0 = vsel %vm4956_vm2, %v4957_v36, %v4955_v23  ;;  %6175 = vrcp.f32 %v5115_v40  ;;  %vm5031_vm5 = vcmp.eq.f32.partialorder %v8498_v1, inf  ;;  %vm5033_vm13 = vcmp.eq.f32.partialorder %v8498_v1, 0.0 }
 0xa91   : > { %v5053_v6 = vsel %vm5052_vm14, %v8445_v33, %v5051_v34  ;;  %v4946_v14 = vmul.f32 %v6160_v44, %v8451_v21  ;;  %v5113_v34 = vadd.f32 1e-08, %v5063_v26  ;;  %6177 = vrsqrt.f32 %v8526_v60 }
 0xa92   : > { %v6162_v58 = vpop.eup %6161  ;;  %v8539_v30 = vpop.xlane.xlu0 %4790  ;;  %v5056_v12 = vsel %vm5054_vm3, %v5055_v28, %v5053_v6  ;;  %6179 = vrcp.f32 %v5114_v16  ;;  %v5098_v40 = vadd.f32 1e-08, %v4958_v0  ;;  %v5041_v33 = vand.u32 2147483648, %v8474_v35 }
 0xa93   : > { %v5044_v61 = vmul.f32 %v6162_v58, %v8454_v24  ;;  %v4948_v36 = vsel %vm4947_vm4, %v8451_v21, %v4946_v14  ;;  %6181 = vrsqrt.f32 %v8539_v30  ;;  %v5112_v16 = vadd.f32 1e-08, %v5056_v12 }
 0xa94   : > { %v6164_v43 = vpop.eup %6163  ;;  %v8549_v23 = vpop.xlane.xlu1 %4832  ;;  %6183 = vrcp.f32 %v5099_v19  ;;  %v4951_v6 = vsel %vm4949_vm6, %v4950_v52, %v4948_v36  ;;  %v4936_v0 = vand.u32 2147483648, %v8486_v62  ;;  %vm4926_vm2 = vcmp.eq.f32.partialorder %v8514_v55, inf }
 0xa95   : > { %v4939_v44 = vmul.f32 %v6164_v43, %v8464_v46  ;;  %v5046_v41 = vsel %vm5045_vm7, %v8454_v24, %v5044_v61  ;;  %6185 = vrcp.f32 %v5113_v34  ;;  %v5097_v21 = vadd.f32 1e-08, %v4951_v6 }
 0xa96   : > { %v8559_v28 = vpop.xlane.xlu0 %4787  ;;  %v6166_v26 = vpop.eup %6165  ;;  %6187 = vrcp.f32 %v5098_v40  ;;  %v5049_v19 = vsel %vm5047_vm8, %v5048_v9, %v5046_v41  ;;  %v5034_v9 = vand.u32 2147483648, %v8498_v1  ;;  %vm4928_vm14 = vcmp.eq.f32.partialorder %v8514_v55, 0.0 }
 0xa97   : > { %v4941_v14 = vsel %vm4940_vm9, %v8464_v46, %v4939_v44  ;;  %v5037_v58 = vmul.f32 %v6166_v26, %v8474_v35  ;;  %6189 = vrsqrt.f32 %v8549_v23  ;;  %v5111_v40 = vadd.f32 1e-08, %v5049_v19 }
 0xa98   : > { %v8569_v61 = vpop.xlane.xlu1 %4829  ;;  %v6168_v43 = vpop.eup %6167  ;;  %6191 = vrcp.f32 %v5112_v16  ;;  %v4944_v24 = vsel %vm4942_vm10, %v4943_v32, %v4941_v14  ;;  %v4929_v32 = vand.u32 2147483648, %v8514_v55  ;;  %vm5024_vm3 = vcmp.eq.f32.partialorder %v8526_v60, inf }
 0xa99   : > { %v5039_v52 = vsel %vm5038_vm11, %v8474_v35, %v5037_v58  ;;  %v4932_v34 = vmul.f32 %v6168_v43, %v8486_v62  ;;  %6193 = vrsqrt.f32 %v8559_v28  ;;  %v5096_v16 = vadd.f32 1e-08, %v4944_v24 }
 0xa9a   : > { %v8580_v12 = vpop.xlane.xlu0 %4784  ;;  %v6170_v36 = vpop.eup %6169  ;;  %v5042_v46 = vsel %vm5040_vm12, %v5041_v33, %v5039_v52  ;;  %6195 = vrsqrt.f32 %v8569_v61  ;;  %vm5026_vm4 = vcmp.eq.f32.partialorder %v8526_v60, 0.0  ;;  %v5027_v35 = vand.u32 2147483648, %v8526_v60 }
 0xa9b   : > { %v4934_v44 = vsel %vm4933_vm0, %v8486_v62, %v4932_v34  ;;  %v5030_v41 = vmul.f32 %v6170_v36, %v8498_v1  ;;  %v6172_v6 = vpop.eup %6171  ;;  %6197 = vrcp.f32 %v5097_v21  ;;  %v5110_v19 = vadd.f32 1e-08, %v5042_v46 }
 0xa9c   : > { %v8591_v26 = vpop.xlane.xlu1 %4826  ;;  %v6174_v58 = vpop.eup %6173  ;;  %v4937_v43 = vsel %vm4935_vm1, %v4936_v0, %v4934_v44  ;;  %6199 = vrsqrt.f32 %v8580_v12  ;;  %vm4919_vm6 = vcmp.eq.f32.partialorder %v8539_v30, inf  ;;  %vm5017_vm7 = vcmp.eq.f32.partialorder %v8549_v23, inf }
 0xa9d   : > { %v5032_v14 = vsel %vm5031_vm5, %v8498_v1, %v5030_v41  ;;  %v6176_v33 = vpop.eup %6175  ;;  %6201 = vrcp.f32 %v5111_v40  ;;  %v4925_v21 = vmul.f32 %v6174_v58, %v8514_v55  ;;  %v5095_v24 = vadd.f32 1e-08, %v4937_v43 }
 0xa9e   : > { %v8609_v52 = vpop.xlane.xlu0 %4781  ;;  %v6178_v34 = vpop.eup %6177  ;;  %v5035_v62 = vsel %vm5033_vm13, %v5034_v9, %v5032_v14  ;;  %6203 = vrsqrt.f32 %v8591_v26  ;;  %vm4921_vm8 = vcmp.eq.f32.partialorder %v8539_v30, 0.0  ;;  %v5020_v9 = vand.u32 2147483648, %v8549_v23 }
 0xa9f   : > { %v8616_v36 = vpop.eup %6179  ;;  %6205 = vrcp.f32 %v5096_v16  ;;  %v4927_v40 = vsel %vm4926_vm2, %v8514_v55, %v4925_v21  ;;  %v5023_v44 = vmul.f32 %v6178_v34, %v8526_v60  ;;  %vm4912_vm9 = vcmp.eq.f32.partialorder %v8559_v28, inf }
 0xaa0   : > { %v8622_v41 = vpop.xlane.xlu1 %4823  ;;  %v6182_v1 = vpop.eup %6181  ;;  %6207 = vrsqrt.f32 %v8609_v52  ;;  %v5109_v14 = vadd.f32 1e-08, %v5035_v62  ;;  %v4930_v58 = vsel %vm4928_vm14, %v4929_v32, %v4927_v40  ;;  %vm5019_vm10 = vcmp.eq.f32.partialorder %v8549_v23, 0.0 }
 0xaa1   : > { %v8629_v16 = vpop.eup %6183  ;;  %6209 = vrcp.f32 %v5110_v19  ;;  %v5025_v43 = vsel %vm5024_vm3, %v8526_v60, %v5023_v44  ;;  %v4918_v34 = vmul.f32 %v6182_v1, %v8539_v30  ;;  %vm4914_vm11 = vcmp.eq.f32.partialorder %v8559_v28, 0.0 }
 0xaa2   : > { %v8637_v21 = vpop.eup %6185  ;;  %vm5010_vm12 = vcmp.eq.f32.partialorder %v8569_v61, inf  ;;  %v5180_v59 = vmul.f32 2.0, %v6172_v6  ;;  %6211 = vrsqrt.f32 %v8622_v41  ;;  %vm5012_vm0 = vcmp.eq.f32.partialorder %v8569_v61, 0.0  ;;  %v8649_v62 = vpop.xlane.xlu0 %4778 }
 0xaa3   : > { %v8643_v19 = vpop.eup %6187  ;;  %6213 = vrcp.f32 %v5095_v24  ;;  %v5013_v55 = vand.u32 2147483648, %v8569_v61  ;;  %vm4905_vm1 = vcmp.eq.f32.partialorder %v8580_v12, inf  ;;  %v4908_v32 = vand.u32 2147483648, %v8580_v12 }
 0xaa4   : > { %v6190_v40 = vpop.eup %6189  ;;  %v5094_v44 = vadd.f32 1e-08, %v4930_v58  ;;  %v5028_v6 = vsel %vm5026_vm4, %v5027_v35, %v5025_v43  ;;  %vm4907_vm5 = vcmp.eq.f32.partialorder %v8580_v12, 0.0  ;;  %v5212_v1 = vmul.f32 %v8329_v37, %v5180_v59  ;;  %v8665_v37 = vpop.xlane.xlu1 %4820 }
 0xaa5   : > { %v5178_v24 = vmul.f32 2.0, %v6176_v33  ;;  %v8655_v46 = vpop.eup %6191  ;;  %6215 = vrcp.f32 %v5109_v14  ;;  %v5016_v0 = vmul.f32 %v6190_v40, %v8549_v23  ;;  %vm5003_vm13 = vcmp.eq.f32.partialorder %v8591_v26, inf }
 0xaa6   : > { %v6194_v22 = vpop.eup %6193  ;;  %v4920_v60 = vsel %vm4919_vm6, %v8539_v30, %v4918_v34  ;;  %v5244_v35 = vmul.f32 0.2, %v5212_v1  ;;  %6217 = vrsqrt.f32 %v8649_v62  ;;  %v5108_v33 = vadd.f32 1e-08, %v5028_v6 }
 0xaa7   : > { %v5211_v58 = vmul.f32 %v5178_v24, %v8333_v50  ;;  %v6196_v59 = vpop.eup %6195  ;;  %v5018_v14 = vsel %vm5017_vm7, %v8549_v23, %v5016_v0  ;;  %v4911_v43 = vmul.f32 %v6194_v22, %v8559_v28  ;;  %vm4898_vm2 = vcmp.eq.f32.partialorder %v8609_v52, inf }
 0xaa8   : > { %v4901_v40 = vand.u32 2147483648, %v8609_v52  ;;  %v8673_v34 = vpop.eup %6197  ;;  %6219 = vrcp.f32 %v5094_v44  ;;  %v5009_v50 = vmul.f32 %v6196_v59, %v8569_v61  ;;  %vm5005_vm14 = vcmp.eq.f32.partialorder %v8591_v26, 0.0 }
 0xaa9   : > { %v5276_v24 = vmax.f32 %v5212_v1, %v5244_v35  ;;  %v5243_v20 = vmul.f32 0.2, %v5211_v58  ;;  %v6200_v6 = vpop.eup %6199  ;;  %v8972_v53 = vand.u32 2147483648, %v8539_v30  ;;  %v4913_v22 = vsel %vm4912_vm9, %v8559_v28, %v4911_v43 }
 0xaaa   : > { %vm4996_vm3 = vcmp.eq.f32.partialorder %v8622_v41, inf  ;;  %6221 = vrsqrt.f32 %v8665_v37  ;;  %v8686_v44 = vpop.eup %6201  ;;  %v5021_v1 = vsel %vm5019_vm10, %v5020_v9, %v5018_v14  ;;  %v5011_v35 = vsel %vm5010_vm12, %v8569_v61, %v5009_v50 }
 0xaab   : > { %v4923_v0 = vsel %vm4921_vm8, %v8972_v53, %v4920_v60  ;;  %v4904_v30 = vmul.f32 %v6200_v6, %v8580_v12  ;;  %vm4900_vm4 = vcmp.eq.f32.partialorder %v8609_v52, 0.0  ;;  %5756 = vmatprep.subr.msk.mxu1 %vm4764_vm15, %v5276_v24  ;;  %v5275_v53 = vmax.f32 %v5211_v58, %v5243_v20  ;;  %v8696_v60 = vpop.xlane.xlu0 %4775  ;;  %v6204_v59 = vpop.eup %6203 }
 0xaac   : > { %6223 = vrcp.f32 %v5108_v33  ;;  %v8973_v43 = vand.u32 2147483648, %v8559_v28  ;;  %vm4998_vm6 = vcmp.eq.f32.partialorder %v8622_v41, 0.0  ;;  %v4999_v9 = vand.u32 2147483648, %v8622_v41  ;;  %v8708_v50 = vpop.eup %6205 }
 0xaad   : > { %v8974_v14 = vmax.f32 %v8439_v10, %v8448_v42  ;;  %v5093_v20 = vadd.f32 1e-08, %v4923_v0  ;;  %v5014_v58 = vsel %vm5012_vm0, %v5013_v55, %v5011_v35  ;;  %v4906_v28 = vsel %vm4905_vm1, %v8580_v12, %v4904_v30  ;;  %v6208_v24 = vpop.eup %6207 }
 0xaae   : > { %v4916_v23 = vsel %vm4914_vm11, %v8973_v43, %v4913_v22  ;;  %v5002_v33 = vmul.f32 %v6204_v59, %v8591_v26  ;;  %v5107_v6 = vadd.f32 1e-08, %v5021_v1  ;;  %v4909_v10 = vsel %vm4907_vm5, %v4908_v32, %v4906_v28  ;;  %v8721_v22 = vpop.eup %6209  ;;  %v8737_v43 = vpop.xlane.xlu1 %4817 }
 0xaaf   : > { %5757 = vmatpush3.xpose.msk.msra.mxu1 %vm4764_vm15, %v8974_v14  ;;  %v5146_v42 = vmul.f32 2.0, %v8629_v16  ;;  %v5176_v0 = vmul.f32 2.0, %v8616_v36  ;;  %v5092_v61 = vadd.f32 1e-08, %v4916_v23  ;;  %v4897_v35 = vmul.f32 %v6208_v24, %v8609_v52  ;;  %v6212_v30 = vpop.eup %6211  ;;  %v8739_v23 = vpop.xlane.xlu0 %4772 }
 0xab0   : > { %5758 = vmatprep.subr.msk.mxu1 %vm4764_vm15, %v5275_v53  ;;  %v5004_v55 = vsel %vm5003_vm13, %v8591_v26, %v5002_v33  ;;  %vm4891_vm7 = vcmp.eq.f32.partialorder %v8649_v62, inf  ;;  %v5106_v1 = vadd.f32 1e-08, %v5014_v58  ;;  %6225 = vrsqrt.f32 %v8696_v60  ;;  %v8731_v36 = vpop.eup %6213 }
 0xab1   : > { %v5195_v12 = vmul.f32 %v5146_v42, %v8299_v48  ;;  %v5210_v32 = vmul.f32 %v8325_v2, %v5176_v0  ;;  %6227 = vrcp.f32 %v5093_v20  ;;  %v5091_v16 = vadd.f32 1e-08, %v4909_v10 }
 0xab2   : > { %v4899_v53 = vsel %vm4898_vm2, %v8609_v52, %v4897_v35  ;;  %v4995_v59 = vmul.f32 %v6212_v30, %v8622_v41  ;;  %6229 = vrcp.f32 %v5107_v6  ;;  %v8975_v48 = vand.u32 2147483648, %v8591_v26  ;;  %v8745_v20 = vpop.eup %6215 }
 0xab3   : > { %v5227_v14 = vmul.f32 0.2, %v5195_v12  ;;  %v5242_v58 = vmul.f32 0.2, %v5210_v32  ;;  %6231 = vrcp.f32 %v5092_v61  ;;  %vm4893_vm8 = vcmp.eq.f32.partialorder %v8649_v62, 0.0  ;;  %v6218_v24 = vpop.eup %6217 }
 0xab4   : > { %v5007_v2 = vsel %vm5005_vm14, %v8975_v48, %v5004_v55  ;;  %v4997_v28 = vsel %vm4996_vm3, %v8622_v41, %v4995_v59  ;;  %v4894_v33 = vand.u32 2147483648, %v8649_v62  ;;  %6233 = vrcp.f32 %v5106_v1  ;;  %v8771_v1 = vpop.xlane.xlu1 %4814 }
 0xab5   : > { %v4902_v26 = vsel %vm4900_vm4, %v4901_v40, %v4899_v53  ;;  %v5000_v6 = vsel %vm4998_vm6, %v4999_v9, %v4997_v28  ;;  %v5259_v10 = vmax.f32 %v5195_v12, %v5227_v14  ;;  %6235 = vrcp.f32 %v5091_v16  ;;  %v8759_v55 = vpop.eup %6219  ;;  %v8773_v12 = vpop.xlane.xlu0 %4769 }
 0xab6   : > { %v5105_v42 = vadd.f32 1e-08, %v5007_v2  ;;  %v4890_v0 = vmul.f32 %v6218_v24, %v8649_v62  ;;  %v5274_v61 = vmax.f32 %v5210_v32, %v5242_v58  ;;  %vm4989_vm9 = vcmp.eq.f32.partialorder %v8665_v37, inf }
 0xab7   : > { %vm4991_vm10 = vcmp.eq.f32.partialorder %v8665_v37, 0.0  ;;  %5759 = vmatpush3.xpose.msk.msra.mxu1 %vm4764_vm15, %v5259_v10  ;;  %6237 = vrsqrt.f32 %v8737_v43  ;;  %v5144_v52 = vmul.f32 2.0, %v8643_v19  ;;  %v6222_v41 = vpop.eup %6221  ;;  %v5090_v40 = vadd.f32 1e-08, %v4902_v26 }
 0xab8   : > { %v5104_v9 = vadd.f32 1e-08, %v5000_v6  ;;  %v4892_v35 = vsel %vm4891_vm7, %v8649_v62, %v4890_v0  ;;  %5760 = vmatprep.subr.msk.mxu1 %vm4764_vm15, %v5274_v61  ;;  %v5174_v30 = vmul.f32 2.0, %v8637_v21  ;;  %v4988_v19 = vmul.f32 %v6222_v41, %v8665_v37 }
 0xab9   : > { %v4895_v32 = vsel %vm4893_vm8, %v4894_v33, %v4892_v35  ;;  %v5194_v16 = vmul.f32 %v8237_v4, %v5144_v52  ;;  %6239 = vrsqrt.f32 %v8739_v23  ;;  %v8780_v53 = vpop.eup %6223  ;;  %v4992_v59 = vand.u32 2147483648, %v8665_v37  ;;  %v8798_v10 = vpop.xlane.xlu0 %4766 }
 0xaba   : > { %6241 = vrcp.f32 %v5105_v42  ;;  %vm4884_vm11 = vcmp.eq.f32.partialorder %v8696_v60, inf  ;;  %v5209_v21 = vmul.f32 %v5174_v30, %v8327_v17  ;;  %v4990_v62 = vsel %vm4989_vm9, %v8665_v37, %v4988_v19 }
 0xabb   : > { %vm4886_vm12 = vcmp.eq.f32.partialorder %v8696_v60, 0.0  ;;  %v5226_v48 = vmul.f32 0.2, %v5194_v16  ;;  %6243 = vrsqrt.f32 %v8771_v1  ;;  %v5089_v4 = vadd.f32 1e-08, %v4895_v32 }
 0xabc   : > { %6245 = vrcp.f32 %v5090_v40  ;;  %v4993_v2 = vsel %vm4991_vm10, %v4992_v59, %v4990_v62  ;;  %v5241_v14 = vmul.f32 0.2, %v5209_v21  ;;  %v4887_v58 = vand.u32 2147483648, %v8696_v60 }
 0xabd   : > { %6247 = vrcp.f32 %v5104_v9  ;;  %v5258_v28 = vmax.f32 %v5194_v16, %v5226_v48  ;;  %v5142_v17 = vmul.f32 2.0, %v8673_v34  ;;  %v6226_v33 = vpop.eup %6225  ;;  %vm4982_vm0 = vcmp.eq.f32.partialorder %v8737_v43, inf }
 0xabe   : > { %v4985_v24 = vand.u32 2147483648, %v8737_v43  ;;  %v5273_v26 = vmax.f32 %v5209_v21, %v5241_v14  ;;  %v5172_v6 = vmul.f32 2.0, %v8655_v46  ;;  %6249 = vrsqrt.f32 %v8773_v12  ;;  %v6228_v37 = vpop.eup %6227 }
 0xabf   : > { %v5103_v42 = vadd.f32 1e-08, %v4993_v2  ;;  %v4883_v0 = vmul.f32 %v6226_v33, %v8696_v60  ;;  %vm4984_vm1 = vcmp.eq.f32.partialorder %v8737_v43, 0.0  ;;  %5761 = vmatpush3.xpose.msk.msra.mxu1 %vm4764_vm15, %v5258_v28  ;;  %v4880_v34 = vand.u32 2147483648, %v8739_v23  ;;  %v8805_v52 = vpop.eup %6229 }
 0xac0   : > { %v5193_v61 = vmul.f32 %v5142_v17, %v8246_v63  ;;  %6251 = vrcp.f32 %v5089_v4  ;;  %5762 = vmatprep.subr.msk.mxu1 %vm4764_vm15, %v5273_v26  ;;  %vm4877_vm5 = vcmp.eq.f32.partialorder %v8739_v23, inf  ;;  %v5208_v46 = vmul.f32 %v8321_v3, %v5172_v6  ;;  %v8812_v9 = vpop.eup %6231 }
 0xac1   : > { %v5140_v41 = vmul.f32 2.0, %v8708_v50  ;;  %v5170_v40 = vmul.f32 2.0, %v8686_v44  ;;  %v4885_v35 = vsel %vm4884_vm11, %v8696_v60, %v4883_v0  ;;  %vm4879_vm13 = vcmp.eq.f32.partialorder %v8739_v23, 0.0  ;;  %v8820_v32 = vpop.eup %6233 }
 0xac2   : > { %v4978_v63 = vand.u32 2147483648, %v8771_v1  ;;  %v5225_v30 = vmul.f32 0.2, %v5193_v61  ;;  %6253 = vrsqrt.f32 %v8798_v10  ;;  %v4888_v3 = vsel %vm4886_vm12, %v4887_v58, %v4885_v35  ;;  %v8827_v16 = vpop.eup %6235 }
 0xac3   : > { %vm4975_vm2 = vcmp.eq.f32.partialorder %v8771_v1, inf  ;;  %v5240_v44 = vmul.f32 0.2, %v5208_v46  ;;  %v5192_v50 = vmul.f32 %v8222_v5, %v5140_v41  ;;  %v5207_v19 = vmul.f32 %v5170_v40, %v8323_v45 }
 0xac4   : > { %6255 = vrcp.f32 %v5103_v42  ;;  %v5088_v59 = vadd.f32 1e-08, %v4888_v3  ;;  %vm4977_vm14 = vcmp.eq.f32.partialorder %v8771_v1, 0.0  ;;  %v5257_v21 = vmax.f32 %v5193_v61, %v5225_v30  ;;  %v6238_v48 = vpop.eup %6237 }
 0xac5   : > { %v4873_v62 = vand.u32 2147483648, %v8773_v12  ;;  %v5272_v4 = vmax.f32 %v5208_v46, %v5240_v44  ;;  %v5224_v60 = vmul.f32 0.2, %v5192_v50  ;;  %v5239_v2 = vmul.f32 0.2, %v5207_v19 }
 0xac6   : > { %v5138_v14 = vmul.f32 2.0, %v8731_v36  ;;  %6257 = vrcp.f32 %v5088_v59  ;;  %v4981_v5 = vmul.f32 %v6238_v48, %v8737_v43  ;;  %5763 = vmatpush3.xpose.msk.msra.mxu1 %vm4764_vm15, %v5257_v21  ;;  %vm4870_vm3 = vcmp.eq.f32.partialorder %v8773_v12, inf  ;;  %v6240_v28 = vpop.eup %6239 }
 0xac7   : > { %v5168_v45 = vmul.f32 2.0, %v8721_v22  ;;  %v5136_v58 = vmul.f32 2.0, %v8759_v55  ;;  %5764 = vmatprep.subr.msk.mxu1 %vm4764_vm15, %v5272_v4  ;;  %vm4872_vm4 = vcmp.eq.f32.partialorder %v8773_v12, 0.0  ;;  %v5256_v17 = vmax.f32 %v5192_v50, %v5224_v60  ;;  %v8841_v6 = vpop.eup %6241 }
 0xac8   : > { %v5271_v33 = vmax.f32 %v5207_v19, %v5239_v2  ;;  %v5191_v36 = vmul.f32 %v5138_v14, %v8231_v49  ;;  %v5166_v26 = vmul.f32 2.0, %v8745_v20  ;;  %v4983_v42 = vsel %vm4982_vm0, %v8737_v43, %v4981_v5  ;;  %v6244_v61 = vpop.eup %6243 }
 0xac9   : > { %v4876_v22 = vmul.f32 %v6240_v28, %v8739_v23  ;;  %v5206_v55 = vmul.f32 %v8317_v11, %v5168_v45  ;;  %v5190_v0 = vmul.f32 %v8218_v18, %v5136_v58  ;;  %v4986_v46 = vsel %vm4984_vm1, %v4985_v24, %v4983_v42  ;;  %v6246_v40 = vpop.eup %6245 }
 0xaca   : > { %vm4863_vm6 = vcmp.eq.f32.partialorder %v8798_v10, inf  ;;  %v5223_v49 = vmul.f32 0.2, %v5191_v36  ;;  %v5205_v20 = vmul.f32 %v5166_v26, %v8319_v47  ;;  %v5134_v41 = vmul.f32 2.0, %v6228_v37  ;;  %5765 = vmatpush3.xpose.msk.msra.mxu1 %vm4764_vm15, %v5256_v17  ;;  %v8859_v43 = vpop.eup %6247 }
 0xacb   : > { %v5102_v35 = vadd.f32 1e-08, %v4986_v46  ;;  %v4878_v30 = vsel %vm4877_vm5, %v8739_v23, %v4876_v22  ;;  %v4974_v11 = vmul.f32 %v6244_v61, %v8771_v1  ;;  %vm4865_vm7 = vcmp.eq.f32.partialorder %v8798_v10, 0.0  ;;  %5766 = vmatprep.subr.msk.mxu1 %vm4764_vm15, %v5271_v33  ;;  %v6250_v44 = vpop.eup %6249 }
 0xacc   : > { %v5238_v18 = vmul.f32 0.2, %v5206_v55  ;;  %v4881_v47 = vsel %vm4879_vm13, %v4880_v34, %v4878_v30  ;;  %v5255_v24 = vmax.f32 %v5191_v36, %v5223_v49  ;;  %v5222_v37 = vmul.f32 0.2, %v5190_v0 }
 0xacd   : > { %v5237_v3 = vmul.f32 0.2, %v5205_v20  ;;  %6259 = vrcp.f32 %v5102_v35  ;;  %v5087_v50 = vadd.f32 1e-08, %v4881_v47  ;;  %v4976_v19 = vsel %vm4975_vm2, %v8771_v1, %v4974_v11  ;;  %v6252_v4 = vpop.eup %6251 }
 0xace   : > { %v4866_v59 = vand.u32 2147483648, %v8798_v10  ;;  %v4979_v23 = vsel %vm4977_vm14, %v4978_v63, %v4976_v19  ;;  %v4869_v34 = vmul.f32 %v6250_v44, %v8773_v12  ;;  %v5270_v21 = vmax.f32 %v5206_v55, %v5238_v18  ;;  %5767 = vmatpush3.xpose.msk.msra.mxu1 %vm4764_vm15, %v5255_v24 }
 0xacf   : > { %v5254_v48 = vmax.f32 %v5190_v0, %v5222_v37  ;;  %6261 = vrcp.f32 %v5087_v50  ;;  %v5269_v60 = vmax.f32 %v5205_v20, %v5237_v3  ;;  %v5189_v2 = vmul.f32 %v5134_v41, %v8220_v29  ;;  %v6254_v5 = vpop.eup %6253 }
 0xad0   : > { %v5164_v14 = vmul.f32 2.0, %v8780_v53  ;;  %v4871_v45 = vsel %vm4870_vm3, %v8773_v12, %v4869_v34  ;;  %5768 = vmatprep.subr.msk.mxu1 %vm4764_vm15, %v5270_v21  ;;  %v5132_v1 = vmul.f32 2.0, %v8812_v9  ;;  %v5162_v63 = vmul.f32 2.0, %v8805_v52 }
 0xad1   : > { %v5130_v58 = vmul.f32 2.0, %v8827_v16  ;;  %v5101_v28 = vadd.f32 1e-08, %v4979_v23  ;;  %v4874_v29 = vsel %vm4872_vm4, %v4873_v62, %v4871_v45  ;;  %v4862_v53 = vmul.f32 %v6254_v5, %v8798_v10  ;;  %v6256_v33 = vpop.eup %6255 }
 0xad2   : > { %v5221_v17 = vmul.f32 0.2, %v5189_v2  ;;  %v5086_v36 = vadd.f32 1e-08, %v4874_v29  ;;  %v5204_v26 = vmul.f32 %v8313_v25, %v5164_v14  ;;  %v5188_v42 = vmul.f32 %v8214_v56, %v5132_v1  ;;  %5769 = vmatpush3.xpose.msk.msra.mxu1 %vm4764_vm15, %v5254_v48  ;;  %v8976_v29 = vld [vmem:[#allocation12_spill] sm:$0xff] }
 0xad3   : > { %v5203_v9 = vmul.f32 %v5162_v63, %v8315_v13  ;;  %v4864_v52 = vsel %vm4863_vm6, %v8798_v10, %v4862_v53  ;;  %v5187_v12 = vmul.f32 %v5130_v58, %v8216_v39  ;;  %v5160_v62 = vmul.f32 2.0, %v8820_v32  ;;  %v6258_v22 = vpop.eup %6257  ;;  %5770 = vmatprep.subr.msk.mxu1 %vm4764_vm15, %v5269_v60 }
 0xad4   : > { %v5253_v16 = vmax.f32 %v5189_v2, %v5221_v17  ;;  %6263 = vrcp.f32 %v5086_v36  ;;  %v4867_v25 = vsel %vm4865_vm7, %v4866_v59, %v4864_v52  ;;  %v5236_v56 = vmul.f32 0.2, %v5204_v26 }
 0xad5   : > { %v5220_v13 = vmul.f32 0.2, %v5188_v42  ;;  %6265 = vrcp.f32 %v5101_v28  ;;  %v5085_v55 = vadd.f32 1e-08, %v4867_v25  ;;  %v5235_v0 = vmul.f32 0.2, %v5203_v9 }
 0xad6   : > { %v5268_v61 = vmax.f32 %v5204_v26, %v5236_v56  ;;  %v5202_v46 = vmul.f32 %v8309_v27, %v5160_v62  ;;  %v5128_v49 = vmul.f32 2.0, %v6246_v40  ;;  %v5158_v39 = vmul.f32 2.0, %v8841_v6  ;;  %5771 = vmatpush3.xpose.msk.msra.mxu1 %vm4764_vm15, %v5253_v16  ;;  %v6281_v56 = vld [vmem:[#allocation8 + $0x240] sm:$0x7] }
 0xad7   : > { %6267 = vrcp.f32 %v5085_v55  ;;  %v5252_v32 = vmax.f32 %v5188_v42, %v5220_v13  ;;  %v5219_v20 = vmul.f32 0.2, %v5187_v12  ;;  %v5126_v41 = vmul.f32 2.0, %v6252_v4 }
 0xad8   : > { %5772 = vmatprep.subr.msk.mxu1 %vm4764_vm15, %v5268_v61  ;;  %v5186_v10 = vmul.f32 %v8210_v8, %v5128_v49  ;;  %v5267_v30 = vmax.f32 %v5203_v9, %v5235_v0  ;;  %v5234_v11 = vmul.f32 0.2, %v5202_v46  ;;  %v5201_v18 = vmul.f32 %v5158_v39, %v8311_v57  ;;  %v8978_v9 = vld [vmem:[#allocation13_spill] sm:$0xff] }
 0xad9   : > { %v5156_v27 = vmul.f32 2.0, %v8859_v43  ;;  %v5251_v6 = vmax.f32 %v5187_v12, %v5219_v20  ;;  %v5185_v47 = vmul.f32 %v5126_v41, %v8212_v54  ;;  %v5124_v24 = vmul.f32 2.0, %v6258_v22 }
 0xada   : > { %v6260_v35 = vpop.eup %6259  ;;  %5773 = vmatpush3.xpose.msk.msra.mxu1 %vm4764_vm15, %v5252_v32  ;;  %v5218_v40 = vmul.f32 0.2, %v5186_v10  ;;  %v5266_v3 = vmax.f32 %v5202_v46, %v5234_v11  ;;  %v5233_v8 = vmul.f32 0.2, %v5201_v18  ;;  %v5154_v50 = vmul.f32 2.0, %v6256_v33  ;;  %v8977_v33 = vld [vmem:[#allocation14_spill] sm:$0xff] }
 0xadb   : > { %5774 = vmatprep.subr.msk.mxu1 %vm4764_vm15, %v5267_v30  ;;  %v5200_v44 = vmul.f32 %v8305_v38, %v5156_v27  ;;  %v5217_v19 = vmul.f32 0.2, %v5185_v47  ;;  %v5184_v43 = vmul.f32 %v8206_v31, %v5124_v24  ;;  %v5152_v4 = vmul.f32 2.0, %v6260_v35 }
 0xadc   : > { %v6262_v37 = vpop.eup %6261  ;;  %v5250_v57 = vmax.f32 %v5186_v10, %v5218_v40  ;;  %v5265_v34 = vmax.f32 %v5201_v18, %v5233_v8  ;;  %v5199_v48 = vmul.f32 %v5154_v50, %v8307_v7  ;;  %vm5450_vm8 = vcmask 1042432  }
 0xadd   : > { %v5122_v59 = vmul.f32 2.0, %v6262_v37  ;;  %v5232_v21 = vmul.f32 0.2, %v5200_v44  ;;  %v5249_v38 = vmax.f32 %v5185_v47, %v5217_v19  ;;  %v5216_v60 = vmul.f32 0.2, %v5184_v43 }
 0xade   : > { %5775 = vmatpush3.xpose.msk.msra.mxu1 %vm4764_vm15, %v5251_v6  ;;  %v5231_v45 = vmul.f32 0.2, %v5199_v48  ;;  %v5198_v1 = vmul.f32 %v8301_v51, %v5152_v4 }
 0xadf   : > { %5776 = vmatprep.subr.msk.mxu1 %vm4764_vm15, %v5266_v3  ;;  %v5183_v2 = vmul.f32 %v5122_v59, %v8208_v15  ;;  %v5264_v31 = vmax.f32 %v5200_v44, %v5232_v21  ;;  %v5248_v7 = vmax.f32 %v5184_v43, %v5216_v60 }
 0xae0   : > { %v5263_v17 = vmax.f32 %v5199_v48, %v5231_v45  ;;  %v5230_v15 = vmul.f32 0.2, %v5198_v1 }
 0xae1   : > { %v6264_v23 = vpop.eup %6263  ;;  %v5215_v28 = vmul.f32 0.2, %v5183_v2 }
 0xae2   : > { %v6266_v54 = vpop.eup %6265  ;;  %5777 = vmatpush3.xpose.msk.msra.mxu1 %vm4764_vm15, %v5250_v57  ;;  %v5120_v14 = vmul.f32 2.0, %v6264_v23  ;;  %v5262_v52 = vmax.f32 %v5198_v1, %v5230_v15 }
 0xae3   : > { %5778 = vmatprep.subr.msk.mxu1 %vm4764_vm15, %v5265_v34  ;;  %v5150_v63 = vmul.f32 2.0, %v6266_v54  ;;  %v5247_v26 = vmax.f32 %v5183_v2, %v5215_v28 }
 0xae4   : > { %v6268_v5 = vpop.eup %6267  ;;  %v5182_v53 = vmul.f32 %v8976_v29, %v5120_v14 }
 0xae5   : > { %v5118_v58 = vmul.f32 2.0, %v6268_v5  ;;  %v5197_v36 = vmul.f32 %v5150_v63, %v8977_v33 }
 0xae6   : > { %5779 = vmatpush3.xpose.msk.msra.mxu1 %vm4764_vm15, %v5249_v38  ;;  %v5214_v42 = vmul.f32 0.2, %v5182_v53 }
 0xae7   : > { %5780 = vmatprep.subr.msk.mxu1 %vm4764_vm15, %v5264_v31  ;;  %v5181_v51 = vmul.f32 %v5118_v58, %v8978_v9  ;;  %v5229_v16 = vmul.f32 0.2, %v5197_v36 }
 0xae8   : > { %v5246_v12 = vmax.f32 %v5182_v53, %v5214_v42 }
 0xae9   : > { %v5213_v62 = vmul.f32 0.2, %v5181_v51  ;;  %v5261_v22 = vmax.f32 %v5197_v36, %v5229_v16 }
 0xaea   : > { %5781 = vmatpush3.xpose.msk.msra.mxu1 %vm4764_vm15, %v5248_v7 }
 0xaeb   : > { %5782 = vmatprep.subr.msk.mxu1 %vm4764_vm15, %v5263_v17  ;;  %v5245_v25 = vmax.f32 %v5181_v51, %v5213_v62 }
 0xaee   : > { %5783 = vmatpush3.xpose.msk.msra.mxu1 %vm4764_vm15, %v5247_v26 }
 0xaef   : > { %5784 = vmatprep.subr.msk.mxu1 %vm4764_vm15, %v5262_v52 }
 0xaf2   : > { %5785 = vmatpush3.xpose.msk.msra.mxu1 %vm4764_vm15, %v5246_v12 }
 0xaf3   : > { %5786 = vmatprep.subr.msk.mxu1 %vm4764_vm15, %v5261_v22 }
 0xaf6   : > { %5787 = vmatpush3.xpose.msk.msra.mxu1 %vm4764_vm15, %v5245_v25 }
 0xaf9   : > { %5789 = vmatmul.mubr.msk.f32.vlgmr.msra.gmra.mxu1 %vm4764_vm15, %v6281_v56 }
 0xbb9   : > { %v5443_v13 = vpop.f32.mrf.mxu1 }
 0xbba   : > { %v5448_v55 = vmul.f32 %v5443_v13, %v5443_v13 }
 0xbbb   : > { %v5445_v0 = vpop.f32.mrf.mxu1 }
 0xbbc   : > { %v5451_v61 = vsel %vm5450_vm8, %v5448_v55, 0.0  ;;  %v5449_v46 = vmul.f32 %v5445_v0, %v5445_v0 }
 0xbbd   : > { %v5452_v49 = vrot.slane %v5451_v61, 4 }
 0xbbe   : > { %v5458_v39 = vsel %vm5450_vm8, %v5449_v46, 0.0 }
 0xbbf   : > { %v5453_v32 = vadd.f32 %v5452_v49, %v5451_v61  ;;  %v5459_v20 = vrot.slane %v5458_v39, 4 }
 0xbc1   : > { %v5454_v10 = vrot.slane %v5453_v32, 2  ;;  %v5460_v41 = vadd.f32 %v5459_v20, %v5458_v39 }
 0xbc3   : > { %v5455_v35 = vadd.f32 %v5454_v10, %v5453_v32  ;;  %v5461_v30 = vrot.slane %v5460_v41, 2 }
 0xbc5   : > { %v5456_v11 = vrot.slane %v5455_v35, 1  ;;  %v5462_v18 = vadd.f32 %v5461_v30, %v5460_v41 }
 0xbc7   : > { %v5457_v27 = vadd.f32 %v5456_v11, %v5455_v35  ;;  %v5463_v6 = vrot.slane %v5462_v18, 1 }
 0xbc9   : > { %6269 = vrsqrt.f32 %v5457_v27  ;;  %v5464_v40 = vadd.f32 %v5463_v6, %v5462_v18  ;;  %vm5467_vm15 = vcmp.eq.f32.partialorder %v5457_v27, inf  ;;  %v5470_v37 = vand.u32 2147483648, %v5457_v27 }
 0xbca   : > { %vm5469_vm9 = vcmp.eq.f32.partialorder %v5457_v27, 0.0 }
 0xbcb   : > { %6271 = vrsqrt.f32 %v5464_v40  ;;  %vm5474_vm10 = vcmp.eq.f32.partialorder %v5464_v40, inf  ;;  %v5477_v19 = vand.u32 2147483648, %v5464_v40  ;;  %vm5476_vm11 = vcmp.eq.f32.partialorder %v5464_v40, 0.0 }
 0xbd6   : > { %v6270_v47 = vpop.eup %6269 }
 0xbd7   : > { %v5466_v24 = vmul.f32 %v6270_v47, %v5457_v27 }
 0xbd8   : > { %v6272_v3 = vpop.eup %6271 }
 0xbd9   : > { %v5468_v8 = vsel %vm5467_vm15, %v5457_v27, %v5466_v24  ;;  %v5473_v50 = vmul.f32 %v6272_v3, %v5464_v40 }
 0xbda   : > { %v5471_v44 = vsel %vm5469_vm9, %v5470_v37, %v5468_v8 }
 0xbdb   : > { %v5479_v57 = vadd.f32 1e-08, %v5471_v44  ;;  %v5475_v43 = vsel %vm5474_vm10, %v5464_v40, %v5473_v50 }
 0xbdc   : > { %v5478_v59 = vsel %vm5476_vm11, %v5477_v19, %v5475_v43 }
 0xbdd   : > { %6273 = vrcp.f32 %v5479_v57  ;;  %v5480_v23 = vadd.f32 1e-08, %v5478_v59 }
 0xbdf   : > { %6275 = vrcp.f32 %v5480_v23 }
 0xbea   : > { %v6274_v54 = vpop.eup %6273 }
 0xbeb   : > { %v5482_v34 = vmul.f32 1.7320508, %v6274_v54 }
 0xbec   : > { %v6276_v21 = vpop.eup %6275 }
 0xbed   : > { %v5485_v48 = vmul.f32 %v5482_v34, %v5443_v13  ;;  %v5484_v4 = vmul.f32 1.7320508, %v6276_v21 }
 0xbef   : > { %v5486_v38 = vmul.f32 %v5484_v4, %v5445_v0  ;;  %6277 = vtanh.f32 %v5485_v48 }
 0xbf1   : > { %6279 = vtanh.f32 %v5486_v38 }
 0xbfc   : > { %v6278_v60 = vpop.eup %6277 }
 0xbfe   : > { %v6280_v2 = vpop.eup %6279 }
 0xbff   : > { %v5491_v14 = vcombine.low %v6278_v60, %v6280_v2 }
 0xc01   : > { %5493 = vst [vmem:[%s172_s18] sm:$0x77] %v5491_v14 }
 0xc02 PF: > { %p13_p7 = scmp.ge.s32.totalorder %s6454_s19, 4   ;;  %s8979_s9 = smov %s6366_s10 }
 0xc03   : > { %s8980_s10 = smov %s6370_s11  ;;  %s8981_s11 = smov %s6471_s27 }
 0xc04   : > { %s8982_s12 = smov %s6454_s19  ;;  %15 = sbr.rel (!%p13_p7) target bundleno = 4 (0x4), region = 84 }
 0xc09   :  { %5515 = vsyncpa [#allocation7], 1 }
 0xc0a   :  { %5517 = vsyncpa [#allocation7 + $0x1], 1 }
 0xc0b   :  { %5518 = vsyncpa [#allocation9], 1 }

</bundles_post_ra>
